<compile_context>
chip_gen: v6e
topology: v6e:2x2x1
jax: 0.10.0
libtpu: 0.0.40
codegen_flags: <defaults>
</compile_context>

<pallas_src>
import jax
import jax.numpy as jnp
from jax.experimental import pallas as pl
from jax.experimental.pallas import tpu as pltpu

EPS = 1e-5
LANE = 128


# --------------------------------------------------------------------------
# Kernels
# --------------------------------------------------------------------------
def _conv1_stats_kernel(p_ref, w_ref, y_ref, st_ref):
    # p_ref : (1, M, K1)      bf16 im2col patch for conv1 (built in XLA)
    # w_ref : (K1, Co)        bf16 im2col weights (K padded once to K1)
    # y_ref : (1, H, W, Co)   bf16 conv1 output (pre-BN)
    # st_ref: (1, 2, Co)      f32 per-image [sum, centered-sum-of-squares]
    _, M, K1 = p_ref.shape
    _, H, W, Co = y_ref.shape

    patch = p_ref[...].reshape(M, K1)
    y = jnp.dot(patch, w_ref[...], preferred_element_type=jnp.float32)

    # Stats from the f32 accumulator, before the bf16 down-cast.
    s = jnp.sum(y, axis=0, keepdims=True)                     # (1, Co)
    css = jnp.sum((y - s / M) ** 2, axis=0, keepdims=True)    # (1, Co)
    st_ref[...] = jnp.concatenate([s, css], axis=0).reshape(1, 2, Co)

    y_ref[...] = y.reshape(1, H, W, Co).astype(y_ref.dtype)


def _bn1_conv2_stats_kernel(y1_ref, sc1_ref, sh1_ref, w_ref,
                            y2_ref, st_ref, h1p_ref, patch_ref):
    # y1_ref : (1, H, W, Co) bf16 conv1 output
    # sc1_ref: (1, Co) f32 folded BN1 scale   (gamma * rsqrt(var + eps))
    # sh1_ref: (1, Co) f32 folded BN1 shift   (beta - mean * scale)
    # w_ref  : (9*Co, Co) bf16 im2col weights for conv2
    # y2_ref : (1, H, W, Co) bf16 conv2 output (pre-BN)
    # st_ref : (1, 2, Co) f32 per-image [sum, centered-sum-of-squares] of y2
    # h1p_ref: VMEM scratch (1, H+2, W+2, Co) bf16, spatially padded BN1 out
    # patch_ref: VMEM scratch (H*W, 9*Co) bf16 im2col patch
    _, H, W, Co = y1_ref.shape
    M = H * W

    # BN1 + ReLU in f32, single down-cast to bf16 (the MXU operand dtype).
    y1 = y1_ref[...].astype(jnp.float32).reshape(M, Co)
    h1 = jnp.maximum(y1 * sc1_ref[...] + sh1_ref[...], 0.0).astype(jnp.bfloat16)

    # Padded conv2 input: halo ring + interior only (no full zero sweep).
    dt = h1p_ref.dtype
    zr = jnp.zeros((1, 1, W + 2, Co), dt)
    zc = jnp.zeros((1, H, 1, Co), dt)
    h1p_ref[:, 0:1, :, :] = zr
    h1p_ref[:, H + 1:H + 2, :, :] = zr
    h1p_ref[:, 1:H + 1, 0:1, :] = zc
    h1p_ref[:, 1:H + 1, W + 1:W + 2, :] = zc
    h1p_ref[:, 1:H + 1, 1:W + 1, :] = h1.reshape(1, H, W, Co)

    # im2col patch built straight into the bf16 scratch via lane-aligned
    # column-block stores (offsets k*Co are multiples of 128): no concatenate
    # copy and no per-tap casts.
    xp = h1p_ref[...]                                          # (1, H+2, W+2, Co)
    k = 0
    for dy in range(3):
        for dx in range(3):
            patch_ref[:, k * Co:(k + 1) * Co] = (
                xp[:, dy:dy + H, dx:dx + W, :].reshape(M, Co))
            k += 1

    y2 = jnp.dot(patch_ref[...], w_ref[...], preferred_element_type=jnp.float32)

    s = jnp.sum(y2, axis=0, keepdims=True)
    css = jnp.sum((y2 - s / M) ** 2, axis=0, keepdims=True)
    st_ref[...] = jnp.concatenate([s, css], axis=0).reshape(1, 2, Co)

    y2_ref[...] = y2.reshape(1, H, W, Co).astype(y2_ref.dtype)


# --------------------------------------------------------------------------
# Wrapper
# --------------------------------------------------------------------------
def _round_up(x, m):
    return (x + m - 1) // m * m


def _im2col_weights(w_oihw, ci_pad, co_pad, k_pad=None):
    # OIHW -> HWIO, zero-pad channels, flatten the 9 taps into the K axis
    # (row order matches the (dy, dx, ci) patch column order).
    o, i, kh, kw = w_oihw.shape
    w = jnp.transpose(w_oihw, (2, 3, 1, 0))                    # (3, 3, I, O)
    w = jnp.pad(w, ((0, 0), (0, 0), (0, ci_pad - i), (0, co_pad - o)))
    w = w.reshape(kh * kw * ci_pad, co_pad)
    if k_pad is not None:
        w = jnp.pad(w, ((0, k_pad - w.shape[0]), (0, 0)))
    return w.astype(jnp.bfloat16)


def _im2col_input_xla(xp_bf16, k_pad):
    # Small-Cin conv1 im2col in XLA: (N, H+2, W+2, Cin) bf16 -> (N, H*W, k_pad)
    N, Hp, Wp, Cin = xp_bf16.shape
    H, W = Hp - 2, Wp - 2
    cols = [xp_bf16[:, dy:dy + H, dx:dx + W, :]
            for dy in range(3) for dx in range(3)]
    p = jnp.concatenate(cols, axis=-1)                         # (N, H, W, 9*Cin)
    p = jnp.pad(p, ((0, 0), (0, 0), (0, 0), (0, k_pad - 9 * Cin)))
    return p.reshape(N, H * W, k_pad)


def _fold_bn(stats, gamma, beta, m_per_image, c_pad):
    # stats: (N, 2, Cpad) per-image [sum, centered sum-of-squares] over H*W.
    # Combine with the parallel-variance formula (numerically stable), then
    # fold gamma/beta into a per-channel (scale, shift).
    n = stats.shape[0]
    mean_i = stats[:, 0, :] / m_per_image                      # (N, Cpad)
    css_i = stats[:, 1, :]                                     # (N, Cpad)
    mean = jnp.mean(mean_i, axis=0)                            # (Cpad,)
    m2 = jnp.sum(css_i, axis=0) + m_per_image * jnp.sum((mean_i - mean) ** 2, axis=0)
    var = m2 / (n * m_per_image)                               # biased (training mode)
    g = jnp.pad(gamma, (0, c_pad - gamma.shape[0]))            # padded channels -> 0
    b = jnp.pad(beta, (0, c_pad - beta.shape[0]))
    scale = g * jax.lax.rsqrt(var + EPS)
    shift = b - mean * scale
    return (scale.reshape(1, c_pad).astype(jnp.float32),
            shift.reshape(1, c_pad).astype(jnp.float32))


def double_conv(x_nchw, w1_oihw, g1, b1, w2_oihw, g2, b2):
    """Forward of DoubleConv. x_nchw: (N, Cin, H, W) f32. Returns NCHW f32."""
    N, Cin, H, W = x_nchw.shape
    Cout = w1_oihw.shape[0]
    Co = _round_up(Cout, LANE)
    K1 = _round_up(9 * Cin, LANE)       # conv1 im2col K, padded once to a lane multiple
    M = H * W

    # Layout glue: NCHW -> NHWC, single bf16 cast, spatial zero-pad, XLA im2col
    # for the small-Cin first conv.
    x = jnp.transpose(x_nchw, (0, 2, 3, 1)).astype(jnp.bfloat16)
    xp = jnp.pad(x, ((0, 0), (1, 1), (1, 1), (0, 0)))
    p1 = _im2col_input_xla(xp, K1)                             # (N, M, K1) bf16
    w1m = _im2col_weights(w1_oihw, Cin, Co, k_pad=K1)          # (K1, Co) bf16
    w2m = _im2col_weights(w2_oihw, Co, Co)                     # (9*Co, Co) bf16

    cparams = pltpu.CompilerParams(
        dimension_semantics=("parallel",),        # batch axis -> both TCs on v7x
        vmem_limit_bytes=32 * 1024 * 1024)

    # ---- pass 1: conv1 + per-image BN1 stat partials ----
    y1, st1 = pl.pallas_call(
        _conv1_stats_kernel,
        out_shape=(jax.ShapeDtypeStruct((N, H, W, Co), jnp.bfloat16),
                   jax.ShapeDtypeStruct((N, 2, Co), jnp.float32)),
        grid=(N,),
        in_specs=[
            pl.BlockSpec((1, M, K1), lambda n: (n, 0, 0)),
            pl.BlockSpec((K1, Co), lambda n: (0, 0)),
        ],
        out_specs=(
            pl.BlockSpec((1, H, W, Co), lambda n: (n, 0, 0, 0)),
            pl.BlockSpec((1, 2, Co), lambda n: (n, 0, 0)),
        ),
        compiler_params=cparams,
    )(p1, w1m)

    sc1, sh1 = _fold_bn(st1, g1, b1, M, Co)

    # ---- pass 2: BN1+ReLU, conv2, per-image BN2 stat partials ----
    y2, st2 = pl.pallas_call(
        _bn1_conv2_stats_kernel,
        out_shape=(jax.ShapeDtypeStruct((N, H, W, Co), jnp.bfloat16),
                   jax.ShapeDtypeStruct((N, 2, Co), jnp.float32)),
        grid=(N,),
        in_specs=[
            pl.BlockSpec((1, H, W, Co), lambda n: (n, 0, 0, 0)),
            pl.BlockSpec((1, Co), lambda n: (0, 0)),
            pl.BlockSpec((1, Co), lambda n: (0, 0)),
            pl.BlockSpec((9 * Co, Co), lambda n: (0, 0)),
        ],
        out_specs=(
            pl.BlockSpec((1, H, W, Co), lambda n: (n, 0, 0, 0)),
            pl.BlockSpec((1, 2, Co), lambda n: (n, 0, 0)),
        ),
        scratch_shapes=[
            pltpu.VMEM((1, H + 2, W + 2, Co), jnp.bfloat16),   # padded BN1 output
            pltpu.VMEM((M, 9 * Co), jnp.bfloat16),             # im2col patch
        ],
        compiler_params=cparams,
    )(y1, sc1, sh1, w2m)

    sc2, sh2 = _fold_bn(st2, g2, b2, M, Co)

    # ---- BN2 + ReLU epilogue: plain jnp so XLA fuses the scale/shift/ReLU
    # with the channel slice and NCHW transpose into one HBM sweep.
    out_nhwc = jnp.maximum(
        y2[..., :Cout].astype(jnp.float32) * sc2[0, :Cout] + sh2[0, :Cout], 0.0)
    return jnp.transpose(out_nhwc, (0, 3, 1, 2))


# --------------------------------------------------------------------------
# Pure-JAX reference (module semantics, f32) for validation
# --------------------------------------------------------------------------
def _reference(x, w1, g1, b1, w2, g2, b2):
    def conv(h, w):
        return jax.lax.conv_general_dilated(
            h, w, window_strides=(1, 1), padding="SAME",
            dimension_numbers=("NCHW", "OIHW", "NCHW"))

    def bn_relu(y, g, b):
        mean = y.mean(axis=(0, 2, 3), keepdims=True)
        var = ((y - mean) ** 2).mean(axis=(0, 2, 3), keepdims=True)
        yhat = (y - mean) / jnp.sqrt(var + EPS)
        return jnp.maximum(yhat * g.reshape(1, -1, 1, 1) + b.reshape(1, -1, 1, 1), 0.0)

    h = bn_relu(conv(x, w1), g1, b1)
    return bn_relu(conv(h, w2), g2, b2)


if __name__ == "__main__":
    N, Cin, Cout, H, W = 2, 4, 8, 16, 16

    key = jax.random.PRNGKey(0)
    kx, kw1, kw2, kg1, kb1, kg2, kb2 = jax.random.split(key, 7)

    x = jax.random.normal(kx, (N, Cin, H, W), jnp.float32)
    # Conv2d weights: (out_channels, in_channels, 3, 3), no bias.
    w1 = jax.random.normal(kw1, (Cout, Cin, 3, 3), jnp.float32) * 0.1
    w2 = jax.random.normal(kw2, (Cout, Cout, 3, 3), jnp.float32) * 0.1
    # BatchNorm2d affine params (shape (out_channels,)).
    g1 = 1.0 + 0.1 * jax.random.normal(kg1, (Cout,), jnp.float32)
    b1 = 0.1 * jax.random.normal(kb1, (Cout,), jnp.float32)
    g2 = 1.0 + 0.1 * jax.random.normal(kg2, (Cout,), jnp.float32)
    b2 = 0.1 * jax.random.normal(kb2, (Cout,), jnp.float32)

    out = jax.block_until_ready(jax.jit(double_conv)(x, w1, g1, b1, w2, g2, b2))
    ref = jax.block_until_ready(_reference(x, w1, g1, b1, w2, g2, b2))

    assert out.shape == (N, Cout, H, W), out.shape
    max_err = float(jnp.max(jnp.abs(out - ref)))
    # Tolerance loosened vs the f32 reference because conv matmuls use bf16
    # MXU operands and the inter-pass intermediates are stored in bf16 (BN
    # statistics remain f32, derived from the f32 accumulator in-kernel).
    assert jnp.allclose(out, ref, rtol=4e-2, atol=4e-2), max_err
    print("KERNEL_OK")
</pallas_src>

<mosaic_0001>
module attributes {stable_mosaic.version = 11 : i64} {
  func.func @_conv1_stats_kernel(%arg0: i32, %arg1: memref<1x256x128xbf16, #tpu.memory_space<vmem>>, %arg2: memref<128x128xbf16, #tpu.memory_space<vmem>>, %arg3: memref<1x16x16x128xbf16, #tpu.memory_space<vmem>>, %arg4: memref<1x2x128xf32, #tpu.memory_space<vmem>>) attributes {dimension_semantics = [#tpu.dimension_semantics<parallel>], iteration_bounds = array<i64: 2>, scalar_prefetch = 0 : i64, scratch_operands = 0 : i64, tpu.core_type = #tpu.core_type<tc>, window_params = [{transform_indices = @transform_0, window_bounds = array<i64: 1, 256, 128>}, {pipeline_mode = #tpu.pipeline_mode<synchronous>, transform_indices = @transform_1, window_bounds = array<i64: 128, 128>}, {transform_indices = @transform_2, window_bounds = array<i64: 1, 16, 16, 128>}, {transform_indices = @transform_3, window_bounds = array<i64: 1, 2, 128>}]} {
    %c0 = arith.constant 0 : index
    %c0_0 = arith.constant 0 : index
    %c0_1 = arith.constant 0 : index
    %0 = vector.load %arg1[%c0, %c0_0, %c0_1] : memref<1x256x128xbf16, #tpu.memory_space<vmem>>, vector<1x256x128xbf16>
    %1 = vector.shape_cast %0 : vector<1x256x128xbf16> to vector<256x128xbf16>
    %c0_2 = arith.constant 0 : index
    %c0_3 = arith.constant 0 : index
    %2 = vector.load %arg2[%c0_2, %c0_3] : memref<128x128xbf16, #tpu.memory_space<vmem>>, vector<128x128xbf16>
    %cst = arith.constant dense<0.000000e+00> : vector<256x128xf32>
    %3 = tpu.matmul %1, %2, %cst {dimension_numbers = #tpu.dot_dimension_numbers<[1], [0], [0], [1], [0, 0, 1, 1], [], []>} : vector<256x128xbf16>, vector<128x128xbf16>, vector<256x128xf32> -> vector<256x128xf32>
    %cst_4 = arith.constant dense<0.000000e+00> : vector<128xf32>
    %4 = vector.multi_reduction <add>, %3, %cst_4 [0] : vector<256x128xf32> to vector<128xf32>
    %5 = vector.shape_cast %4 : vector<128xf32> to vector<1x128xf32>
    %cst_5 = arith.constant 2.560000e+02 : f32
    %6 = vector.broadcast %cst_5 : f32 to vector<1x128xf32>
    %7 = arith.divf %5, %6 : vector<1x128xf32>
    %8 = vector.broadcast %7 : vector<1x128xf32> to vector<256x128xf32>
    %9 = arith.subf %3, %8 : vector<256x128xf32>
    %10 = arith.mulf %9, %9 : vector<256x128xf32>
    %cst_6 = arith.constant dense<0.000000e+00> : vector<128xf32>
    %11 = vector.multi_reduction <add>, %10, %cst_6 [0] : vector<256x128xf32> to vector<128xf32>
    %12 = vector.shape_cast %11 : vector<128xf32> to vector<1x128xf32>
    %13 = tpu.concatenate %5, %12 in 0 : vector<1x128xf32>, vector<1x128xf32> -> vector<2x128xf32>
    %14 = vector.shape_cast %13 : vector<2x128xf32> to vector<1x2x128xf32>
    %c0_7 = arith.constant 0 : index
    %c0_8 = arith.constant 0 : index
    %c0_9 = arith.constant 0 : index
    %15 = vector.load %arg4[%c0_7, %c0_8, %c0_9] : memref<1x2x128xf32, #tpu.memory_space<vmem>>, vector<1x2x128xf32>
    tpu.vector_store %arg4[%c0_7, %c0_8, %c0_9], %14 {strides = array<i32>} : memref<1x2x128xf32, #tpu.memory_space<vmem>>, vector<1x2x128xf32>,
    %16 = vector.shape_cast %3 : vector<256x128xf32> to vector<1x16x16x128xf32>
    %17 = arith.truncf %16 : vector<1x16x16x128xf32> to vector<1x16x16x128xbf16>
    %c0_10 = arith.constant 0 : index
    %c0_11 = arith.constant 0 : index
    %c0_12 = arith.constant 0 : index
    %c0_13 = arith.constant 0 : index
    %18 = vector.load %arg3[%c0_10, %c0_11, %c0_12, %c0_13] : memref<1x16x16x128xbf16, #tpu.memory_space<vmem>>, vector<1x16x16x128xbf16>
    tpu.vector_store %arg3[%c0_10, %c0_11, %c0_12, %c0_13], %17 {strides = array<i32>} : memref<1x16x16x128xbf16, #tpu.memory_space<vmem>>, vector<1x16x16x128xbf16>,
    return
  }
  func.func @transform_0(%arg0: i32) -> (i32, i32, i32) {
    %c0_i32 = arith.constant 0 : i32
    %c0_i32_0 = arith.constant 0 : i32
    %c0_i32_1 = arith.constant 0 : i32
    return %arg0, %c0_i32, %c0_i32_0 : i32, i32, i32
  }
  func.func @transform_1(%arg0: i32) -> (i32, i32) {
    %c0_i32 = arith.constant 0 : i32
    %c0_i32_0 = arith.constant 0 : i32
    %c0_i32_1 = arith.constant 0 : i32
    return %c0_i32, %c0_i32_0 : i32, i32
  }
  func.func @transform_2(%arg0: i32) -> (i32, i32, i32, i32) {
    %c0_i32 = arith.constant 0 : i32
    %c0_i32_0 = arith.constant 0 : i32
    %c0_i32_1 = arith.constant 0 : i32
    %c0_i32_2 = arith.constant 0 : i32
    return %arg0, %c0_i32, %c0_i32_0, %c0_i32_1 : i32, i32, i32, i32
  }
  func.func @transform_3(%arg0: i32) -> (i32, i32, i32) {
    %c0_i32 = arith.constant 0 : i32
    %c0_i32_0 = arith.constant 0 : i32
    %c0_i32_1 = arith.constant 0 : i32
    return %arg0, %c0_i32, %c0_i32_0 : i32, i32, i32
  }
}

module attributes {stable_mosaic.version = 11 : i64} {
  func.func @_bn1_conv2_stats_kernel(%arg0: i32, %arg1: memref<1x16x16x128xbf16, #tpu.memory_space<vmem>>, %arg2: memref<1x128xf32, #tpu.memory_space<vmem>>, %arg3: memref<1x128xf32, #tpu.memory_space<vmem>>, %arg4: memref<1152x128xbf16, #tpu.memory_space<vmem>>, %arg5: memref<1x16x16x128xbf16, #tpu.memory_space<vmem>>, %arg6: memref<1x2x128xf32, #tpu.memory_space<vmem>>, %arg7: memref<1x18x18x128xbf16, #tpu.memory_space<vmem>>, %arg8: memref<256x1152xbf16, #tpu.memory_space<vmem>>) attributes {dimension_semantics = [#tpu.dimension_semantics<parallel>], iteration_bounds = array<i64: 2>, scalar_prefetch = 0 : i64, scratch_operands = 2 : i64, tpu.core_type = #tpu.core_type<tc>, window_params = [{transform_indices = @transform_0, window_bounds = array<i64: 1, 16, 16, 128>}, {pipeline_mode = #tpu.pipeline_mode<synchronous>, transform_indices = @transform_1, window_bounds = array<i64: 1, 128>}, {pipeline_mode = #tpu.pipeline_mode<synchronous>, transform_indices = @transform_2, window_bounds = array<i64: 1, 128>}, {pipeline_mode = #tpu.pipeline_mode<synchronous>, transform_indices = @transform_3, window_bounds = array<i64: 1152, 128>}, {transform_indices = @transform_4, window_bounds = array<i64: 1, 16, 16, 128>}, {transform_indices = @transform_5, window_bounds = array<i64: 1, 2, 128>}]} {
    %c0 = arith.constant 0 : index
    %c0_0 = arith.constant 0 : index
    %c0_1 = arith.constant 0 : index
    %c0_2 = arith.constant 0 : index
    %0 = vector.load %arg1[%c0, %c0_0, %c0_1, %c0_2] : memref<1x16x16x128xbf16, #tpu.memory_space<vmem>>, vector<1x16x16x128xbf16>
    %1 = arith.extf %0 : vector<1x16x16x128xbf16> to vector<1x16x16x128xf32>
    %2 = vector.shape_cast %1 : vector<1x16x16x128xf32> to vector<256x128xf32>
    %c0_3 = arith.constant 0 : index
    %c0_4 = arith.constant 0 : index
    %3 = vector.load %arg2[%c0_3, %c0_4] : memref<1x128xf32, #tpu.memory_space<vmem>>, vector<1x128xf32>
    %4 = vector.broadcast %3 : vector<1x128xf32> to vector<256x128xf32>
    %5 = arith.mulf %2, %4 : vector<256x128xf32>
    %c0_5 = arith.constant 0 : index
    %c0_6 = arith.constant 0 : index
    %6 = vector.load %arg3[%c0_5, %c0_6] : memref<1x128xf32, #tpu.memory_space<vmem>>, vector<1x128xf32>
    %7 = vector.broadcast %6 : vector<1x128xf32> to vector<256x128xf32>
    %8 = arith.addf %5, %7 : vector<256x128xf32>
    %cst = arith.constant 0.000000e+00 : f32
    %9 = vector.broadcast %cst : f32 to vector<256x128xf32>
    %10 = arith.maximumf %8, %9 : vector<256x128xf32>
    %11 = arith.truncf %10 : vector<256x128xf32> to vector<256x128xbf16>
    %cst_7 = arith.constant 0.000000e+00 : bf16
    %12 = vector.broadcast %cst_7 : bf16 to vector<1x1x18x128xbf16>
    %cst_8 = arith.constant 0.000000e+00 : bf16
    %13 = vector.broadcast %cst_8 : bf16 to vector<1x16x1x128xbf16>
    %c0_9 = arith.constant 0 : index
    %c0_10 = arith.constant 0 : index
    %c0_11 = arith.constant 0 : index
    %c0_12 = arith.constant 0 : index
    %14 = vector.load %arg7[%c0_9, %c0_10, %c0_11, %c0_12] : memref<1x18x18x128xbf16, #tpu.memory_space<vmem>>, vector<1x1x18x128xbf16>
    tpu.vector_store %arg7[%c0_9, %c0_10, %c0_11, %c0_12], %12 {strides = array<i32>} : memref<1x18x18x128xbf16, #tpu.memory_space<vmem>>, vector<1x1x18x128xbf16>,
    %c0_13 = arith.constant 0 : index
    %c17 = arith.constant 17 : index
    %c0_14 = arith.constant 0 : index
    %c0_15 = arith.constant 0 : index
    %15 = vector.load %arg7[%c0_13, %c17, %c0_14, %c0_15] : memref<1x18x18x128xbf16, #tpu.memory_space<vmem>>, vector<1x1x18x128xbf16>
    tpu.vector_store %arg7[%c0_13, %c17, %c0_14, %c0_15], %12 {strides = array<i32>} : memref<1x18x18x128xbf16, #tpu.memory_space<vmem>>, vector<1x1x18x128xbf16>,
    %c0_16 = arith.constant 0 : index
    %c1 = arith.constant 1 : index
    %c0_17 = arith.constant 0 : index
    %c0_18 = arith.constant 0 : index
    %16 = vector.load %arg7[%c0_16, %c1, %c0_17, %c0_18] : memref<1x18x18x128xbf16, #tpu.memory_space<vmem>>, vector<1x16x1x128xbf16>
    tpu.vector_store %arg7[%c0_16, %c1, %c0_17, %c0_18], %13 {strides = array<i32>} : memref<1x18x18x128xbf16, #tpu.memory_space<vmem>>, vector<1x16x1x128xbf16>,
    %c0_19 = arith.constant 0 : index
    %c1_20 = arith.constant 1 : index
    %c17_21 = arith.constant 17 : index
    %c0_22 = arith.constant 0 : index
    %17 = vector.load %arg7[%c0_19, %c1_20, %c17_21, %c0_22] : memref<1x18x18x128xbf16, #tpu.memory_space<vmem>>, vector<1x16x1x128xbf16>
    tpu.vector_store %arg7[%c0_19, %c1_20, %c17_21, %c0_22], %13 {strides = array<i32>} : memref<1x18x18x128xbf16, #tpu.memory_space<vmem>>, vector<1x16x1x128xbf16>,
    %18 = vector.shape_cast %11 : vector<256x128xbf16> to vector<1x16x16x128xbf16>
    %c0_23 = arith.constant 0 : index
    %c1_24 = arith.constant 1 : index
    %c1_25 = arith.constant 1 : index
    %c0_26 = arith.constant 0 : index
    %19 = vector.load %arg7[%c0_23, %c1_24, %c1_25, %c0_26] : memref<1x18x18x128xbf16, #tpu.memory_space<vmem>>, vector<1x16x16x128xbf16>
    tpu.vector_store %arg7[%c0_23, %c1_24, %c1_25, %c0_26], %18 {strides = array<i32>} : memref<1x18x18x128xbf16, #tpu.memory_space<vmem>>, vector<1x16x16x128xbf16>,
    %c0_27 = arith.constant 0 : index
    %c0_28 = arith.constant 0 : index
    %c0_29 = arith.constant 0 : index
    %c0_30 = arith.constant 0 : index
    %20 = vector.load %arg7[%c0_27, %c0_28, %c0_29, %c0_30] : memref<1x18x18x128xbf16, #tpu.memory_space<vmem>>, vector<1x18x18x128xbf16>
    %21 = vector.extract_strided_slice %20 {offsets = [0, 0, 0, 0], sizes = [1, 16, 16, 128], strides = [1, 1, 1, 1]} : vector<1x18x18x128xbf16> to vector<1x16x16x128xbf16>
    %22 = vector.shape_cast %21 : vector<1x16x16x128xbf16> to vector<256x128xbf16>
    %c0_31 = arith.constant 0 : index
    %c0_32 = arith.constant 0 : index
    %23 = vector.load %arg8[%c0_31, %c0_32] : memref<256x1152xbf16, #tpu.memory_space<vmem>>, vector<256x128xbf16>
    tpu.vector_store %arg8[%c0_31, %c0_32], %22 {strides = array<i32>} : memref<256x1152xbf16, #tpu.memory_space<vmem>>, vector<256x128xbf16>,
    %24 = vector.extract_strided_slice %20 {offsets = [0, 0, 1, 0], sizes = [1, 16, 16, 128], strides = [1, 1, 1, 1]} : vector<1x18x18x128xbf16> to vector<1x16x16x128xbf16>
    %25 = vector.shape_cast %24 : vector<1x16x16x128xbf16> to vector<256x128xbf16>
    %c0_33 = arith.constant 0 : index
    %c128 = arith.constant 128 : index
    %26 = vector.load %arg8[%c0_33, %c128] : memref<256x1152xbf16, #tpu.memory_space<vmem>>, vector<256x128xbf16>
    tpu.vector_store %arg8[%c0_33, %c128], %25 {strides = array<i32>} : memref<256x1152xbf16, #tpu.memory_space<vmem>>, vector<256x128xbf16>,
    %27 = vector.extract_strided_slice %20 {offsets = [0, 0, 2, 0], sizes = [1, 16, 16, 128], strides = [1, 1, 1, 1]} : vector<1x18x18x128xbf16> to vector<1x16x16x128xbf16>
    %28 = vector.shape_cast %27 : vector<1x16x16x128xbf16> to vector<256x128xbf16>
    %c0_34 = arith.constant 0 : index
    %c256 = arith.constant 256 : index
    %29 = vector.load %arg8[%c0_34, %c256] : memref<256x1152xbf16, #tpu.memory_space<vmem>>, vector<256x128xbf16>
    tpu.vector_store %arg8[%c0_34, %c256], %28 {strides = array<i32>} : memref<256x1152xbf16, #tpu.memory_space<vmem>>, vector<256x128xbf16>,
    %30 = vector.extract_strided_slice %20 {offsets = [0, 1, 0, 0], sizes = [1, 16, 16, 128], strides = [1, 1, 1, 1]} : vector<1x18x18x128xbf16> to vector<1x16x16x128xbf16>
    %31 = vector.shape_cast %30 : vector<1x16x16x128xbf16> to vector<256x128xbf16>
    %c0_35 = arith.constant 0 : index
    %c384 = arith.constant 384 : index
    %32 = vector.load %arg8[%c0_35, %c384] : memref<256x1152xbf16, #tpu.memory_space<vmem>>, vector<256x128xbf16>
    tpu.vector_store %arg8[%c0_35, %c384], %31 {strides = array<i32>} : memref<256x1152xbf16, #tpu.memory_space<vmem>>, vector<256x128xbf16>,
    %33 = vector.extract_strided_slice %20 {offsets = [0, 1, 1, 0], sizes = [1, 16, 16, 128], strides = [1, 1, 1, 1]} : vector<1x18x18x128xbf16> to vector<1x16x16x128xbf16>
    %34 = vector.shape_cast %33 : vector<1x16x16x128xbf16> to vector<256x128xbf16>
    %c0_36 = arith.constant 0 : index
    %c512 = arith.constant 512 : index
    %35 = vector.load %arg8[%c0_36, %c512] : memref<256x1152xbf16, #tpu.memory_space<vmem>>, vector<256x128xbf16>
    tpu.vector_store %arg8[%c0_36, %c512], %34 {strides = array<i32>} : memref<256x1152xbf16, #tpu.memory_space<vmem>>, vector<256x128xbf16>,
    %36 = vector.extract_strided_slice %20 {offsets = [0, 1, 2, 0], sizes = [1, 16, 16, 128], strides = [1, 1, 1, 1]} : vector<1x18x18x128xbf16> to vector<1x16x16x128xbf16>
    %37 = vector.shape_cast %36 : vector<1x16x16x128xbf16> to vector<256x128xbf16>
    %c0_37 = arith.constant 0 : index
    %c640 = arith.constant 640 : index
    %38 = vector.load %arg8[%c0_37, %c640] : memref<256x1152xbf16, #tpu.memory_space<vmem>>, vector<256x128xbf16>
    tpu.vector_store %arg8[%c0_37, %c640], %37 {strides = array<i32>} : memref<256x1152xbf16, #tpu.memory_space<vmem>>, vector<256x128xbf16>,
    %39 = vector.extract_strided_slice %20 {offsets = [0, 2, 0, 0], sizes = [1, 16, 16, 128], strides = [1, 1, 1, 1]} : vector<1x18x18x128xbf16> to vector<1x16x16x128xbf16>
    %40 = vector.shape_cast %39 : vector<1x16x16x128xbf16> to vector<256x128xbf16>
    %c0_38 = arith.constant 0 : index
    %c768 = arith.constant 768 : index
    %41 = vector.load %arg8[%c0_38, %c768] : memref<256x1152xbf16, #tpu.memory_space<vmem>>, vector<256x128xbf16>
    tpu.vector_store %arg8[%c0_38, %c768], %40 {strides = array<i32>} : memref<256x1152xbf16, #tpu.memory_space<vmem>>, vector<256x128xbf16>,
    %42 = vector.extract_strided_slice %20 {offsets = [0, 2, 1, 0], sizes = [1, 16, 16, 128], strides = [1, 1, 1, 1]} : vector<1x18x18x128xbf16> to vector<1x16x16x128xbf16>
    %43 = vector.shape_cast %42 : vector<1x16x16x128xbf16> to vector<256x128xbf16>
    %c0_39 = arith.constant 0 : index
    %c896 = arith.constant 896 : index
    %44 = vector.load %arg8[%c0_39, %c896] : memref<256x1152xbf16, #tpu.memory_space<vmem>>, vector<256x128xbf16>
    tpu.vector_store %arg8[%c0_39, %c896], %43 {strides = array<i32>} : memref<256x1152xbf16, #tpu.memory_space<vmem>>, vector<256x128xbf16>,
    %45 = vector.extract_strided_slice %20 {offsets = [0, 2, 2, 0], sizes = [1, 16, 16, 128], strides = [1, 1, 1, 1]} : vector<1x18x18x128xbf16> to vector<1x16x16x128xbf16>
    %46 = vector.shape_cast %45 : vector<1x16x16x128xbf16> to vector<256x128xbf16>
    %c0_40 = arith.constant 0 : index
    %c1024 = arith.constant 1024 : index
    %47 = vector.load %arg8[%c0_40, %c1024] : memref<256x1152xbf16, #tpu.memory_space<vmem>>, vector<256x128xbf16>
    tpu.vector_store %arg8[%c0_40, %c1024], %46 {strides = array<i32>} : memref<256x1152xbf16, #tpu.memory_space<vmem>>, vector<256x128xbf16>,
    %c0_41 = arith.constant 0 : index
    %c0_42 = arith.constant 0 : index
    %48 = vector.load %arg8[%c0_41, %c0_42] : memref<256x1152xbf16, #tpu.memory_space<vmem>>, vector<256x1152xbf16>
    %c0_43 = arith.constant 0 : index
    %c0_44 = arith.constant 0 : index
    %49 = vector.load %arg4[%c0_43, %c0_44] : memref<1152x128xbf16, #tpu.memory_space<vmem>>, vector<1152x128xbf16>
    %cst_45 = arith.constant dense<0.000000e+00> : vector<256x128xf32>
    %50 = tpu.matmul %48, %49, %cst_45 {dimension_numbers = #tpu.dot_dimension_numbers<[1], [0], [0], [1], [0, 0, 1, 1], [], []>} : vector<256x1152xbf16>, vector<1152x128xbf16>, vector<256x128xf32> -> vector<256x128xf32>
    %cst_46 = arith.constant dense<0.000000e+00> : vector<128xf32>
    %51 = vector.multi_reduction <add>, %50, %cst_46 [0] : vector<256x128xf32> to vector<128xf32>
    %52 = vector.shape_cast %51 : vector<128xf32> to vector<1x128xf32>
    %cst_47 = arith.constant 2.560000e+02 : f32
    %53 = vector.broadcast %cst_47 : f32 to vector<1x128xf32>
    %54 = arith.divf %52, %53 : vector<1x128xf32>
    %55 = vector.broadcast %54 : vector<1x128xf32> to vector<256x128xf32>
    %56 = arith.subf %50, %55 : vector<256x128xf32>
    %57 = arith.mulf %56, %56 : vector<256x128xf32>
    %cst_48 = arith.constant dense<0.000000e+00> : vector<128xf32>
    %58 = vector.multi_reduction <add>, %57, %cst_48 [0] : vector<256x128xf32> to vector<128xf32>
    %59 = vector.shape_cast %58 : vector<128xf32> to vector<1x128xf32>
    %60 = tpu.concatenate %52, %59 in 0 : vector<1x128xf32>, vector<1x128xf32> -> vector<2x128xf32>
    %61 = vector.shape_cast %60 : vector<2x128xf32> to vector<1x2x128xf32>
    %c0_49 = arith.constant 0 : index
    %c0_50 = arith.constant 0 : index
    %c0_51 = arith.constant 0 : index
    %62 = vector.load %arg6[%c0_49, %c0_50, %c0_51] : memref<1x2x128xf32, #tpu.memory_space<vmem>>, vector<1x2x128xf32>
    tpu.vector_store %arg6[%c0_49, %c0_50, %c0_51], %61 {strides = array<i32>} : memref<1x2x128xf32, #tpu.memory_space<vmem>>, vector<1x2x128xf32>,
    %63 = vector.shape_cast %50 : vector<256x128xf32> to vector<1x16x16x128xf32>
    %64 = arith.truncf %63 : vector<1x16x16x128xf32> to vector<1x16x16x128xbf16>
    %c0_52 = arith.constant 0 : index
    %c0_53 = arith.constant 0 : index
    %c0_54 = arith.constant 0 : index
    %c0_55 = arith.constant 0 : index
    %65 = vector.load %arg5[%c0_52, %c0_53, %c0_54, %c0_55] : memref<1x16x16x128xbf16, #tpu.memory_space<vmem>>, vector<1x16x16x128xbf16>
    tpu.vector_store %arg5[%c0_52, %c0_53, %c0_54, %c0_55], %64 {strides = array<i32>} : memref<1x16x16x128xbf16, #tpu.memory_space<vmem>>, vector<1x16x16x128xbf16>,
    return
  }
  func.func @transform_0(%arg0: i32) -> (i32, i32, i32, i32) {
    %c0_i32 = arith.constant 0 : i32
    %c0_i32_0 = arith.constant 0 : i32
    %c0_i32_1 = arith.constant 0 : i32
    %c0_i32_2 = arith.constant 0 : i32
    return %arg0, %c0_i32, %c0_i32_0, %c0_i32_1 : i32, i32, i32, i32
  }
  func.func @transform_1(%arg0: i32) -> (i32, i32) {
    %c0_i32 = arith.constant 0 : i32
    %c0_i32_0 = arith.constant 0 : i32
    %c0_i32_1 = arith.constant 0 : i32
    return %c0_i32, %c0_i32_0 : i32, i32
  }
  func.func @transform_2(%arg0: i32) -> (i32, i32) {
    %c0_i32 = arith.constant 0 : i32
    %c0_i32_0 = arith.constant 0 : i32
    %c0_i32_1 = arith.constant 0 : i32
    return %c0_i32, %c0_i32_0 : i32, i32
  }
  func.func @transform_3(%arg0: i32) -> (i32, i32) {
    %c0_i32 = arith.constant 0 : i32
    %c0_i32_0 = arith.constant 0 : i32
    %c0_i32_1 = arith.constant 0 : i32
    return %c0_i32, %c0_i32_0 : i32, i32
  }
  func.func @transform_4(%arg0: i32) -> (i32, i32, i32, i32) {
    %c0_i32 = arith.constant 0 : i32
    %c0_i32_0 = arith.constant 0 : i32
    %c0_i32_1 = arith.constant 0 : i32
    %c0_i32_2 = arith.constant 0 : i32
    return %arg0, %c0_i32, %c0_i32_0, %c0_i32_1 : i32, i32, i32, i32
  }
  func.func @transform_5(%arg0: i32) -> (i32, i32, i32) {
    %c0_i32 = arith.constant 0 : i32
    %c0_i32_0 = arith.constant 0 : i32
    %c0_i32_1 = arith.constant 0 : i32
    return %arg0, %c0_i32, %c0_i32_0 : i32, i32, i32
  }
}

</mosaic_0001>

<bundles_post_ra>
// kernel: double_conv.2
= control target key start
LH: loop header
LB: loop body
LE: loop exit
PB: predicated region body
PF: predicated region fallthrough
CT: control target
= control target key end

     0   :  { %s1270_s12 = smov 0   ;;  %s1556_s0 = inlined_call_operand.vmem [shape: bf16[2,256,128], index: 0, kind: input, shape index: {}]   ;;  %s1557_s1 = inlined_call_operand.vmem [shape: bf16[128,128], index: 1, kind: input, shape index: {}]   ;;  %s1558_s2 = inlined_call_operand.vmem [shape: bf16[2,16,16,128], index: 2, kind: output, shape index: {0}]   ;;  %s1559_s3 = inlined_call_operand.vmem [shape: f32[2,2,128], index: 3, kind: output, shape index: {1}]  }
   0x1 LB: > { %s925_s13 = sadd.s32 4294967295, %s1248_s12   ;;  %p929_p0 = scmp.ge.s32.totalorder %s1248_s12, 1  ;;  %s1248_s12 = sphi %s1270_s12, %s14_s12  }
   0x2   : > { %p140_p1 = scmp.lt.s32.totalorder %s1248_s12, 3 }
   0x4   : > { %p141_p2 = pnand %p929_p0, %p140_p1 }
   0x5   : > { %p168_p3 = scmp.lt.s32.totalorder (!%p141_p2), %s925_s13, 1 }
   0x6   : > { %144 = sbr.rel (%p141_p2) target bundleno = 399 (0x18f), region = 28 }
   0xb   : > { %v1218_v0 = vld [vmem:[%s1557_s1 + $0x38] sm:$0xff]   ;;  %v1219_v1 = vld [vmem:[%s1557_s1 + $0x30] sm:$0xff]   ;;  %s1561_s13 = smov (!%p168_p3, %s925_s13), 1  ;;  %v1220_v2 = vld [vmem:[%s1557_s1 + $0x28] sm:$0xff]   ;;  %vm676_vm0 = vcmask 1040384  }
   0xc   : > { %1146 = vmatprep.subr.bf16.mxu0 %v1218_v0  ;;  %1194 = vmatprep.subr.bf16.mxu1 %v1218_v0  ;;  %s993_s20 = sshll.u32 %s1561_s13, 7  ;;  %v1221_v3 = vld [vmem:[%s1557_s1 + $0x20] sm:$0xff]   ;;  %v1222_v5 = vld [vmem:[%s1557_s1 + $0x18] sm:$0xff]   ;;  %v1223_v6 = vld [vmem:[%s1557_s1 + $0x10] sm:$0xff]   ;;  %s934_s10 = sshll.u32 %s1561_s13, 1 }
   0xd   : > { %1147 = vmatpush3.bf16.msra.mxu0 %v1218_v0  ;;  %1202 = vmatpush3.bf16.msra.mxu1 %v1218_v0  ;;  %s1295_s23 = scalar_lea.vmem %s1556_s0, %s993_s20  ;;  %v1224_v8 = vld [vmem:[%s1557_s1 + $0x8] sm:$0xff]   ;;  %v1225_v9 = vld [vmem:[%s1557_s1] sm:$0xff]   ;;  %s1341_s9 = scalar_lea.vmem %s1558_s2, %s993_s20 }
   0xe   : > { %1148 = vmatprep.subr.bf16.mxu0 %v1219_v1  ;;  %1195 = vmatprep.subr.bf16.mxu1 %v1219_v1  ;;  %v1226_v4 = vld [vmem:[%s1295_s23] sm:$0xff]   ;;  %v1227_v10 = vld [vmem:[%s1295_s23 + $0x8] sm:$0xff]   ;;  %v1228_v12 = vld [vmem:[%s1295_s23 + $0x10] sm:$0xff]   ;;  %s181_s15 = scalar_lea.vmem %s1559_s3, %s934_s10 }
   0xf   : > { %1162 = vmatprep.mubr.bf16.mxu0 %v1226_v4  ;;  %v1234_v7 = vld [vmem:[%s1295_s23 + $0x40] sm:$0xff]   ;;  %v1235_v11 = vld [vmem:[%s1295_s23 + $0x48] sm:$0xff]   ;;  %v1236_v13 = vld [vmem:[%s1295_s23 + $0x50] sm:$0xff]  }
  0x10   : > { %1178 = vmatprep.mubr.bf16.mxu1 %v1234_v7  ;;  %v1229_v14 = vld [vmem:[%s1295_s23 + $0x18] sm:$0xff]   ;;  %v1230_v16 = vld [vmem:[%s1295_s23 + $0x20] sm:$0xff]   ;;  %v1231_v18 = vld [vmem:[%s1295_s23 + $0x28] sm:$0xff]  }
  0x11   : > { %1149 = vmatpush3.bf16.msra.mxu0 %v1219_v1  ;;  %1203 = vmatpush3.bf16.msra.mxu1 %v1219_v1  ;;  %v1237_v15 = vld [vmem:[%s1295_s23 + $0x58] sm:$0xff]   ;;  %v1238_v17 = vld [vmem:[%s1295_s23 + $0x60] sm:$0xff]   ;;  %v1239_v19 = vld [vmem:[%s1295_s23 + $0x68] sm:$0xff]  }
  0x12   : > { %1150 = vmatprep.subr.bf16.mxu0 %v1220_v2  ;;  %1196 = vmatprep.subr.bf16.mxu1 %v1220_v2  ;;  %v1232_v20 = vld [vmem:[%s1295_s23 + $0x30] sm:$0xff]   ;;  %v1233_v22 = vld [vmem:[%s1295_s23 + $0x38] sm:$0xff]  }
  0x13   : > { %v1240_v21 = vld [vmem:[%s1295_s23 + $0x70] sm:$0xff]   ;;  %v1241_v23 = vld [vmem:[%s1295_s23 + $0x78] sm:$0xff]  }
  0x15   : > { %1151 = vmatpush3.bf16.msra.mxu0 %v1220_v2  ;;  %1204 = vmatpush3.bf16.msra.mxu1 %v1220_v2 }
  0x16   : > { %1152 = vmatprep.subr.bf16.mxu0 %v1221_v3  ;;  %1197 = vmatprep.subr.bf16.mxu1 %v1221_v3 }
  0x19   : > { %1153 = vmatpush3.bf16.msra.mxu0 %v1221_v3  ;;  %1205 = vmatpush3.bf16.msra.mxu1 %v1221_v3 }
  0x1a   : > { %1154 = vmatprep.subr.bf16.mxu0 %v1222_v5  ;;  %1198 = vmatprep.subr.bf16.mxu1 %v1222_v5 }
  0x1d   : > { %1155 = vmatpush3.bf16.msra.mxu0 %v1222_v5  ;;  %1206 = vmatpush3.bf16.msra.mxu1 %v1222_v5 }
  0x1e   : > { %1156 = vmatprep.subr.bf16.mxu0 %v1223_v6  ;;  %1199 = vmatprep.subr.bf16.mxu1 %v1223_v6 }
  0x21   : > { %1157 = vmatpush3.bf16.msra.mxu0 %v1223_v6  ;;  %1207 = vmatpush3.bf16.msra.mxu1 %v1223_v6 }
  0x22   : > { %1158 = vmatprep.subr.bf16.mxu0 %v1224_v8  ;;  %1200 = vmatprep.subr.bf16.mxu1 %v1224_v8 }
  0x25   : > { %1159 = vmatpush3.bf16.msra.mxu0 %v1224_v8  ;;  %1208 = vmatpush3.bf16.msra.mxu1 %v1224_v8 }
  0x26   : > { %1160 = vmatprep.subr.bf16.mxu0 %v1225_v9  ;;  %1201 = vmatprep.subr.bf16.mxu1 %v1225_v9 }
  0x29   : > { %1161 = vmatpush3.bf16.msra.mxu0 %v1225_v9  ;;  %1209 = vmatpush3.bf16.msra.mxu1 %v1225_v9 }
  0x2c   : > { %1163 = vmatmul.mubr.bf16.vlgmr.msra.gmra.mxu0 %v1227_v10  ;;  %1179 = vmatmul.mubr.bf16.vlgmr.msra.gmra.mxu1 %v1235_v11 }
  0x2d   : > { %1166 = vmatprep.mubr.bf16.mxu0 %v1228_v12  ;;  %1182 = vmatprep.mubr.bf16.mxu1 %v1236_v13 }
  0x34   : > { %1167 = vmatmul.mubr.bf16.gmra.mxu0 %v1229_v14  ;;  %1183 = vmatmul.mubr.bf16.gmra.mxu1 %v1237_v15 }
  0x35   : > { %1170 = vmatprep.mubr.bf16.mxu0 %v1230_v16  ;;  %1186 = vmatprep.mubr.bf16.mxu1 %v1238_v17 }
  0x3c   : > { %1171 = vmatmul.mubr.bf16.gmra.mxu0 %v1231_v18  ;;  %1187 = vmatmul.mubr.bf16.gmra.mxu1 %v1239_v19 }
  0x3d   : > { %1174 = vmatprep.mubr.bf16.mxu0 %v1232_v20  ;;  %1190 = vmatprep.mubr.bf16.mxu1 %v1240_v21 }
  0x44   : > { %1175 = vmatmul.mubr.bf16.gmra.mxu0 %v1233_v22  ;;  %1191 = vmatmul.mubr.bf16.gmra.mxu1 %v1241_v23 }
  0xec   : > { %v1328_v24 = vpop.f32.mrf.mxu0  ;;  %v1330_v25 = vpop.f32.mrf.mxu1 }
  0xee   : > { %v1332_v26 = vpop.f32.mrf.mxu0  ;;  %v1334_v27 = vpop.f32.mrf.mxu1 }
  0xf0   : > { %v1343_v28 = vpop.f32.mrf.mxu0  ;;  %v1345_v29 = vpop.f32.mrf.mxu1 }
  0xf1   : > { %v1035_v30 = vpack.c.bf16 %v1343_v28, %v1328_v24  ;;  %v1075_v31 = vpack.c.bf16 %v1345_v29, %v1330_v25 }
  0xf2   : > { %v1351_v32 = vpop.f32.mrf.mxu0  ;;  %v1353_v33 = vpop.f32.mrf.mxu1 }
  0xf3   : > { %1107 = vst [vmem:[%s1341_s9 + $0x8] sm:$0xff] %v1035_v30   ;;  %v536_v34 = vadd.f32 %v1351_v32, %v1332_v26  ;;  %v1030_v35 = vpack.c.bf16 %v1351_v32, %v1332_v26  ;;  %1115 = vst [vmem:[%s1341_s9 + $0x48] sm:$0xff] %v1075_v31   ;;  %v1070_v36 = vpack.c.bf16 %v1353_v33, %v1334_v27 }
  0xf4   : > { %v1363_v37 = vpop.f32.mrf.mxu0  ;;  %v1365_v38 = vpop.f32.mrf.mxu1 }
  0xf5   : > { %v537_v39 = vadd.f32 %v1328_v24, %v536_v34  ;;  %1031 = vst [vmem:[%s1341_s9] sm:$0xff] %v1030_v35   ;;  %1114 = vst [vmem:[%s1341_s9 + $0x40] sm:$0xff] %v1070_v36  }
  0xf6   : > { %v1370_v40 = vpop.f32.mrf.mxu0  ;;  %v1372_v41 = vpop.f32.mrf.mxu1 }
  0xf7   : > { %v538_v42 = vadd.f32 %v1343_v28, %v537_v39 }
  0xf8   : > { %v1375_v43 = vpop.f32.mrf.mxu0  ;;  %v1377_v44 = vpop.f32.mrf.mxu1 }
  0xf9   : > { %v539_v45 = vadd.f32 %v538_v42, %v1370_v40  ;;  %v1045_v46 = vpack.c.bf16 %v1375_v43, %v1363_v37  ;;  %v1085_v47 = vpack.c.bf16 %v1377_v44, %v1365_v38 }
  0xfa   : > { %v1384_v48 = vpop.f32.mrf.mxu0  ;;  %v1386_v49 = vpop.f32.mrf.mxu1 }
  0xfb   : > { %1109 = vst [vmem:[%s1341_s9 + $0x18] sm:$0xff] %v1045_v46   ;;  %v540_v50 = vadd.f32 %v539_v45, %v1384_v48  ;;  %v1040_v51 = vpack.c.bf16 %v1384_v48, %v1370_v40  ;;  %1117 = vst [vmem:[%s1341_s9 + $0x58] sm:$0xff] %v1085_v47   ;;  %v1080_v52 = vpack.c.bf16 %v1386_v49, %v1372_v41 }
  0xfc   : > { %v1395_v53 = vpop.f32.mrf.mxu0  ;;  %v1397_v54 = vpop.f32.mrf.mxu1 }
  0xfd   : > { %v541_v55 = vadd.f32 %v1363_v37, %v540_v50  ;;  %1108 = vst [vmem:[%s1341_s9 + $0x10] sm:$0xff] %v1040_v51   ;;  %1116 = vst [vmem:[%s1341_s9 + $0x50] sm:$0xff] %v1080_v52  }
  0xfe   : > { %v1402_v56 = vpop.f32.mrf.mxu0  ;;  %v1404_v57 = vpop.f32.mrf.mxu1 }
  0xff   : > { %v542_v58 = vadd.f32 %v1375_v43, %v541_v55 }
 0x100   : > { %v1407_v59 = vpop.f32.mrf.mxu0  ;;  %v1409_v60 = vpop.f32.mrf.mxu1 }
 0x101   : > { %v543_v61 = vadd.f32 %v542_v58, %v1402_v56  ;;  %v1055_v62 = vpack.c.bf16 %v1407_v59, %v1395_v53  ;;  %v1095_v63 = vpack.c.bf16 %v1409_v60, %v1397_v54 }
 0x102   : > { %v1416_v0 = vpop.f32.mrf.mxu0  ;;  %v1418_v1 = vpop.f32.mrf.mxu1 }
 0x103   : > { %1111 = vst [vmem:[%s1341_s9 + $0x28] sm:$0xff] %v1055_v62   ;;  %v544_v2 = vadd.f32 %v543_v61, %v1416_v0  ;;  %v1050_v3 = vpack.c.bf16 %v1416_v0, %v1402_v56  ;;  %1119 = vst [vmem:[%s1341_s9 + $0x68] sm:$0xff] %v1095_v63   ;;  %v1090_v4 = vpack.c.bf16 %v1418_v1, %v1404_v57 }
 0x104   : > { %v1427_v5 = vpop.f32.mrf.mxu0  ;;  %v1429_v6 = vpop.f32.mrf.mxu1 }
 0x105   : > { %v545_v7 = vadd.f32 %v1395_v53, %v544_v2  ;;  %1110 = vst [vmem:[%s1341_s9 + $0x20] sm:$0xff] %v1050_v3   ;;  %1118 = vst [vmem:[%s1341_s9 + $0x60] sm:$0xff] %v1090_v4  }
 0x106   : > { %v1434_v8 = vpop.f32.mrf.mxu0  ;;  %v1436_v9 = vpop.f32.mrf.mxu1 }
 0x107   : > { %v546_v10 = vadd.f32 %v1407_v59, %v545_v7 }
 0x108   : > { %v1439_v11 = vpop.f32.mrf.mxu0  ;;  %v1441_v12 = vpop.f32.mrf.mxu1 }
 0x109   : > { %v547_v13 = vadd.f32 %v546_v10, %v1434_v8  ;;  %v1065_v14 = vpack.c.bf16 %v1439_v11, %v1427_v5  ;;  %v1105_v15 = vpack.c.bf16 %v1441_v12, %v1429_v6 }
 0x10a   : > { %v1448_v16 = vpop.f32.mrf.mxu0  ;;  %v1450_v17 = vpop.f32.mrf.mxu1 }
 0x10b   : > { %1113 = vst [vmem:[%s1341_s9 + $0x38] sm:$0xff] %v1065_v14   ;;  %v548_v18 = vadd.f32 %v547_v13, %v1448_v16  ;;  %v1060_v19 = vpack.c.bf16 %v1448_v16, %v1434_v8  ;;  %1121 = vst [vmem:[%s1341_s9 + $0x78] sm:$0xff] %v1105_v15   ;;  %v1100_v20 = vpack.c.bf16 %v1450_v17, %v1436_v9 }
 0x10d   : > { %v549_v21 = vadd.f32 %v1427_v5, %v548_v18  ;;  %1112 = vst [vmem:[%s1341_s9 + $0x30] sm:$0xff] %v1060_v19   ;;  %1120 = vst [vmem:[%s1341_s9 + $0x70] sm:$0xff] %v1100_v20  }
 0x10f   : > { %v550_v22 = vadd.f32 %v1439_v11, %v549_v21 }
 0x111   : > { %v551_v23 = vadd.f32 %v550_v22, %v1334_v27 }
 0x113   : > { %v552_v30 = vadd.f32 %v551_v23, %v1353_v33 }
 0x115   : > { %v553_v31 = vadd.f32 %v1330_v25, %v552_v30 }
 0x117   : > { %v554_v34 = vadd.f32 %v1345_v29, %v553_v31 }
 0x119   : > { %v555_v35 = vadd.f32 %v554_v34, %v1372_v41 }
 0x11b   : > { %v556_v36 = vadd.f32 %v555_v35, %v1386_v49 }
 0x11d   : > { %v557_v39 = vadd.f32 %v1365_v38, %v556_v36 }
 0x11f   : > { %v558_v42 = vadd.f32 %v1377_v44, %v557_v39 }
 0x121   : > { %v559_v45 = vadd.f32 %v558_v42, %v1404_v57 }
 0x123   : > { %v560_v46 = vadd.f32 %v559_v45, %v1418_v1 }
 0x125   : > { %v561_v47 = vadd.f32 %v1397_v54, %v560_v46 }
 0x127   : > { %v562_v50 = vadd.f32 %v1409_v60, %v561_v47 }
 0x129   : > { %v563_v51 = vadd.f32 %v562_v50, %v1436_v9 }
 0x12b   : > { %v564_v52 = vadd.f32 %v563_v51, %v1450_v17 }
 0x12d   : > { %v565_v55 = vadd.f32 %v1429_v6, %v564_v52 }
 0x12f   : > { %v566_v58 = vadd.f32 %v1441_v12, %v565_v55 }
 0x131   : > { %v567_v61 = vrot.slane %v566_v58, 4 }
 0x133   : > { %v568_v62 = vadd.f32 %v567_v61, %v566_v58 }
 0x135   : > { %v569_v63 = vrot.slane %v568_v62, 2 }
 0x137   : > { %v570_v2 = vadd.f32 %v569_v63, %v568_v62 }
 0x139   : > { %v571_v3 = vrot.slane %v570_v2, 1 }
 0x13b   : > { %v1479_v4 = vadd.f32 %v571_v3, %v570_v2 }
 0x13d   : > { %v1482_v7 = vmul.f32 0.00390625, %v1479_v4 }
 0x13f   : > { %v575_v10 = vsub.f32 %v1332_v26, %v1482_v7  ;;  %v576_v13 = vsub.f32 %v1351_v32, %v1482_v7  ;;  %v577_v14 = vsub.f32 %v1328_v24, %v1482_v7  ;;  %v578_v19 = vsub.f32 %v1343_v28, %v1482_v7 }
 0x140   : > { %v579_v20 = vsub.f32 %v1370_v40, %v1482_v7  ;;  %v580_v23 = vsub.f32 %v1384_v48, %v1482_v7  ;;  %v581_v32 = vsub.f32 %v1363_v37, %v1482_v7  ;;  %v582_v34 = vsub.f32 %v1375_v43, %v1482_v7 }
 0x141   : > { %v607_v15 = vmul.f32 %v575_v10, %v575_v10  ;;  %v608_v18 = vmul.f32 %v576_v13, %v576_v13  ;;  %v609_v21 = vmul.f32 %v577_v14, %v577_v14  ;;  %v610_v26 = vmul.f32 %v578_v19, %v578_v19 }
 0x142   : > { %v611_v31 = vmul.f32 %v579_v20, %v579_v20  ;;  %v612_v35 = vmul.f32 %v580_v23, %v580_v23  ;;  %v583_v40 = vsub.f32 %v1402_v56, %v1482_v7  ;;  %v613_v36 = vmul.f32 %v581_v32, %v581_v32 }
 0x143   : > { %v639_v22 = vadd.f32 %v608_v18, %v607_v15  ;;  %v584_v48 = vsub.f32 %v1416_v0, %v1482_v7  ;;  %v614_v42 = vmul.f32 %v582_v34, %v582_v34  ;;  %v585_v37 = vsub.f32 %v1395_v53, %v1482_v7 }
 0x144   : > { %v615_v46 = vmul.f32 %v583_v40, %v583_v40  ;;  %v586_v43 = vsub.f32 %v1407_v59, %v1482_v7  ;;  %v587_v56 = vsub.f32 %v1434_v8, %v1482_v7  ;;  %v588_v0 = vsub.f32 %v1448_v16, %v1482_v7 }
 0x145   : > { %v640_v30 = vadd.f32 %v639_v22, %v609_v21  ;;  %v616_v50 = vmul.f32 %v584_v48, %v584_v48  ;;  %v617_v52 = vmul.f32 %v585_v37, %v585_v37  ;;  %v589_v53 = vsub.f32 %v1427_v5, %v1482_v7 }
 0x146   : > { %v618_v58 = vmul.f32 %v586_v43, %v586_v43  ;;  %v619_v62 = vmul.f32 %v587_v56, %v587_v56  ;;  %v590_v59 = vsub.f32 %v1439_v11, %v1482_v7  ;;  %v620_v2 = vmul.f32 %v588_v0, %v588_v0 }
 0x147   : > { %v641_v24 = vadd.f32 %v640_v30, %v610_v26  ;;  %v591_v8 = vsub.f32 %v1334_v27, %v1482_v7  ;;  %v621_v10 = vmul.f32 %v589_v53, %v589_v53  ;;  %v592_v16 = vsub.f32 %v1353_v33, %v1482_v7 }
 0x148   : > { %v622_v14 = vmul.f32 %v590_v59, %v590_v59  ;;  %v593_v5 = vsub.f32 %v1330_v25, %v1482_v7  ;;  %v594_v11 = vsub.f32 %v1345_v29, %v1482_v7  ;;  %v595_v27 = vsub.f32 %v1372_v41, %v1482_v7 }
 0x149   : > { %v642_v28 = vadd.f32 %v641_v24, %v611_v31  ;;  %v623_v18 = vmul.f32 %v591_v8, %v591_v8  ;;  %v624_v20 = vmul.f32 %v592_v16, %v592_v16  ;;  %v596_v33 = vsub.f32 %v1386_v49, %v1482_v7 }
 0x14a   : > { %v625_v22 = vmul.f32 %v593_v5, %v593_v5  ;;  %v626_v26 = vmul.f32 %v594_v11, %v594_v11  ;;  %v597_v25 = vsub.f32 %v1365_v38, %v1482_v7  ;;  %v627_v32 = vmul.f32 %v595_v27, %v595_v27 }
 0x14b   : > { %v643_v39 = vadd.f32 %v642_v28, %v612_v35  ;;  %v598_v29 = vsub.f32 %v1377_v44, %v1482_v7  ;;  %v628_v24 = vmul.f32 %v596_v33, %v596_v33  ;;  %v599_v41 = vsub.f32 %v1404_v57, %v1482_v7 }
 0x14c   : > { %v629_v35 = vmul.f32 %v597_v25, %v597_v25  ;;  %v600_v49 = vsub.f32 %v1418_v1, %v1482_v7  ;;  %v601_v38 = vsub.f32 %v1397_v54, %v1482_v7  ;;  %v602_v44 = vsub.f32 %v1409_v60, %v1482_v7 }
 0x14d   : > { %v644_v45 = vadd.f32 %v643_v39, %v613_v36  ;;  %v630_v40 = vmul.f32 %v598_v29, %v598_v29  ;;  %v631_v39 = vmul.f32 %v599_v41, %v599_v41  ;;  %v603_v57 = vsub.f32 %v1436_v9, %v1482_v7 }
 0x14e   : > { %v633_v37 = vmul.f32 %v601_v38, %v601_v38  ;;  %v604_v1 = vsub.f32 %v1450_v17, %v1482_v7  ;;  %v605_v54 = vsub.f32 %v1429_v6, %v1482_v7  ;;  %v606_v60 = vsub.f32 %v1441_v12, %v1482_v7 }
 0x14f   : > { %v645_v47 = vadd.f32 %v644_v45, %v614_v42  ;;  %v632_v42 = vmul.f32 %v600_v49, %v600_v49 }
 0x150   : > { %v636_v56 = vmul.f32 %v604_v1, %v604_v1  ;;  %v638_v0 = vmul.f32 %v606_v60, %v606_v60 }
 0x151   : > { %v646_v51 = vadd.f32 %v645_v47, %v615_v46  ;;  %v634_v47 = vmul.f32 %v602_v44, %v602_v44 }
 0x153   : > { %v647_v55 = vadd.f32 %v646_v51, %v616_v50  ;;  %v635_v50 = vmul.f32 %v603_v57, %v603_v57 }
 0x155   : > { %v648_v61 = vadd.f32 %v647_v55, %v617_v52  ;;  %v637_v55 = vmul.f32 %v605_v54, %v605_v54 }
 0x157   : > { %v649_v63 = vadd.f32 %v648_v61, %v618_v58 }
 0x159   : > { %v650_v3 = vadd.f32 %v649_v63, %v619_v62 }
 0x15b   : > { %v651_v13 = vadd.f32 %v650_v3, %v620_v2 }
 0x15d   : > { %v652_v15 = vadd.f32 %v651_v13, %v621_v10 }
 0x15f   : > { %v653_v19 = vadd.f32 %v652_v15, %v622_v14 }
 0x161   : > { %v654_v21 = vadd.f32 %v653_v19, %v623_v18 }
 0x163   : > { %v655_v23 = vadd.f32 %v654_v21, %v624_v20 }
 0x165   : > { %v656_v30 = vadd.f32 %v655_v23, %v625_v22 }
 0x167   : > { %v657_v31 = vadd.f32 %v656_v30, %v626_v26 }
 0x169   : > { %v658_v34 = vadd.f32 %v657_v31, %v627_v32 }
 0x16b   : > { %v659_v28 = vadd.f32 %v658_v34, %v628_v24 }
 0x16d   : > { %v660_v36 = vadd.f32 %v659_v28, %v629_v35 }
 0x16f   : > { %v661_v48 = vadd.f32 %v660_v36, %v630_v40 }
 0x171   : > { %v662_v45 = vadd.f32 %v661_v48, %v631_v39 }
 0x173   : > { %v663_v46 = vadd.f32 %v662_v45, %v632_v42 }
 0x175   : > { %v664_v43 = vadd.f32 %v663_v46, %v633_v37 }
 0x177   : > { %v665_v51 = vadd.f32 %v664_v43, %v634_v47 }
 0x179   : > { %v666_v52 = vadd.f32 %v665_v51, %v635_v50 }
 0x17b   : > { %v667_v9 = vadd.f32 %v666_v52, %v636_v56 }
 0x17d   : > { %v668_v58 = vadd.f32 %v667_v9, %v637_v55 }
 0x17f   : > { %v669_v61 = vadd.f32 %v668_v58, %v638_v0 }
 0x181   : > { %v670_v53 = vrot.slane %v669_v61, 4 }
 0x183   : > { %v671_v17 = vadd.f32 %v670_v53, %v669_v61 }
 0x185   : > { %v672_v62 = vrot.slane %v671_v17, 2 }
 0x187   : > { %v673_v63 = vadd.f32 %v672_v62, %v671_v17 }
 0x189   : > { %v674_v59 = vrot.slane %v673_v63, 1 }
 0x18b   : > { %v675_v6 = vadd.f32 %v674_v59, %v673_v63 }
 0x18d   : > { %v677_v12 = vsel %vm676_vm0, %v1479_v4, %v675_v6 }
 0x18e   : > { %678 = vst [vmem:[%s181_s15] sm:$0x3] %v677_v12 }
 0x18f PF: > { %s14_s12 = sadd.s32 1, %s1248_s12  }
 0x190   : > { %p11_p4 = scmp.ge.s32.totalorder %s14_s12, 4  }
 0x192   :  { %13 = sbr.rel (!%p11_p4) target bundleno = 1 (0x1), region = 70 }

// kernel: double_conv.3
= control target key start
LH: loop header
LB: loop body
LE: loop exit
PB: predicated region body
PF: predicated region fallthrough
CT: control target
= control target key end

     0   :  { %s6177_s18 = smov 0   ;;  %s7978_s0 = inlined_call_operand.vmem [shape: bf16[2,16,16,128], index: 0, kind: input, shape index: {}]   ;;  %s7979_s1 = inlined_call_operand.vmem [shape: f32[1,128], index: 1, kind: input, shape index: {}]   ;;  %s7980_s2 = inlined_call_operand.vmem [shape: f32[1,128], index: 2, kind: input, shape index: {}]   ;;  %s7981_s3 = inlined_call_operand.vmem [shape: bf16[1152,128], index: 3, kind: input, shape index: {}]   ;;  %s7982_s4 = inlined_call_operand.vmem [shape: bf16[2,16,16,128], index: 4, kind: output, shape index: {0}]   ;;  %s7983_s5 = inlined_call_operand.vmem [shape: f32[2,2,128], index: 5, kind: output, shape index: {1}]  }
   0x1 LB: > { %s4750_s19 = sadd.s32 4294967295, %s6144_s18   ;;  %p4754_p0 = scmp.ge.s32.totalorder %s6144_s18, 1  ;;  %s6144_s18 = sphi %s6177_s18, %s16_s18  }
   0x2   : > { %p190_p1 = scmp.lt.s32.totalorder %s6144_s18, 3 }
   0x4   : > { %p191_p2 = pnand %p4754_p0, %p190_p1 }
   0x6   : > { %194 = sbr.rel (%p191_p2) target bundleno = 774 (0x306), region = 36 }
   0xb   : > { %v5847_v0 = vld [vmem:[%s7981_s3 + $0x78] sm:$0xff]   ;;  %v6146_v2 = vmov 0   ;;  %v5849_v3 = vld [vmem:[%s7981_s3 + $0x70] sm:$0xff]   ;;  %v5851_v5 = vld [vmem:[%s7981_s3 + $0x68] sm:$0xff]   ;;  %p222_p3 = scmp.lt.s32.totalorder %s4750_s19, 1  ;;  %vm435_vm0 = vcmask 1040384  }
   0xc   : > { %v5848_v1 = vld [vmem:[%s7981_s3 + $0x38] sm:$0xff]   ;;  %427 = vst [vmem:[#allocation2] sm:$0xf] %v6146_v2  ;;  %428 = vst [vmem:[#allocation2 + $0x4] sm:$0xf] %v6146_v2  ;;  %5302 = vmatprep.subr.bf16.mxu0 %v5847_v0  ;;  %5822 = vmatprep.subr.bf16.mxu1 %v5847_v0  ;;  %v5850_v4 = vld [vmem:[%s7981_s3 + $0x30] sm:$0xff]  }
   0xd   : > { %429 = vst [vmem:[#allocation2 + $0x8] sm:$0x1] %v6146_v2  ;;  %431 = vst [vmem:[#allocation2 + $0xcc] sm:$0xf] %v6146_v2  ;;  %5303 = vmatpush3.bf16.msra.mxu0 %v5848_v1  ;;  %5830 = vmatpush3.bf16.msra.mxu1 %v5848_v1  ;;  %v5852_v6 = vld [vmem:[%s7981_s3 + $0x28] sm:$0xff]   ;;  %v5853_v7 = vld [vmem:[%s7981_s3 + $0x60] sm:$0xff]  }
   0xe   : > { %432 = vst [vmem:[#allocation2 + $0xd0] sm:$0xf] %v6146_v2  ;;  %433 = vst [vmem:[#allocation2 + $0xd4] sm:$0x1] %v6146_v2  ;;  %5304 = vmatprep.subr.bf16.mxu0 %v5849_v3  ;;  %5823 = vmatprep.subr.bf16.mxu1 %v5849_v3  ;;  %s8029_s19 = smov (!%p222_p3, %s4750_s19), 1  ;;  %v5854_v8 = vld [vmem:[%s7981_s3 + $0x20] sm:$0xff]  }
   0xf   : > { %v5855_v9 = vld [vmem:[%s7981_s3 + $0x58] sm:$0xff]   ;;  %s5062_s13 = sshll.u32 %s8029_s19, 7  ;;  %vm1637_vm1 = vcmask 1042432   ;;  %v5857_v11 = vld [vmem:[%s7981_s3 + $0x50] sm:$0xff]   ;;  %vm1638_vm2 = vcmask 1046532   ;;  %v5859_v28 = vld [vmem:[%s7981_s3 + $0x48] sm:$0xff]  }
  0x10   : > { %v5856_v10 = vld [vmem:[%s7981_s3 + $0x18] sm:$0xff]   ;;  %s6230_s22 = scalar_lea.vmem %s7978_s0, %s5062_s13  ;;  %vm1138_vm3 = vsmask.f32 3328  ;;  %vm1139_vm4 = vsmask.f32 7440  ;;  %v5858_v17 = vld [vmem:[%s7981_s3 + $0x10] sm:$0xff]   ;;  %vm6299_vm11 = vmor %vm1637_vm1, %vm1638_vm2  ;;  %s7671_s9 = scalar_lea.vmem %s7982_s4, %s5062_s13 }
  0x11   : > { %5305 = vmatpush3.bf16.msra.mxu0 %v5850_v4  ;;  %5831 = vmatpush3.bf16.msra.mxu1 %v5850_v4  ;;  %v5129_v22 = vld [vmem:[%s6230_s22] sm:$0xff]   ;;  %v5282_v27 = vld [vmem:[%s6230_s22 + $0x58] sm:$0xff]   ;;  %v5860_v34 = vld [vmem:[%s7981_s3 + $0x8] sm:$0xff]   ;;  %vm436_vm6 = vsmask.f32 256  ;;  %vm938_vm12 = vcmask 1043456  }
  0x12   : > { %5306 = vmatprep.subr.bf16.mxu0 %v5851_v5  ;;  %5824 = vmatprep.subr.bf16.mxu1 %v5851_v5  ;;  %v6254_v26 = vld [vmem:[%s7979_s1] ss:$0 sm:$0xff]  ;;  %v5130_v32 = vunpack.c.l.bf16 %v5129_v22  ;;  %vm6270_vm5 = vmor %vm1138_vm3, %vm1139_vm4  ;;  %v5131_v37 = vunpack.c.h.bf16 %v5129_v22  ;;  %v438_v38 = vld [vmem:[#allocation2 + $0xc] sm:$0x1]  ;;  %vm486_vm7 = vsmask.f32 7938  ;;  %v5174_v44 = vunpack.c.l.bf16 %v5282_v27 }
  0x13   : > { %v6232_v12 = vld [vmem:[#allocation2] sm:$0xf]  ;;  %v6234_v13 = vld [vmem:[#allocation2 + $0x4] sm:$0xf]  ;;  %vm6280_vm8 = vmand %vm435_vm0, %vm436_vm6  ;;  %vm616_vm9 = vsmask.f32 4368  ;;  %v5175_v50 = vunpack.c.h.bf16 %v5282_v27 }
  0x14   : > { %v6236_v14 = vld [vmem:[#allocation2 + $0x8] sm:$0x1]  ;;  %1106 = vst [vmem:[#allocation3] sm:$0xf] %v6232_v12  ;;  %1107 = vst [vmem:[#allocation3 + $0x24] sm:$0xf] %v6234_v13  ;;  %v308_v41 = vmul.f32 %v5130_v32, %v6254_v26  ;;  %v309_v47 = vmul.f32 %v5131_v37, %v6254_v26  ;;  %v330_v55 = vmul.f32 %v5174_v44, %v6254_v26 }
  0x15   : > { %5307 = vmatpush3.bf16.msra.mxu0 %v5852_v6  ;;  %5832 = vmatpush3.bf16.msra.mxu1 %v5852_v6  ;;  %v1142_v15 = vshrl.u32 %v6232_v12, 16  ;;  %v1145_v16 = vshll.u32 %v6232_v12, 16  ;;  %v1151_v18 = vshll.u32 %v6234_v13, 16  ;;  %v1155_v19 = vshrl.u32 %v6234_v13, 16  ;;  %v6263_v33 = vld [vmem:[%s7980_s2] ss:$0 sm:$0xff]  ;;  %vm6289_vm10 = vmand %vm435_vm0, %vm486_vm7 }
  0x16   : > { %5308 = vmatprep.subr.bf16.mxu0 %v5853_v7  ;;  %5825 = vmatprep.subr.bf16.mxu1 %v5853_v7  ;;  %v1161_v20 = vshll.u32 %v6236_v14, 16  ;;  %v4794_v21 = vrot.slane %v6232_v12, 9  ;;  %v1642_v25 = vrot.slane %v6234_v13, 5  ;;  %v5861_v39 = vld [vmem:[%s7981_s3 + $0x40] sm:$0xff]   ;;  %v488_v43 = vld [vmem:[#allocation2 + $0x14] sm:$0x1]  ;;  %v347_v53 = vadd.f32 %v6263_v33, %v308_v41  ;;  %vm6334_vm13 = vmor %vm436_vm6, %vm616_vm9 }
  0x17   : > { %v1144_v23 = vrot.slane %v1142_v15, 4  ;;  %v1147_v24 = vrot.slane %v1145_v16, 5  ;;  %v1153_v29 = vrot.slane %v1151_v18, 5  ;;  %v1157_v30 = vrot.slane %v1155_v19, 4  ;;  %v471_v45 = vld [vmem:[#allocation2 + $0x90] sm:$0x1]  ;;  %vm6344_vm14 = vmand %vm938_vm12, %vm486_vm7 }
  0x18   : > { %v1163_v31 = vrot.slane %v1161_v20, 5  ;;  %v439_v48 = vsel %vm6280_vm8, 0, %v438_v38  ;;  %v521_v51 = vld [vmem:[#allocation2 + $0x98] sm:$0x1]  ;;  %v489_v54 = vsel %vm6289_vm10, 0, %v488_v43  ;;  %v5862_v57 = vld [vmem:[%s7981_s3] sm:$0xff]   ;;  %v348_v59 = vadd.f32 %v6263_v33, %v309_v47 }
  0x19   : > { %5309 = vmatpush3.bf16.msra.mxu0 %v5854_v8  ;;  %5833 = vmatpush3.bf16.msra.mxu1 %v5854_v8  ;;  %v1148_v36 = vor.u32 %v1147_v24, %v1144_v23  ;;  %v1158_v40 = vor.u32 %v1157_v30, %v1153_v29  ;;  %440 = vst [vmem:[#allocation2 + $0xc] sm:$0x1] %v439_v48  ;;  %490 = vst [vmem:[#allocation2 + $0x14] sm:$0x1] %v489_v54  ;;  %v472_v61 = vsel %vm6280_vm8, 0, %v471_v45  ;;  %v5871_v4 = vld [vmem:[%s7981_s3 + $0xf8] sm:$0xff]  }
  0x1a   : > { %5310 = vmatprep.subr.bf16.mxu0 %v5855_v9  ;;  %5826 = vmatprep.subr.bf16.mxu1 %v5855_v9  ;;  %v331_v60 = vmul.f32 %v5175_v50, %v6254_v26  ;;  %v379_v63 = vmax.f32 %v347_v53, 0.0  ;;  %v369_v0 = vadd.f32 %v6263_v33, %v330_v55  ;;  %473 = vst [vmem:[#allocation2 + $0x90] sm:$0x1] %v472_v61  ;;  %v522_v1 = vsel %vm6289_vm10, 0, %v521_v51  ;;  %v5872_v8 = vld [vmem:[%s7981_s3 + $0x178] sm:$0xff]   ;;  %v5283_v32 = vld [vmem:[%s6230_s22 + $0x60] sm:$0xff]  }
  0x1b   : > { %v1149_v46 = vrot.slane %v1148_v36, 4  ;;  %v1159_v52 = vrot.slane %v1158_v40, 4  ;;  %v380_v2 = vmax.f32 %v348_v59, 0.0  ;;  %523 = vst [vmem:[#allocation2 + $0x98] sm:$0x1] %v522_v1  ;;  %v1643_v5 = vsel %vm6299_vm11, %v4794_v21, %v1642_v25  ;;  %v5875_v30 = vld [vmem:[%s7981_s3 + $0x138] sm:$0xff]  }
  0x1c   : > { %v370_v3 = vadd.f32 %v6263_v33, %v331_v60  ;;  %v5064_v6 = vpack.c.bf16 %v379_v63, %v379_v63  ;;  %v401_v7 = vmax.f32 %v369_v0, 0.0  ;;  %1784 = vst [vmem:[#allocation3 + $0x8] sm:$0xf] %v1643_v5  ;;  %v441_v22 = vld [vmem:[#allocation2 + $0x18] sm:$0x1]  ;;  %v5178_v50 = vunpack.c.l.bf16 %v5283_v32  ;;  %v6013_v36 = vld [vmem:[%s7981_s3 + $0x228] sm:$0xff]  }
  0x1d   : > { %5311 = vmatpush3.bf16.msra.mxu0 %v5856_v10  ;;  %5834 = vmatpush3.bf16.msra.mxu1 %v5856_v10  ;;  %v1154_v58 = vsel %vm6270_vm5, %v1149_v46, %v1153_v29  ;;  %v1164_v62 = vsel %vm6270_vm5, %v1159_v52, %v1163_v31  ;;  %v5065_v9 = vpack.c.bf16 %v380_v2, %v380_v2  ;;  %v5863_v41 = vld [vmem:[#allocation3] ss:$36 sps:$4 sm:$0xff]   ;;  %v491_v48 = vld [vmem:[#allocation2 + $0x20] sm:$0x1]  ;;  %v442_v60 = vsel %vm6280_vm8, 0, %v441_v22  ;;  %s4759_s13 = sshll.u32 %s8029_s19, 1 }
  0x1e   : > { %5312 = vmatprep.subr.bf16.mxu0 %v5857_v11  ;;  %5827 = vmatprep.subr.bf16.mxu1 %v5857_v11  ;;  %1557 = vst [vmem:[#allocation3 + $0x4] sm:$0xf] %v1154_v58  ;;  %1558 = vst [vmem:[#allocation3 + $0x28] sm:$0xf] %v1164_v62  ;;  %v402_v10 = vmax.f32 %v370_v3, 0.0  ;;  %v1645_v11 = vrot.slane %v6236_v14, 5  ;;  %v5086_v12 = vpack.c.bf16 %v401_v7, %v401_v7  ;;  %s235_s12 = scalar_lea.vmem %s7983_s5, %s4759_s13 }
  0x1f   : > { %v619_v15 = vshrl.u32 %v5064_v6, 16  ;;  %v622_v16 = vshll.u32 %v5064_v6, 16  ;;  %v627_v18 = vshrl.u32 %v5065_v9, 16  ;;  %v630_v19 = vshll.u32 %v5065_v9, 16  ;;  %v474_v61 = vld [vmem:[#allocation2 + $0x9c] sm:$0x1] }
  0x20   : > { %v5087_v20 = vpack.c.bf16 %v402_v10, %v402_v10  ;;  %v940_v27 = vld [vmem:[#allocation2 + $0xc] sm:$0xf]  ;;  %v809_v29 = vshll.u32 %v5086_v12, 16  ;;  %v944_v37 = vld [vmem:[#allocation2 + $0x14] sm:$0x1]  ;;  %v492_v9 = vsel %vm6289_vm10, 0, %v491_v48  ;;  %v5179_v10 = vunpack.c.h.bf16 %v5283_v32 }
  0x21   : > { %5313 = vmatpush3.bf16.msra.mxu0 %v5858_v17  ;;  %5835 = vmatpush3.bf16.msra.mxu1 %v5858_v17  ;;  %v5272_v17 = vld [vmem:[%s6230_s22 + $0x8] sm:$0xff]   ;;  %v621_v24 = vrot.slane %v619_v15, 7  ;;  %v1017_v46 = vld [vmem:[#allocation2 + $0x90] sm:$0xf]  ;;  %v524_v62 = vld [vmem:[#allocation2 + $0xa4] sm:$0x1]  ;;  %v332_v15 = vmul.f32 %v5178_v50, %v6254_v26 }
  0x22   : > { %5314 = vmatprep.subr.bf16.mxu0 %v5859_v28  ;;  %5828 = vmatprep.subr.bf16.mxu1 %v5859_v28  ;;  %v5134_v21 = vunpack.c.l.bf16 %v5272_v17  ;;  %v806_v28 = vshrl.u32 %v5086_v12, 16  ;;  %v5135_v31 = vunpack.c.h.bf16 %v5272_v17  ;;  %v814_v38 = vshrl.u32 %v5087_v20, 16  ;;  %v1021_v55 = vld [vmem:[#allocation2 + $0x98] sm:$0x1]  ;;  %443 = vst [vmem:[#allocation2 + $0x18] sm:$0x1] %v442_v60 }
  0x23   : > { %v624_v44 = vor.u32 %v622_v16, %v621_v24  ;;  %v625_v45 = vrot.slane %v621_v24, 4  ;;  %v5887_v7 = vld [vmem:[%s7981_s3 + $0x170] sm:$0xff]   ;;  %493 = vst [vmem:[#allocation2 + $0x20] sm:$0x1] %v492_v9  ;;  %v525_v22 = vsel %vm6289_vm10, 0, %v524_v62  ;;  %v6137_v23 = vld [vmem:[%s7981_s3 + $0x238] sm:$0xff]  }
  0x24   : > { %v310_v40 = vmul.f32 %v5134_v21, %v6254_v26  ;;  %v311_v47 = vmul.f32 %v5135_v31, %v6254_v26  ;;  %v808_v53 = vrot.slane %v806_v28, 7  ;;  %v816_v54 = vrot.slane %v814_v38, 7  ;;  %526 = vst [vmem:[#allocation2 + $0xa4] sm:$0x1] %v525_v22  ;;  %v5889_v32 = vld [vmem:[%s7981_s3 + $0x130] sm:$0xff]   ;;  %v6081_v49 = vld [vmem:[%s7981_s3 + $0x200] sm:$0xff]  }
  0x25   : > { %5315 = vmatpush3.bf16.msra.mxu0 %v5860_v34  ;;  %5836 = vmatpush3.bf16.msra.mxu1 %v5860_v34  ;;  %v629_v34 = vrot.slane %v627_v18, 7  ;;  %v5865_v43 = vld [vmem:[#allocation3 + $0x4] ss:$36 sps:$4 sm:$0xff]   ;;  %v475_v21 = vsel %vm6280_vm8, 0, %v474_v61 }
  0x26   : > { %5316 = vmatprep.subr.bf16.mxu0 %v5861_v39  ;;  %5829 = vmatprep.subr.bf16.mxu1 %v5861_v39  ;;  %v817_v39 = vshll.u32 %v5087_v20, 16  ;;  %v349_v58 = vadd.f32 %v6263_v33, %v310_v40  ;;  %v350_v59 = vadd.f32 %v6263_v33, %v311_v47  ;;  %v811_v1 = vor.u32 %v809_v29, %v808_v53 }
  0x27   : > { %v632_v51 = vor.u32 %v630_v19, %v629_v34  ;;  %v634_v52 = vrot.slane %v629_v34, 4  ;;  %3588 = vmatprep.mubr.bf16.mxu0 %v5865_v43  ;;  %v812_v2 = vrot.slane %v808_v53, 4  ;;  %v333_v19 = vmul.f32 %v5179_v10, %v6254_v26  ;;  %476 = vst [vmem:[#allocation2 + $0x9c] sm:$0x1] %v475_v21  ;;  %v6385_v34 = vld [vmem:[%s6230_s22 + $0x10] sm:$0xff]  }
  0x28   : > { %v819_v3 = vor.u32 %v817_v39, %v816_v54  ;;  %v381_v5 = vmax.f32 %v349_v58, 0.0  ;;  %v382_v6 = vmax.f32 %v350_v59, 0.0  ;;  %v371_v20 = vadd.f32 %v6263_v33, %v332_v15 }
  0x29   : > { %5317 = vmatpush3.bf16.msra.mxu0 %v5862_v57  ;;  %5837 = vmatpush3.bf16.msra.mxu1 %v5862_v57  ;;  %v941_v57 = vsel %vm6344_vm14, %v624_v44, %v940_v27  ;;  %v633_v63 = vsel %vm6334_vm13, %v625_v45, %v632_v51  ;;  %v945_v0 = vsel %vm6280_vm8, %v634_v52, %v944_v37  ;;  %v1644_v37 = vrot.slane %v1642_v25, 4 }
  0x2a   : > { %5414 = vmatprep.subr.bf16.mxu1 %v5871_v4  ;;  %5526 = vmatprep.subr.bf16.mxu0 %v5872_v8  ;;  %942 = vst [vmem:[#allocation2 + $0xc] sm:$0xf] %v941_v57  ;;  %943 = vst [vmem:[#allocation2 + $0x10] sm:$0xf] %v633_v63  ;;  %v821_v4 = vrot.slane %v816_v54, 4  ;;  %v1018_v8 = vsel %vm6344_vm14, %v811_v1, %v1017_v46  ;;  %v820_v16 = vsel %vm6334_vm13, %v812_v2, %v819_v3 }
  0x2b   : > { %946 = vst [vmem:[#allocation2 + $0x14] sm:$0x1] %v945_v0  ;;  %1019 = vst [vmem:[#allocation2 + $0x90] sm:$0xf] %v1018_v8  ;;  %v5066_v17 = vpack.c.bf16 %v381_v5, %v381_v5  ;;  %v5067_v18 = vpack.c.bf16 %v382_v6, %v382_v6  ;;  %v403_v31 = vmax.f32 %v371_v20, 0.0  ;;  %v5139_v43 = vunpack.c.h.bf16 %v6385_v34 }
  0x2c   : > { %3589 = vmatmul.mubr.bf16.vlgmr.msra.gmra.mxu0 %v5863_v41  ;;  %v1022_v12 = vsel %vm6280_vm8, %v821_v4, %v1021_v55  ;;  %1020 = vst [vmem:[#allocation2 + $0x94] sm:$0xf] %v820_v16  ;;  %v5138_v41 = vunpack.c.l.bf16 %v6385_v34  ;;  %v1646_v25 = vsel %vm6299_vm11, %v1644_v37, %v1645_v11  ;;  %v951_v16 = vld [vmem:[#allocation2 + $0x20] sm:$0x1] }
  0x2d   : > { %5527 = vmatpush3.bf16.msra.mxu0 %v5875_v30  ;;  %1023 = vst [vmem:[#allocation2 + $0x98] sm:$0x1] %v1022_v12  ;;  %v636_v24 = vshrl.u32 %v5066_v17, 16  ;;  %v639_v27 = vshll.u32 %v5066_v17, 16  ;;  %v644_v28 = vshrl.u32 %v5067_v18, 16  ;;  %v647_v29 = vshll.u32 %v5067_v18, 16 }
  0x2e   : > { %5528 = vmatprep.subr.bf16.mxu0 %v5887_v7  ;;  %v6379_v30 = vadd.f32 %v6263_v33, %v333_v19  ;;  %v6401_v13 = vpack.c.bf16 %v403_v31, %v403_v31  ;;  %1785 = vst [vmem:[#allocation3 + $0x2c] sm:$0xf] %v1646_v25  ;;  %v947_v7 = vld [vmem:[#allocation2 + $0x18] sm:$0xf]  ;;  %v5284_v25 = vld [vmem:[%s6230_s22 + $0x68] sm:$0xff]  }
  0x2f   : > { %v638_v39 = vrot.slane %v636_v24, 7  ;;  %v6391_v40 = vrot.slane %v644_v28, 7  ;;  %v494_v28 = vld [vmem:[#allocation2 + $0x2c] sm:$0x1] }
  0x30   : > { %v823_v37 = vshrl.u32 %v6401_v13, 16 }
  0x31   : > { %v6389_v38 = vld [vmem:[#allocation2 + $0xc] sm:$0xf]  ;;  %v6395_v44 = vld [vmem:[#allocation2 + $0x10] sm:$0xf]  ;;  %5529 = vmatpush3.bf16.msra.mxu0 %v5889_v32  ;;  %v641_v52 = vor.u32 %v639_v27, %v638_v39  ;;  %v642_v57 = vrot.slane %v638_v39, 4  ;;  %v649_v14 = vor.u32 %v647_v29, %v6391_v40  ;;  %v651_v19 = vrot.slane %v6391_v40, 4 }
  0x32   : > { %v1057_v45 = vld [vmem:[#allocation2 + $0x14] sm:$0x1]  ;;  %1108 = vst [vmem:[#allocation3 + $0x48] sm:$0xf] %v6389_v38  ;;  %v1166_v46 = vshrl.u32 %v6389_v38, 16  ;;  %v1169_v47 = vshll.u32 %v6389_v38, 16 }
  0x33   : > { %1816 = vst [vmem:[#allocation3 + $0xc] sm:$0xf] %v6389_v38  ;;  %1109 = vst [vmem:[#allocation3 + $0x6c] sm:$0xf] %v6395_v44  ;;  %v1175_v48 = vshll.u32 %v6395_v44, 16  ;;  %v1179_v50 = vshrl.u32 %v6395_v44, 16  ;;  %v650_v18 = vsel %vm6334_vm13, %v642_v57, %v649_v14  ;;  %v948_v24 = vsel %vm6344_vm14, %v641_v52, %v947_v7 }
  0x34   : > { %v1185_v51 = vshll.u32 %v1057_v45, 16  ;;  %1817 = vst [vmem:[#allocation3 + $0x30] sm:$0xf] %v6395_v44  ;;  %v1168_v53 = vrot.slane %v1166_v46, 4  ;;  %v1171_v54 = vrot.slane %v1169_v47, 5  ;;  %v952_v31 = vsel %vm6280_vm8, %v651_v19, %v951_v16 }
  0x35   : > { %v6411_v55 = vld [vmem:[#allocation2 + $0x90] sm:$0xf]  ;;  %v1177_v58 = vrot.slane %v1175_v48, 5  ;;  %v1181_v11 = vrot.slane %v1179_v50, 4  ;;  %v6414_v60 = vld [vmem:[#allocation2 + $0x94] sm:$0xf]  ;;  %v312_v47 = vmul.f32 %v5138_v41, %v6254_v26 }
  0x36   : > { %v1187_v59 = vrot.slane %v1185_v51, 5  ;;  %1130 = vst [vmem:[#allocation3 + $0x360] sm:$0xf] %v6411_v55  ;;  %v1430_v61 = vshrl.u32 %v6411_v55, 16  ;;  %1838 = vst [vmem:[#allocation3 + $0x324] sm:$0xf] %v6411_v55  ;;  %v1172_v62 = vor.u32 %v1171_v54, %v1168_v53 }
  0x37   : > { %1970 = vst [vmem:[#allocation3 + $0x2e8] sm:$0xf] %v6411_v55  ;;  %v6420_v63 = vld [vmem:[#allocation2 + $0x98] sm:$0x1]  ;;  %1131 = vst [vmem:[#allocation3 + $0x384] sm:$0xf] %v6414_v60  ;;  %v1182_v3 = vor.u32 %v1181_v11, %v1177_v58  ;;  %v351_v41 = vadd.f32 %v6263_v33, %v312_v47 }
  0x38   : > { %v1433_v0 = vshll.u32 %v6411_v55, 16  ;;  %v1439_v1 = vshll.u32 %v6414_v60, 16  ;;  %v1443_v2 = vshrl.u32 %v6414_v60, 16  ;;  %1839 = vst [vmem:[#allocation3 + $0x348] sm:$0xf] %v6414_v60  ;;  %v1432_v4 = vrot.slane %v1430_v61, 4 }
  0x39   : > { %1971 = vst [vmem:[#allocation3 + $0x30c] sm:$0xf] %v6414_v60  ;;  %v1449_v5 = vshll.u32 %v6420_v63, 16  ;;  %v1173_v8 = vrot.slane %v1172_v62, 4  ;;  %v1183_v12 = vrot.slane %v1182_v3, 4  ;;  %v404_v32 = vmax.f32 %v6379_v30, 0.0 }
  0x3a   : > { %v1435_v9 = vrot.slane %v1433_v0, 5  ;;  %v1441_v10 = vrot.slane %v1439_v1, 5  ;;  %v1445_v15 = vrot.slane %v1443_v2, 4  ;;  %950 = vst [vmem:[#allocation2 + $0x1c] sm:$0xf] %v650_v18  ;;  %v826_v45 = vshll.u32 %v6401_v13, 16 }
  0x3b   : > { %v1451_v17 = vrot.slane %v1449_v5, 5  ;;  %v1178_v20 = vsel %vm6270_vm5, %v1173_v8, %v1177_v58  ;;  %v444_v27 = vld [vmem:[#allocation2 + $0x24] sm:$0x1]  ;;  %v1188_v29 = vsel %vm6270_vm5, %v1183_v12, %v1187_v59  ;;  %949 = vst [vmem:[#allocation2 + $0x18] sm:$0xf] %v948_v24  ;;  %v5089_v51 = vpack.c.bf16 %v404_v32, %v404_v32  ;;  %v5905_v0 = vld [vmem:[%s7981_s3 + $0x168] sm:$0xff]  }
  0x3c   : > { %v1436_v21 = vor.u32 %v1435_v9, %v1432_v4  ;;  %v1446_v22 = vor.u32 %v1445_v15, %v1441_v10  ;;  %1559 = vst [vmem:[#allocation3 + $0x4c] sm:$0xf] %v1178_v20  ;;  %1874 = vst [vmem:[#allocation3 + $0x10] sm:$0xf] %v1178_v20  ;;  %v1024_v46 = vld [vmem:[#allocation2 + $0x9c] sm:$0xf]  ;;  %v313_v30 = vmul.f32 %v5139_v43, %v6254_v26  ;;  %v5182_v61 = vunpack.c.l.bf16 %v5284_v25 }
  0x3d   : > { %1560 = vst [vmem:[#allocation3 + $0x70] sm:$0xf] %v1188_v29  ;;  %1875 = vst [vmem:[#allocation3 + $0x34] sm:$0xf] %v1188_v29  ;;  %v477_v48 = vld [vmem:[#allocation2 + $0xa8] sm:$0x1]  ;;  %v5183_v62 = vunpack.c.h.bf16 %v5284_v25  ;;  %5530 = vmatprep.subr.bf16.mxu0 %v5905_v0 }
  0x3e   : > { %v1437_v39 = vrot.slane %v1436_v21, 4  ;;  %v1447_v40 = vrot.slane %v1446_v22, 4  ;;  %953 = vst [vmem:[#allocation2 + $0x20] sm:$0x1] %v952_v31  ;;  %v527_v50 = vld [vmem:[#allocation2 + $0xb0] sm:$0x1]  ;;  %v352_v11 = vadd.f32 %v6263_v33, %v313_v30  ;;  %v334_v20 = vmul.f32 %v5182_v61, %v6254_v26 }
  0x3f   : > { %v825_v52 = vrot.slane %v823_v37, 7  ;;  %v445_v53 = vsel %vm6280_vm8, 0, %v444_v27  ;;  %v495_v57 = vsel %vm6289_vm10, 0, %v494_v28  ;;  %v831_v14 = vshrl.u32 %v5089_v51, 16  ;;  %v1028_v4 = vld [vmem:[#allocation2 + $0xa4] sm:$0x1] }
  0x40   : > { %v1442_v13 = vsel %vm6270_vm5, %v1437_v39, %v1441_v10  ;;  %v1452_v54 = vsel %vm6270_vm5, %v1447_v40, %v1451_v17  ;;  %446 = vst [vmem:[#allocation2 + $0x24] sm:$0x1] %v445_v53  ;;  %v834_v58 = vshll.u32 %v5089_v51, 16  ;;  %496 = vst [vmem:[#allocation2 + $0x2c] sm:$0x1] %v495_v57  ;;  %v383_v59 = vmax.f32 %v351_v41, 0.0 }
  0x41   : > { %1581 = vst [vmem:[#allocation3 + $0x364] sm:$0xf] %v1442_v13  ;;  %1582 = vst [vmem:[#allocation3 + $0x388] sm:$0xf] %v1452_v54  ;;  %v828_v34 = vor.u32 %v826_v45, %v825_v52  ;;  %v829_v43 = vrot.slane %v825_v52, 4  ;;  %v833_v2 = vrot.slane %v831_v14, 7  ;;  %v335_v21 = vmul.f32 %v5183_v62, %v6254_v26 }
  0x42   : > { %1896 = vst [vmem:[#allocation3 + $0x328] sm:$0xf] %v1442_v13  ;;  %1897 = vst [vmem:[#allocation3 + $0x34c] sm:$0xf] %v1452_v54  ;;  %v6464_v1 = vld [vmem:[#allocation2 + $0x1c] sm:$0xf]  ;;  %v6479_v16 = vpack.c.bf16 %v383_v59, %v383_v59 }
  0x43   : > { %2028 = vst [vmem:[#allocation3 + $0x2ec] sm:$0xf] %v1442_v13  ;;  %2029 = vst [vmem:[#allocation3 + $0x310] sm:$0xf] %v1452_v54  ;;  %v1025_v3 = vsel %vm6344_vm14, %v828_v34, %v1024_v46  ;;  %v478_v5 = vsel %vm6280_vm8, 0, %v477_v48  ;;  %v528_v7 = vsel %vm6289_vm10, 0, %v527_v50  ;;  %v836_v19 = vor.u32 %v834_v58, %v833_v2 }
  0x44   : > { %v6472_v8 = vld [vmem:[#allocation2 + $0x18] sm:$0xf]  ;;  %1111 = vst [vmem:[#allocation3 + $0xb4] sm:$0xf] %v6464_v1  ;;  %v1199_v9 = vshll.u32 %v6464_v1, 16  ;;  %v1203_v10 = vshrl.u32 %v6464_v1, 16  ;;  %v374_v59 = vadd.f32 %v6263_v33, %v335_v21 }
  0x45   : > { %1819 = vst [vmem:[#allocation3 + $0x78] sm:$0xf] %v6464_v1  ;;  %1951 = vst [vmem:[#allocation3 + $0x3c] sm:$0xf] %v6464_v1  ;;  %v384_v15 = vmax.f32 %v352_v11, 0.0  ;;  %v1190_v18 = vshrl.u32 %v6472_v8, 16  ;;  %v837_v39 = vsel %vm6334_vm13, %v829_v43, %v836_v19  ;;  %v373_v43 = vadd.f32 %v6263_v33, %v334_v20 }
  0x46   : > { %1026 = vst [vmem:[#allocation2 + $0x9c] sm:$0xf] %v1025_v3  ;;  %479 = vst [vmem:[#allocation2 + $0xa8] sm:$0x1] %v478_v5  ;;  %v5866_v12 = vld [vmem:[#allocation3 + $0x4c] ss:$36 sps:$4 sm:$0xff]  }
  0x47   : > { %529 = vst [vmem:[#allocation2 + $0xb0] sm:$0x1] %v528_v7  ;;  %v5873_v17 = vld [vmem:[#allocation3 + $0x48] ss:$36 sps:$4 sm:$0xff]   ;;  %1110 = vst [vmem:[#allocation3 + $0x90] sm:$0xf] %v6472_v8  ;;  %3596 = vmatprep.mubr.bf16.mxu0 %v5866_v12  ;;  %v5069_v40 = vpack.c.bf16 %v384_v15, %v384_v15 }
  0x48   : > { %1818 = vst [vmem:[#allocation3 + $0x54] sm:$0xf] %v6472_v8  ;;  %1950 = vst [vmem:[#allocation3 + $0x18] sm:$0xf] %v6472_v8  ;;  %v1060_v22 = vld [vmem:[#allocation2 + $0x20] sm:$0x1]  ;;  %3597 = vmatmul.mubr.bf16.gmra.mxu0 %v5873_v17 }
  0x49   : > { %v1193_v24 = vshll.u32 %v6472_v8, 16  ;;  %v1201_v27 = vrot.slane %v1199_v9, 5  ;;  %v1205_v28 = vrot.slane %v1203_v10, 4  ;;  %v838_v29 = vrot.slane %v833_v2, 4  ;;  %v5874_v31 = vld [vmem:[%s7981_s3 + $0xb8] sm:$0xff]   ;;  %v5876_v54 = vld [vmem:[%s7981_s3 + $0xf0] sm:$0xff]  }
  0x4a   : > { %v1192_v32 = vrot.slane %v1190_v18, 4  ;;  %v1209_v37 = vshll.u32 %v1060_v22, 16  ;;  %v6494_v45 = vld [vmem:[%s6230_s22 + $0x18] sm:$0xff]   ;;  %1027 = vst [vmem:[#allocation2 + $0xa0] sm:$0xf] %v837_v39  ;;  %v653_v50 = vshrl.u32 %v6479_v16, 16 }
  0x4b   : > { %v5868_v46 = vld [vmem:[#allocation3 + $0x360] ss:$36 sps:$4 sm:$0xff]   ;;  %v1195_v47 = vrot.slane %v1193_v24, 5  ;;  %v1206_v25 = vor.u32 %v1205_v28, %v1201_v27  ;;  %v1029_v48 = vsel %vm6280_vm8, %v838_v29, %v1028_v4  ;;  %v656_v30 = vshll.u32 %v6479_v16, 16  ;;  %v954_v11 = vld [vmem:[#allocation2 + $0x24] sm:$0xf] }
  0x4c   : > { %v5870_v51 = vld [vmem:[#allocation3 + $0x364] ss:$36 sps:$4 sm:$0xff]   ;;  %v1211_v52 = vrot.slane %v1209_v37, 5  ;;  %1030 = vst [vmem:[#allocation2 + $0xa4] sm:$0x1] %v1029_v48  ;;  %v661_v53 = vshrl.u32 %v5069_v40, 16  ;;  %v5142_v61 = vunpack.c.l.bf16 %v6494_v45  ;;  %v5143_v62 = vunpack.c.h.bf16 %v6494_v45 }
  0x4d   : > { %v664_v13 = vshll.u32 %v5069_v40, 16  ;;  %v1196_v41 = vor.u32 %v1195_v47, %v1192_v32  ;;  %v1207_v57 = vrot.slane %v1206_v25, 4  ;;  %v655_v34 = vrot.slane %v653_v50, 7  ;;  %3684 = vmatprep.mubr.bf16.mxu1 %v5870_v51  ;;  %v6504_v14 = vld [vmem:[#allocation2 + $0x9c] sm:$0xf]  ;;  %v5909_v0 = vld [vmem:[%s7981_s3 + $0x128] sm:$0xff]  }
  0x4e   : > { %v663_v58 = vrot.slane %v661_v53, 7  ;;  %3685 = vmatmul.mubr.bf16.vlgmr.msra.gmra.mxu1 %v5868_v46  ;;  %v5877_v2 = vld [vmem:[%s7981_s3 + $0xb0] sm:$0xff]   ;;  %1132 = vst [vmem:[#allocation3 + $0x3a8] sm:$0xf] %v6504_v14  ;;  %v1454_v5 = vshrl.u32 %v6504_v14, 16  ;;  %v1457_v7 = vshll.u32 %v6504_v14, 16  ;;  %5531 = vmatpush3.bf16.msra.mxu0 %v5909_v0  ;;  %v314_v51 = vmul.f32 %v5142_v61, %v6254_v26 }
  0x4f   : > { %v1197_v3 = vrot.slane %v1196_v41, 4  ;;  %v1212_v4 = vsel %vm6270_vm5, %v1207_v57, %v1211_v52  ;;  %1840 = vst [vmem:[#allocation3 + $0x36c] sm:$0xf] %v6504_v14  ;;  %1972 = vst [vmem:[#allocation3 + $0x330] sm:$0xf] %v6504_v14  ;;  %5415 = vmatpush3.bf16.msra.mxu1 %v5874_v31  ;;  %v658_v10 = vor.u32 %v656_v30, %v655_v34  ;;  %v659_v15 = vrot.slane %v655_v34, 4 }
  0x50   : > { %v958_v9 = vld [vmem:[#allocation2 + $0x2c] sm:$0x1]  ;;  %1562 = vst [vmem:[#allocation3 + $0xb8] sm:$0xf] %v1212_v4  ;;  %1877 = vst [vmem:[#allocation3 + $0x7c] sm:$0xf] %v1212_v4  ;;  %v666_v16 = vor.u32 %v664_v13, %v663_v58  ;;  %5416 = vmatprep.subr.bf16.mxu1 %v5876_v54  ;;  %v315_v52 = vmul.f32 %v5143_v62, %v6254_v26 }
  0x51   : > { %2009 = vst [vmem:[#allocation3 + $0x40] sm:$0xf] %v1212_v4  ;;  %v668_v12 = vrot.slane %v663_v58, 4  ;;  %v1202_v17 = vsel %vm6270_vm5, %v1197_v3, %v1201_v27  ;;  %v1456_v18 = vrot.slane %v1454_v5, 4  ;;  %v1459_v19 = vrot.slane %v1457_v7, 5  ;;  %v5882_v20 = vld [vmem:[%s7981_s3 + $0xe8] sm:$0xff]  }
  0x52   : > { %v405_v21 = vmax.f32 %v373_v43, 0.0  ;;  %1561 = vst [vmem:[#allocation3 + $0x94] sm:$0xf] %v1202_v17  ;;  %1876 = vst [vmem:[#allocation3 + $0x58] sm:$0xf] %v1202_v17  ;;  %v5885_v24 = vld [vmem:[%s7981_s3 + $0xa8] sm:$0xff]   ;;  %v667_v28 = vsel %vm6334_vm13, %v659_v15, %v666_v16  ;;  %v955_v27 = vsel %vm6344_vm14, %v658_v10, %v954_v11  ;;  %v6563_v4 = vadd.f32 %v6263_v33, %v314_v51 }
  0x53   : > { %2008 = vst [vmem:[#allocation3 + $0x1c] sm:$0xf] %v1202_v17  ;;  %v6527_v22 = vld [vmem:[#allocation2 + $0xa0] sm:$0xf]  ;;  %v959_v29 = vsel %vm6280_vm8, %v668_v12, %v958_v9  ;;  %v406_v31 = vmax.f32 %v374_v59, 0.0  ;;  %v1460_v37 = vor.u32 %v1459_v19, %v1456_v18  ;;  %5417 = vmatpush3.bf16.msra.mxu1 %v5877_v2  ;;  %v6549_v30 = vld [vmem:[%s6230_s22 + $0x70] sm:$0xff]   ;;  %v6570_v12 = vadd.f32 %v6263_v33, %v315_v52 }
  0x54   : > { %v1093_v32 = vld [vmem:[#allocation2 + $0xa4] sm:$0x1]  ;;  %1133 = vst [vmem:[#allocation3 + $0x3cc] sm:$0xf] %v6527_v22  ;;  %v1463_v39 = vshll.u32 %v6527_v22, 16  ;;  %v1467_v40 = vshrl.u32 %v6527_v22, 16  ;;  %v5090_v46 = vpack.c.bf16 %v405_v21, %v405_v21  ;;  %5418 = vmatprep.subr.bf16.mxu1 %v5882_v20  ;;  %v5186_v17 = vunpack.c.l.bf16 %v6549_v30 }
  0x55   : > { %1841 = vst [vmem:[#allocation3 + $0x390] sm:$0xf] %v6527_v22  ;;  %1973 = vst [vmem:[#allocation3 + $0x354] sm:$0xf] %v6527_v22  ;;  %v5886_v45 = vld [vmem:[%s7981_s3 + $0xe0] sm:$0xff]   ;;  %v1473_v48 = vshll.u32 %v1093_v32, 16  ;;  %v5091_v50 = vpack.c.bf16 %v406_v31, %v406_v31 }
  0x56   : > { %956 = vst [vmem:[#allocation2 + $0x24] sm:$0xf] %v955_v27  ;;  %957 = vst [vmem:[#allocation2 + $0x28] sm:$0xf] %v667_v28  ;;  %v447_v47 = vld [vmem:[#allocation2 + $0x30] sm:$0x1] }
  0x57   : > { %960 = vst [vmem:[#allocation2 + $0x2c] sm:$0x1] %v959_v29  ;;  %v497_v25 = vld [vmem:[#allocation2 + $0x38] sm:$0x1]  ;;  %v1461_v53 = vrot.slane %v1460_v37, 4  ;;  %v1465_v13 = vrot.slane %v1463_v39, 5  ;;  %5419 = vmatpush3.bf16.msra.mxu1 %v5885_v24  ;;  %v5187_v24 = vunpack.c.h.bf16 %v6549_v30 }
  0x58   : > { %v1469_v54 = vrot.slane %v1467_v40, 4  ;;  %v840_v41 = vshrl.u32 %v5090_v46, 16  ;;  %v6552_v57 = vld [vmem:[%s6230_s22 + $0x20] sm:$0xff]   ;;  %v1475_v34 = vrot.slane %v1473_v48, 5  ;;  %v843_v58 = vshll.u32 %v5090_v46, 16  ;;  %v5894_v0 = vld [vmem:[%s7981_s3 + $0xd8] sm:$0xff]   ;;  %5420 = vmatprep.subr.bf16.mxu1 %v5886_v45 }
  0x59   : > { %v5888_v43 = vld [vmem:[%s7981_s3 + $0xa0] sm:$0xff]   ;;  %v848_v11 = vshrl.u32 %v5091_v50, 16  ;;  %v851_v59 = vshll.u32 %v5091_v50, 16  ;;  %v1466_v26 = vsel %vm6270_vm5, %v1461_v53, %v1465_v13  ;;  %v1031_v3 = vld [vmem:[#allocation2 + $0xa8] sm:$0xf]  ;;  %v448_v5 = vsel %vm6280_vm8, 0, %v447_v47 }
  0x5a   : > { %v1470_v61 = vor.u32 %v1469_v54, %v1465_v13  ;;  %v842_v62 = vrot.slane %v840_v41, 7  ;;  %1583 = vst [vmem:[#allocation3 + $0x3ac] sm:$0xf] %v1466_v26  ;;  %1898 = vst [vmem:[#allocation3 + $0x370] sm:$0xf] %v1466_v26  ;;  %v498_v7 = vsel %vm6289_vm10, 0, %v497_v25  ;;  %v5146_v28 = vunpack.c.l.bf16 %v6552_v57 }
  0x5b   : > { %2030 = vst [vmem:[#allocation3 + $0x334] sm:$0xf] %v1466_v26  ;;  %v850_v2 = vrot.slane %v848_v11, 7  ;;  %v5878_v9 = vld [vmem:[#allocation3 + $0x94] ss:$36 sps:$4 sm:$0xff]   ;;  %v5147_v27 = vunpack.c.h.bf16 %v6552_v57  ;;  %v5897_v39 = vld [vmem:[%s7981_s3 + $0x98] sm:$0xff]   ;;  %5421 = vmatpush3.bf16.msra.mxu1 %v5888_v43 }
  0x5c   : > { %v1471_v10 = vrot.slane %v1470_v61, 4  ;;  %v5883_v15 = vld [vmem:[#allocation3 + $0x90] ss:$36 sps:$4 sm:$0xff]   ;;  %v845_v16 = vor.u32 %v843_v58, %v842_v62  ;;  %449 = vst [vmem:[#allocation2 + $0x30] sm:$0x1] %v448_v5  ;;  %3604 = vmatprep.mubr.bf16.mxu0 %v5878_v9  ;;  %v846_v46 = vrot.slane %v842_v62, 4  ;;  %5422 = vmatprep.subr.bf16.mxu1 %v5894_v0 }
  0x5d   : > { %499 = vst [vmem:[#allocation2 + $0x38] sm:$0x1] %v498_v7  ;;  %v6573_v18 = vld [vmem:[#allocation2 + $0x24] sm:$0xf]  ;;  %v6575_v19 = vld [vmem:[#allocation2 + $0x28] sm:$0xf]  ;;  %v853_v21 = vor.u32 %v851_v59, %v850_v2  ;;  %3605 = vmatmul.mubr.bf16.gmra.mxu0 %v5883_v15 }
  0x5e   : > { %v1063_v20 = vld [vmem:[#allocation2 + $0x2c] sm:$0x1]  ;;  %v1476_v33 = vsel %vm6270_vm5, %v1471_v10, %v1475_v34  ;;  %1112 = vst [vmem:[#allocation3 + $0xd8] sm:$0xf] %v6573_v18  ;;  %1113 = vst [vmem:[#allocation3 + $0xfc] sm:$0xf] %v6575_v19  ;;  %v1032_v52 = vsel %vm6344_vm14, %v845_v16, %v1031_v3 }
  0x5f   : > { %v1214_v29 = vshrl.u32 %v6573_v18, 16  ;;  %v1217_v31 = vshll.u32 %v6573_v18, 16  ;;  %v1223_v32 = vshll.u32 %v6575_v19, 16  ;;  %1820 = vst [vmem:[#allocation3 + $0x9c] sm:$0xf] %v6573_v18  ;;  %v1227_v40 = vshrl.u32 %v6575_v19, 16  ;;  %5423 = vmatpush3.bf16.msra.mxu1 %v5897_v39 }
  0x60   : > { %1821 = vst [vmem:[#allocation3 + $0xc0] sm:$0xf] %v6575_v19  ;;  %1952 = vst [vmem:[#allocation3 + $0x60] sm:$0xf] %v6573_v18  ;;  %v1035_v37 = vld [vmem:[#allocation2 + $0xb0] sm:$0x1]  ;;  %v854_v41 = vsel %vm6334_vm13, %v846_v46, %v853_v21 }
  0x61   : > { %1953 = vst [vmem:[#allocation3 + $0x84] sm:$0xf] %v6575_v19  ;;  %1584 = vst [vmem:[#allocation3 + $0x3d0] sm:$0xf] %v1476_v33  ;;  %v1233_v45 = vshll.u32 %v1063_v20, 16  ;;  %v855_v47 = vrot.slane %v850_v2, 4 }
  0x62   : > { %1899 = vst [vmem:[#allocation3 + $0x394] sm:$0xf] %v1476_v33  ;;  %2031 = vst [vmem:[#allocation3 + $0x358] sm:$0xf] %v1476_v33  ;;  %v480_v25 = vld [vmem:[#allocation2 + $0xb4] sm:$0x1] }
  0x63   : > { %v1216_v48 = vrot.slane %v1214_v29, 4  ;;  %v1219_v50 = vrot.slane %v1217_v31, 5  ;;  %v1225_v51 = vrot.slane %v1223_v32, 5  ;;  %v5898_v30 = vld [vmem:[%s7981_s3 + $0xd0] sm:$0xff]   ;;  %v530_v53 = vld [vmem:[#allocation2 + $0xbc] sm:$0x1]  ;;  %v1036_v34 = vsel %vm6280_vm8, %v855_v47, %v1035_v37 }
  0x64   : > { %v1229_v13 = vrot.slane %v1227_v40, 4  ;;  %v1235_v54 = vrot.slane %v1233_v45, 5  ;;  %1033 = vst [vmem:[#allocation2 + $0xa8] sm:$0xf] %v1032_v52  ;;  %1034 = vst [vmem:[#allocation2 + $0xac] sm:$0xf] %v854_v41  ;;  %5424 = vmatprep.subr.bf16.mxu1 %v5898_v30 }
  0x65   : > { %v1220_v43 = vor.u32 %v1219_v50, %v1216_v48  ;;  %1037 = vst [vmem:[#allocation2 + $0xb0] sm:$0x1] %v1036_v34  ;;  %v385_v58 = vmax.f32 %v6563_v4, 0.0  ;;  %v386_v11 = vmax.f32 %v6570_v12, 0.0  ;;  %v6609_v59 = vld [vmem:[%s7979_s1] ss:$0 sm:$0xff] }
  0x66   : > { %v336_v26 = vmul.f32 %v6609_v59, %v5186_v17  ;;  %v5920_v61 = vld [vmem:[%s7981_s3 + $0x160] sm:$0xff]   ;;  %v1230_v62 = vor.u32 %v1229_v13, %v1225_v51  ;;  %v5899_v0 = vld [vmem:[%s7981_s3 + $0x90] sm:$0xff]   ;;  %v337_v2 = vmul.f32 %v6609_v59, %v5187_v24  ;;  %v481_v3 = vsel %vm6280_vm8, 0, %v480_v25  ;;  %v5904_v5 = vld [vmem:[%s7981_s3 + $0xc8] sm:$0xff]  }
  0x67   : > { %v531_v4 = vsel %vm6289_vm10, 0, %v530_v53  ;;  %v1221_v7 = vrot.slane %v1220_v43, 4  ;;  %v5070_v9 = vpack.c.bf16 %v385_v58, %v385_v58  ;;  %v6626_v10 = vpack.c.bf16 %v386_v11, %v386_v11  ;;  %v6631_v15 = vld [vmem:[%s7980_s2] ss:$0 sm:$0xff]  ;;  %482 = vst [vmem:[#allocation2 + $0xb4] sm:$0x1] %v481_v3  ;;  %5532 = vmatprep.subr.bf16.mxu0 %v5920_v61  ;;  %5425 = vmatpush3.bf16.msra.mxu1 %v5899_v0 }
  0x68   : > { %v6634_v16 = vadd.f32 %v6631_v15, %v336_v26  ;;  %532 = vst [vmem:[#allocation2 + $0xbc] sm:$0x1] %v531_v4  ;;  %v5921_v12 = vld [vmem:[%s7981_s3 + $0x120] sm:$0xff]   ;;  %v1231_v17 = vrot.slane %v1230_v62, 4  ;;  %v6640_v20 = vadd.f32 %v6631_v15, %v337_v2  ;;  %v5908_v21 = vld [vmem:[%s7981_s3 + $0x88] sm:$0xff]   ;;  %v316_v24 = vmul.f32 %v6609_v59, %v5146_v28  ;;  %5426 = vmatprep.subr.bf16.mxu1 %v5904_v5  ;;  %v5932_v53 = vld [vmem:[%s7981_s3 + $0x158] sm:$0xff]  }
  0x69   : > { %v317_v33 = vmul.f32 %v6609_v59, %v5147_v27  ;;  %v6652_v29 = vld [vmem:[%s6230_s22 + $0x28] sm:$0xff]   ;;  %v5884_v32 = vld [vmem:[#allocation3 + $0x3a8] ss:$36 sps:$4 sm:$0xff]   ;;  %v1226_v37 = vsel %vm6270_vm5, %v1221_v7, %v1225_v51  ;;  %v670_v39 = vshrl.u32 %v5070_v9, 16  ;;  %5533 = vmatpush3.bf16.msra.mxu0 %v5921_v12  ;;  %v673_v57 = vshll.u32 %v5070_v9, 16  ;;  %v5917_v7 = vld [vmem:[%s7981_s3 + $0x1f8] sm:$0xff]  }
  0x6a   : > { %v5880_v31 = vld [vmem:[#allocation3 + $0x3ac] ss:$36 sps:$4 sm:$0xff]   ;;  %v5150_v40 = vunpack.c.l.bf16 %v6652_v29  ;;  %v5151_v45 = vunpack.c.h.bf16 %v6652_v29  ;;  %v1236_v28 = vsel %vm6270_vm5, %v1231_v17, %v1235_v54  ;;  %1563 = vst [vmem:[#allocation3 + $0xdc] sm:$0xf] %v1226_v37  ;;  %1878 = vst [vmem:[#allocation3 + $0xa0] sm:$0xf] %v1226_v37  ;;  %v6670_v30 = vadd.f32 %v6631_v15, %v316_v24  ;;  %5534 = vmatprep.subr.bf16.mxu0 %v5932_v53 }
  0x6b   : > { %2010 = vst [vmem:[#allocation3 + $0x64] sm:$0xf] %v1226_v37  ;;  %v678_v27 = vshrl.u32 %v6626_v10, 16  ;;  %v681_v46 = vshll.u32 %v6626_v10, 16  ;;  %v961_v47 = vld [vmem:[#allocation2 + $0x30] sm:$0xf]  ;;  %3692 = vmatprep.mubr.bf16.mxu1 %v5880_v31  ;;  %v6683_v43 = vadd.f32 %v6631_v15, %v317_v33  ;;  %5427 = vmatpush3.bf16.msra.mxu1 %v5908_v21 }
  0x6c   : > { %v5910_v25 = vld [vmem:[%s7981_s3 + $0xc0] sm:$0xff]   ;;  %1564 = vst [vmem:[#allocation3 + $0x100] sm:$0xf] %v1236_v28  ;;  %1879 = vst [vmem:[#allocation3 + $0xc4] sm:$0xf] %v1236_v28  ;;  %v672_v50 = vrot.slane %v670_v39, 7  ;;  %3693 = vmatmul.mubr.bf16.gmra.mxu1 %v5884_v32  ;;  %v6686_v58 = vmul.f32 %v6609_v59, %v5150_v40 }
  0x6d   : > { %2011 = vst [vmem:[#allocation3 + $0x88] sm:$0xf] %v1236_v28  ;;  %v6665_v48 = vld [vmem:[#allocation2 + $0xa8] sm:$0xf]  ;;  %v407_v51 = vmax.f32 %v6634_v16, 0.0  ;;  %v408_v52 = vmax.f32 %v6640_v20, 0.0  ;;  %5428 = vmatprep.subr.bf16.mxu1 %v5910_v25 }
  0x6e   : > { %v6675_v13 = vld [vmem:[#allocation2 + $0xac] sm:$0xf]  ;;  %v1096_v54 = vld [vmem:[#allocation2 + $0xb0] sm:$0x1]  ;;  %1134 = vst [vmem:[#allocation3 + $0x3f0] sm:$0xf] %v6665_v48  ;;  %v675_v62 = vor.u32 %v673_v57, %v672_v50 }
  0x6f   : > { %v1478_v41 = vshrl.u32 %v6665_v48, 16  ;;  %v1481_v34 = vshll.u32 %v6665_v48, 16  ;;  %1842 = vst [vmem:[#allocation3 + $0x3b4] sm:$0xf] %v6665_v48  ;;  %1974 = vst [vmem:[#allocation3 + $0x378] sm:$0xf] %v6665_v48  ;;  %v5092_v31 = vpack.c.bf16 %v407_v51, %v407_v51  ;;  %v5093_v39 = vpack.c.bf16 %v408_v52, %v408_v52 }
  0x70   : > { %1135 = vst [vmem:[#allocation3 + $0x414] sm:$0xf] %v6675_v13  ;;  %v1487_v11 = vshll.u32 %v6675_v13, 16  ;;  %v1491_v26 = vshrl.u32 %v6675_v13, 16  ;;  %v1497_v61 = vshll.u32 %v1096_v54, 16  ;;  %v676_v3 = vrot.slane %v672_v50, 4 }
  0x71   : > { %1843 = vst [vmem:[#allocation3 + $0x3d8] sm:$0xf] %v6675_v13  ;;  %1975 = vst [vmem:[#allocation3 + $0x39c] sm:$0xf] %v6675_v13  ;;  %v1480_v0 = vrot.slane %v1478_v41, 4  ;;  %v1483_v2 = vrot.slane %v1481_v34, 5  ;;  %v962_v12 = vsel %vm6344_vm14, %v675_v62, %v961_v47  ;;  %v319_v51 = vmul.f32 %v6609_v59, %v5151_v45 }
  0x72   : > { %v680_v4 = vrot.slane %v678_v27, 7  ;;  %v5911_v5 = vld [vmem:[%s7981_s3 + $0x80] sm:$0xff]   ;;  %v1489_v9 = vrot.slane %v1487_v11, 5  ;;  %v1493_v10 = vrot.slane %v1491_v26, 4  ;;  %v1499_v16 = vrot.slane %v1497_v61, 5  ;;  %v5936_v20 = vld [vmem:[%s7981_s3 + $0x118] sm:$0xff]  }
  0x73   : > { %v965_v17 = vld [vmem:[#allocation2 + $0x38] sm:$0x1]  ;;  %v1484_v21 = vor.u32 %v1483_v2, %v1480_v0  ;;  %963 = vst [vmem:[#allocation2 + $0x30] sm:$0xf] %v962_v12  ;;  %v450_v32 = vld [vmem:[#allocation2 + $0x3c] sm:$0x1]  ;;  %5535 = vmatpush3.bf16.msra.mxu0 %v5936_v20  ;;  %5429 = vmatpush3.bf16.msra.mxu1 %v5911_v5 }
  0x74   : > { %v683_v24 = vor.u32 %v681_v46, %v680_v4  ;;  %v685_v33 = vrot.slane %v680_v4, 4  ;;  %v1494_v37 = vor.u32 %v1493_v10, %v1489_v9  ;;  %v387_v40 = vmax.f32 %v6670_v30, 0.0  ;;  %v500_v57 = vld [vmem:[#allocation2 + $0x44] sm:$0x1]  ;;  %v5890_v27 = vld [vmem:[#allocation3 + $0xdc] ss:$36 sps:$4 sm:$0xff]   ;;  %5638 = vmatprep.subr.bf16.mxu1 %v5917_v7 }
  0x75   : > { %v388_v28 = vmax.f32 %v6683_v43, 0.0  ;;  %v1485_v47 = vrot.slane %v1484_v21, 4  ;;  %v5895_v25 = vld [vmem:[#allocation3 + $0xd8] ss:$36 sps:$4 sm:$0xff]   ;;  %v857_v30 = vshrl.u32 %v5092_v31, 16  ;;  %v860_v53 = vshll.u32 %v5092_v31, 16  ;;  %3612 = vmatprep.mubr.bf16.mxu0 %v5890_v27 }
  0x76   : > { %v684_v50 = vsel %vm6334_vm13, %v676_v3, %v683_v24  ;;  %v966_v46 = vsel %vm6280_vm8, %v685_v33, %v965_v17  ;;  %v1495_v52 = vrot.slane %v1494_v37, 4  ;;  %v865_v54 = vshrl.u32 %v5093_v39, 16  ;;  %v453_v41 = vld [vmem:[#allocation2 + $0x48] sm:$0x1]  ;;  %v1038_v11 = vld [vmem:[#allocation2 + $0xb4] sm:$0xf]  ;;  %3613 = vmatmul.mubr.bf16.gmra.mxu0 %v5895_v25 }
  0x77   : > { %964 = vst [vmem:[#allocation2 + $0x34] sm:$0xf] %v684_v50  ;;  %967 = vst [vmem:[#allocation2 + $0x38] sm:$0x1] %v966_v46  ;;  %v1490_v34 = vsel %vm6270_vm5, %v1485_v47, %v1489_v9  ;;  %v868_v43 = vshll.u32 %v5093_v39, 16  ;;  %v451_v29 = vsel %vm6280_vm8, 0, %v450_v32  ;;  %v5072_v3 = vpack.c.bf16 %v387_v40, %v387_v40 }
  0x78   : > { %v1042_v26 = vld [vmem:[#allocation2 + $0xbc] sm:$0x1]  ;;  %v501_v45 = vsel %vm6289_vm10, 0, %v500_v57  ;;  %v5944_v61 = vld [vmem:[%s7981_s3 + $0x150] sm:$0xff]   ;;  %v1500_v62 = vsel %vm6270_vm5, %v1495_v52, %v1499_v16  ;;  %1585 = vst [vmem:[#allocation3 + $0x3f4] sm:$0xf] %v1490_v34  ;;  %v5073_v5 = vpack.c.bf16 %v388_v28, %v388_v28  ;;  %v6727_v7 = vadd.f32 %v6631_v15, %v6686_v58 }
  0x79   : > { %1900 = vst [vmem:[#allocation3 + $0x3b8] sm:$0xf] %v1490_v34  ;;  %2032 = vst [vmem:[#allocation3 + $0x37c] sm:$0xf] %v1490_v34  ;;  %v859_v0 = vrot.slane %v857_v30, 7  ;;  %v867_v2 = vrot.slane %v865_v54, 7  ;;  %v6730_v9 = vadd.f32 %v6631_v15, %v319_v51  ;;  %5536 = vmatprep.subr.bf16.mxu0 %v5944_v61 }
  0x7a   : > { %452 = vst [vmem:[#allocation2 + $0x3c] sm:$0x1] %v451_v29  ;;  %502 = vst [vmem:[#allocation2 + $0x44] sm:$0x1] %v501_v45  ;;  %v5277_v4 = vld [vmem:[%s6230_s22 + $0x30] sm:$0xff]   ;;  %v454_v10 = vsel %vm6280_vm8, 0, %v453_v41 }
  0x7b   : > { %1586 = vst [vmem:[#allocation3 + $0x418] sm:$0xf] %v1500_v62  ;;  %1901 = vst [vmem:[#allocation3 + $0x3dc] sm:$0xf] %v1500_v62  ;;  %v5945_v16 = vld [vmem:[%s7981_s3 + $0x110] sm:$0xff]   ;;  %v862_v17 = vor.u32 %v860_v53, %v859_v0  ;;  %v863_v20 = vrot.slane %v859_v0, 4  ;;  %v870_v21 = vor.u32 %v868_v43, %v867_v2  ;;  %v5154_v50 = vunpack.c.l.bf16 %v5277_v4 }
  0x7c   : > { %2033 = vst [vmem:[#allocation3 + $0x3a0] sm:$0xf] %v1500_v62  ;;  %v6737_v12 = vld [vmem:[#allocation2 + $0x30] sm:$0xf]  ;;  %v872_v24 = vrot.slane %v867_v2, 4  ;;  %v687_v31 = vshrl.u32 %v5072_v3, 16  ;;  %5537 = vmatpush3.bf16.msra.mxu0 %v5945_v16  ;;  %v5155_v46 = vunpack.c.h.bf16 %v5277_v4 }
  0x7d   : > { %455 = vst [vmem:[#allocation2 + $0x48] sm:$0x1] %v454_v10  ;;  %1114 = vst [vmem:[#allocation3 + $0x120] sm:$0xf] %v6737_v12  ;;  %v1238_v58 = vshrl.u32 %v6737_v12, 16  ;;  %v1241_v33 = vshll.u32 %v6737_v12, 16  ;;  %v871_v37 = vsel %vm6334_vm13, %v863_v20, %v870_v21  ;;  %v1039_v39 = vsel %vm6344_vm14, %v862_v17, %v1038_v11 }
  0x7e   : > { %1822 = vst [vmem:[#allocation3 + $0xe4] sm:$0xf] %v6737_v12  ;;  %1954 = vst [vmem:[#allocation3 + $0xa8] sm:$0xf] %v6737_v12  ;;  %v690_v32 = vshll.u32 %v5072_v3, 16  ;;  %v1043_v40 = vsel %vm6280_vm8, %v872_v24, %v1042_v26  ;;  %v695_v28 = vshrl.u32 %v5073_v5, 16  ;;  %v320_v0 = vmul.f32 %v6609_v59, %v5154_v50 }
  0x7f   : > { %v6750_v57 = vld [vmem:[#allocation2 + $0x34] sm:$0xf]  ;;  %v6752_v27 = vld [vmem:[#allocation2 + $0x38] sm:$0x1]  ;;  %v1240_v47 = vrot.slane %v1238_v58, 4  ;;  %v1243_v25 = vrot.slane %v1241_v33, 5  ;;  %v6763_v2 = vmul.f32 %v6609_v59, %v5155_v46 }
  0x80   : > { %1040 = vst [vmem:[#allocation2 + $0xb4] sm:$0xf] %v1039_v39  ;;  %1041 = vst [vmem:[#allocation2 + $0xb8] sm:$0xf] %v871_v37  ;;  %v1247_v51 = vshll.u32 %v6750_v57, 16  ;;  %v1251_v52 = vshrl.u32 %v6750_v57, 16 }
  0x81   : > { %1044 = vst [vmem:[#allocation2 + $0xbc] sm:$0x1] %v1043_v40  ;;  %1115 = vst [vmem:[#allocation3 + $0x144] sm:$0xf] %v6750_v57  ;;  %v1257_v30 = vshll.u32 %v6752_v27, 16  ;;  %v689_v53 = vrot.slane %v687_v31, 7  ;;  %v1244_v41 = vor.u32 %v1243_v25, %v1240_v47  ;;  %v6781_v47 = vadd.f32 %v6631_v15, %v320_v0 }
  0x82   : > { %1823 = vst [vmem:[#allocation3 + $0x108] sm:$0xf] %v6750_v57  ;;  %1955 = vst [vmem:[#allocation3 + $0xcc] sm:$0xf] %v6750_v57  ;;  %v503_v54 = vld [vmem:[#allocation2 + $0x50] sm:$0x1] }
  0x83   : > { %v697_v34 = vrot.slane %v695_v28, 7  ;;  %v698_v43 = vshll.u32 %v5073_v5, 16  ;;  %v968_v11 = vld [vmem:[#allocation2 + $0x3c] sm:$0xf]  ;;  %v389_v26 = vmax.f32 %v6727_v7, 0.0  ;;  %v1249_v61 = vrot.slane %v1247_v51, 5 }
  0x84   : > { %v5892_v29 = vld [vmem:[#allocation3 + $0x3f4] ss:$36 sps:$4 sm:$0xff]   ;;  %v692_v62 = vor.u32 %v690_v32, %v689_v53  ;;  %v1245_v3 = vrot.slane %v1244_v41, 4  ;;  %v1253_v4 = vrot.slane %v1251_v52, 4  ;;  %v1259_v10 = vrot.slane %v1257_v30, 5 }
  0x85   : > { %v5896_v45 = vld [vmem:[#allocation3 + $0x3f0] ss:$36 sps:$4 sm:$0xff]   ;;  %v693_v16 = vrot.slane %v689_v53, 4  ;;  %v972_v17 = vld [vmem:[#allocation2 + $0x44] sm:$0x1]  ;;  %3700 = vmatprep.mubr.bf16.mxu1 %v5892_v29  ;;  %v700_v20 = vor.u32 %v698_v43, %v697_v34  ;;  %v702_v5 = vrot.slane %v697_v34, 4  ;;  %v5074_v31 = vpack.c.bf16 %v389_v26, %v389_v26 }
  0x86   : > { %v969_v7 = vsel %vm6344_vm14, %v692_v62, %v968_v11  ;;  %v390_v21 = vmax.f32 %v6730_v9, 0.0  ;;  %3701 = vmatmul.mubr.bf16.gmra.mxu1 %v5896_v45  ;;  %v1250_v24 = vsel %vm6270_vm5, %v1245_v3, %v1249_v61  ;;  %v1254_v58 = vor.u32 %v1253_v4, %v1249_v61  ;;  %v975_v26 = vld [vmem:[#allocation2 + $0x48] sm:$0xf] }
  0x87   : > { %970 = vst [vmem:[#allocation2 + $0x3c] sm:$0xf] %v969_v7  ;;  %v504_v33 = vsel %vm6289_vm10, 0, %v503_v54  ;;  %1565 = vst [vmem:[#allocation3 + $0x124] sm:$0xf] %v1250_v24  ;;  %v701_v9 = vsel %vm6334_vm13, %v693_v16, %v700_v20  ;;  %v973_v40 = vsel %vm6280_vm8, %v702_v5, %v972_v17  ;;  %v704_v53 = vshrl.u32 %v5074_v31, 16 }
  0x88   : > { %1880 = vst [vmem:[#allocation3 + $0xe8] sm:$0xf] %v1250_v24  ;;  %2012 = vst [vmem:[#allocation3 + $0xac] sm:$0xf] %v1250_v24  ;;  %v6772_v32 = vld [vmem:[#allocation2 + $0xb4] sm:$0xf]  ;;  %v5075_v28 = vpack.c.bf16 %v390_v21, %v390_v21 }
  0x89   : > { %v6774_v37 = vld [vmem:[#allocation2 + $0xb8] sm:$0xf]  ;;  %v1099_v39 = vld [vmem:[#allocation2 + $0xbc] sm:$0x1]  ;;  %505 = vst [vmem:[#allocation2 + $0x50] sm:$0x1] %v504_v33 }
  0x8a   : > { %v1255_v25 = vrot.slane %v1254_v58, 4  ;;  %1136 = vst [vmem:[#allocation3 + $0x438] sm:$0xf] %v6772_v32  ;;  %1137 = vst [vmem:[#allocation3 + $0x45c] sm:$0xf] %v6774_v37  ;;  %v1502_v50 = vshrl.u32 %v6772_v32, 16 }
  0x8b   : > { %v1505_v46 = vshll.u32 %v6772_v32, 16  ;;  %v1511_v51 = vshll.u32 %v6774_v37, 16  ;;  %1844 = vst [vmem:[#allocation3 + $0x3fc] sm:$0xf] %v6772_v32  ;;  %1845 = vst [vmem:[#allocation3 + $0x420] sm:$0xf] %v6774_v37 }
  0x8c   : > { %1976 = vst [vmem:[#allocation3 + $0x3c0] sm:$0xf] %v6772_v32  ;;  %1977 = vst [vmem:[#allocation3 + $0x3e4] sm:$0xf] %v6774_v37  ;;  %v1515_v52 = vshrl.u32 %v6774_v37, 16  ;;  %v1521_v30 = vshll.u32 %v1099_v39, 16  ;;  %v1260_v41 = vsel %vm6270_vm5, %v1255_v25, %v1259_v10 }
  0x8d   : > { %971 = vst [vmem:[#allocation2 + $0x40] sm:$0xf] %v701_v9  ;;  %974 = vst [vmem:[#allocation2 + $0x44] sm:$0x1] %v973_v40  ;;  %v707_v54 = vshll.u32 %v5074_v31, 16  ;;  %v1504_v34 = vrot.slane %v1502_v50, 4 }
  0x8e   : > { %v1507_v43 = vrot.slane %v1505_v46, 5  ;;  %v1513_v11 = vrot.slane %v1511_v51, 5  ;;  %1566 = vst [vmem:[#allocation3 + $0x148] sm:$0xf] %v1260_v41  ;;  %1881 = vst [vmem:[#allocation3 + $0x10c] sm:$0xf] %v1260_v41 }
  0x8f   : > { %2013 = vst [vmem:[#allocation3 + $0xd0] sm:$0xf] %v1260_v41  ;;  %v1517_v29 = vrot.slane %v1515_v52, 4  ;;  %v1523_v45 = vrot.slane %v1521_v30, 5  ;;  %v706_v61 = vrot.slane %v704_v53, 7  ;;  %v712_v62 = vshrl.u32 %v5075_v28, 16 }
  0x90   : > { %v1508_v0 = vor.u32 %v1507_v43, %v1504_v34  ;;  %v715_v3 = vshll.u32 %v5075_v28, 16  ;;  %v4795_v4 = vrot.slane %v6389_v38, 9  ;;  %v1649_v16 = vrot.slane %v6395_v44, 5  ;;  %v6797_v20 = vld [vmem:[#allocation2 + $0x3c] sm:$0xf]  ;;  %v5958_v52 = vld [vmem:[%s7981_s3 + $0x148] sm:$0xff]  }
  0x91   : > { %v1518_v17 = vor.u32 %v1517_v29, %v1513_v11  ;;  %v709_v10 = vor.u32 %v707_v54, %v706_v61  ;;  %v710_v5 = vrot.slane %v706_v61, 4  ;;  %v714_v7 = vrot.slane %v712_v62, 7  ;;  %1116 = vst [vmem:[#allocation3 + $0x168] sm:$0xf] %v6797_v20  ;;  %1824 = vst [vmem:[#allocation3 + $0x12c] sm:$0xf] %v6797_v20  ;;  %5538 = vmatprep.subr.bf16.mxu0 %v5958_v52 }
  0x92   : > { %v1509_v21 = vrot.slane %v1508_v0, 4  ;;  %v1262_v24 = vshrl.u32 %v6797_v20, 16  ;;  %v1265_v58 = vshll.u32 %v6797_v20, 16  ;;  %1956 = vst [vmem:[#allocation3 + $0xf0] sm:$0xf] %v6797_v20  ;;  %v1650_v44 = vsel %vm6299_vm11, %v4795_v4, %v1649_v16  ;;  %v6832_v0 = vld [vmem:[%s6230_s22 + $0x38] sm:$0xff]  }
  0x93   : > { %v979_v38 = vld [vmem:[#allocation2 + $0x50] sm:$0x1]  ;;  %v1519_v33 = vrot.slane %v1518_v17, 4  ;;  %v717_v9 = vor.u32 %v715_v3, %v714_v7  ;;  %v719_v40 = vrot.slane %v714_v7, 4  ;;  %v976_v28 = vsel %vm6344_vm14, %v709_v10, %v975_v26  ;;  %1786 = vst [vmem:[#allocation3 + $0x50] sm:$0xf] %v1650_v44 }
  0x94   : > { %v6806_v31 = vld [vmem:[#allocation2 + $0x40] sm:$0xf]  ;;  %v6808_v39 = vld [vmem:[#allocation2 + $0x44] sm:$0x1]  ;;  %1918 = vst [vmem:[#allocation3 + $0x14] sm:$0xf] %v1650_v44  ;;  %v1514_v25 = vsel %vm6270_vm5, %v1509_v21, %v1513_v11  ;;  %v360_v62 = vadd.f32 %v6631_v15, %v6763_v2  ;;  %v5158_v52 = vunpack.c.l.bf16 %v6832_v0 }
  0x95   : > { %1117 = vst [vmem:[#allocation3 + $0x18c] sm:$0xf] %v6806_v31  ;;  %v1264_v50 = vrot.slane %v1262_v24, 4  ;;  %v1267_v46 = vrot.slane %v1265_v58, 5  ;;  %v1271_v51 = vshll.u32 %v6806_v31, 16  ;;  %v1524_v30 = vsel %vm6270_vm5, %v1519_v33, %v1523_v45 }
  0x96   : > { %1825 = vst [vmem:[#allocation3 + $0x150] sm:$0xf] %v6806_v31  ;;  %1957 = vst [vmem:[#allocation3 + $0x114] sm:$0xf] %v6806_v31  ;;  %v1275_v53 = vshrl.u32 %v6806_v31, 16  ;;  %v1281_v54 = vshll.u32 %v6808_v39, 16  ;;  %v718_v41 = vsel %vm6334_vm13, %v710_v5, %v717_v9  ;;  %v980_v61 = vsel %vm6280_vm8, %v719_v40, %v979_v38 }
  0x97   : > { %977 = vst [vmem:[#allocation2 + $0x48] sm:$0xf] %v976_v28  ;;  %1587 = vst [vmem:[#allocation3 + $0x43c] sm:$0xf] %v1514_v25  ;;  %v456_v34 = vld [vmem:[#allocation2 + $0x54] sm:$0x1]  ;;  %v1268_v29 = vor.u32 %v1267_v46, %v1264_v50 }
  0x98   : > { %1902 = vst [vmem:[#allocation3 + $0x400] sm:$0xf] %v1514_v25  ;;  %2034 = vst [vmem:[#allocation3 + $0x3c4] sm:$0xf] %v1514_v25  ;;  %v506_v43 = vld [vmem:[#allocation2 + $0x5c] sm:$0x1] }
  0x99   : > { %v5900_v11 = vld [vmem:[#allocation3 + $0x124] ss:$36 sps:$4 sm:$0xff]   ;;  %1588 = vst [vmem:[#allocation3 + $0x460] sm:$0xf] %v1524_v30  ;;  %1903 = vst [vmem:[#allocation3 + $0x424] sm:$0xf] %v1524_v30 }
  0x9a   : > { %2035 = vst [vmem:[#allocation3 + $0x3e8] sm:$0xf] %v1524_v30  ;;  %v5906_v26 = vld [vmem:[#allocation3 + $0x120] ss:$36 sps:$4 sm:$0xff]   ;;  %v1273_v45 = vrot.slane %v1271_v51, 5  ;;  %v1277_v3 = vrot.slane %v1275_v53, 4  ;;  %3620 = vmatprep.mubr.bf16.mxu0 %v5900_v11  ;;  %v5159_v30 = vunpack.c.h.bf16 %v6832_v0 }
  0x9b   : > { %978 = vst [vmem:[#allocation2 + $0x4c] sm:$0xf] %v718_v41  ;;  %v1283_v4 = vrot.slane %v1281_v54, 5  ;;  %981 = vst [vmem:[#allocation2 + $0x50] sm:$0x1] %v980_v61  ;;  %v1651_v17 = vrot.slane %v1649_v16, 4  ;;  %3621 = vmatmul.mubr.bf16.gmra.mxu0 %v5906_v26  ;;  %v322_v61 = vmul.f32 %v6609_v59, %v5158_v52 }
  0x9c   : > { %v6129_v10 = vld [vmem:[#allocation2 + $0x14] sm:$0x1]  ;;  %v1269_v7 = vrot.slane %v1268_v29, 4  ;;  %v391_v21 = vmax.f32 %v6781_v47, 0.0  ;;  %v392_v24 = vmax.f32 %v360_v62, 0.0  ;;  %v457_v58 = vsel %vm6280_vm8, 0, %v456_v34 }
  0x9d   : > { %v1652_v5 = vrot.slane %v6129_v10, 5  ;;  %v1278_v38 = vor.u32 %v1277_v3, %v1273_v45  ;;  %458 = vst [vmem:[#allocation2 + $0x54] sm:$0x1] %v457_v58  ;;  %v507_v44 = vsel %vm6289_vm10, 0, %v506_v43  ;;  %v4796_v16 = vrot.slane %v6472_v8, 9  ;;  %v5961_v28 = vld [vmem:[%s7981_s3 + $0x108] sm:$0xff]  }
  0x9e   : > { %v1274_v33 = vsel %vm6270_vm5, %v1269_v7, %v1273_v45  ;;  %508 = vst [vmem:[#allocation2 + $0x5c] sm:$0x1] %v507_v44  ;;  %v5076_v47 = vpack.c.bf16 %v391_v21, %v391_v21  ;;  %v6844_v9 = vpack.c.bf16 %v392_v24, %v392_v24  ;;  %v1656_v40 = vrot.slane %v6464_v1, 5  ;;  %v5916_v8 = vld [vmem:[#allocation3 + $0xc] ss:$36 sps:$4 sm:$0xff]   ;;  %5539 = vmatpush3.bf16.msra.mxu0 %v5961_v28 }
  0x9f   : > { %v1653_v2 = vsel %vm6299_vm11, %v1651_v17, %v1652_v5  ;;  %v1279_v25 = vrot.slane %v1278_v38, 4  ;;  %1567 = vst [vmem:[#allocation3 + $0x16c] sm:$0xf] %v1274_v33  ;;  %1882 = vst [vmem:[#allocation3 + $0x130] sm:$0xf] %v1274_v33  ;;  %v6858_v1 = vld [vmem:[%s6230_s22 + $0x40] sm:$0xff]  }
  0xa0   : > { %1787 = vst [vmem:[#allocation3 + $0x74] sm:$0xf] %v1653_v2  ;;  %1919 = vst [vmem:[#allocation3 + $0x38] sm:$0xf] %v1653_v2  ;;  %v6850_v50 = vld [vmem:[#allocation2 + $0x48] sm:$0xf]  ;;  %v1657_v45 = vsel %vm6299_vm11, %v4796_v16, %v1656_v40  ;;  %v5162_v10 = vunpack.c.l.bf16 %v6858_v1 }
  0xa1   : > { %2014 = vst [vmem:[#allocation3 + $0xf4] sm:$0xf] %v1274_v33  ;;  %v6852_v46 = vld [vmem:[#allocation2 + $0x20] sm:$0x1]  ;;  %1118 = vst [vmem:[#allocation3 + $0x1b0] sm:$0xf] %v6850_v50  ;;  %v1284_v26 = vsel %vm6270_vm5, %v1279_v25, %v1283_v4  ;;  %v323_v4 = vmul.f32 %v6609_v59, %v5159_v30 }
  0xa2   : > { %v1659_v51 = vrot.slane %v6852_v46, 5  ;;  %v1286_v53 = vshrl.u32 %v6850_v50, 16  ;;  %v1289_v54 = vshll.u32 %v6850_v50, 16  ;;  %1826 = vst [vmem:[#allocation3 + $0x174] sm:$0xf] %v6850_v50  ;;  %v721_v41 = vshrl.u32 %v5076_v47, 16 }
  0xa3   : > { %1958 = vst [vmem:[#allocation3 + $0x138] sm:$0xf] %v6850_v50  ;;  %v724_v34 = vshll.u32 %v5076_v47, 16  ;;  %v5902_v43 = vld [vmem:[#allocation3 + $0x43c] ss:$36 sps:$4 sm:$0xff]   ;;  %v729_v29 = vshrl.u32 %v6844_v9, 16 }
  0xa4   : > { %v5907_v11 = vld [vmem:[#allocation3 + $0x438] ss:$36 sps:$4 sm:$0xff]   ;;  %1568 = vst [vmem:[#allocation3 + $0x190] sm:$0xf] %v1284_v26  ;;  %1883 = vst [vmem:[#allocation3 + $0x154] sm:$0xf] %v1284_v26  ;;  %3708 = vmatprep.mubr.bf16.mxu1 %v5902_v43 }
  0xa5   : > { %2015 = vst [vmem:[#allocation3 + $0x118] sm:$0xf] %v1284_v26  ;;  %v6871_v62 = vld [vmem:[#allocation2 + $0x4c] sm:$0xf]  ;;  %v6873_v0 = vld [vmem:[#allocation2 + $0x50] sm:$0x1]  ;;  %3709 = vmatmul.mubr.bf16.gmra.mxu1 %v5907_v11 }
  0xa6   : > { %v1288_v3 = vrot.slane %v1286_v53, 4  ;;  %v1291_v17 = vrot.slane %v1289_v54, 5  ;;  %1788 = vst [vmem:[#allocation3 + $0x98] sm:$0xf] %v1657_v45  ;;  %1920 = vst [vmem:[#allocation3 + $0x5c] sm:$0xf] %v1657_v45  ;;  %3749 = vmatprep.mubr.bf16.mxu1 %v5916_v8 }
  0xa7   : > { %2052 = vst [vmem:[#allocation3 + $0x20] sm:$0xf] %v1657_v45  ;;  %1119 = vst [vmem:[#allocation3 + $0x1d4] sm:$0xf] %v6871_v62  ;;  %v1295_v5 = vshll.u32 %v6871_v62, 16  ;;  %v1299_v7 = vshrl.u32 %v6871_v62, 16 }
  0xa8   : > { %v1305_v21 = vshll.u32 %v6873_v0, 16  ;;  %1827 = vst [vmem:[#allocation3 + $0x198] sm:$0xf] %v6871_v62  ;;  %1959 = vst [vmem:[#allocation3 + $0x15c] sm:$0xf] %v6871_v62  ;;  %v723_v24 = vrot.slane %v721_v41, 7  ;;  %v1292_v58 = vor.u32 %v1291_v17, %v1288_v3  ;;  %v361_v3 = vadd.f32 %v6631_v15, %v322_v61 }
  0xa9   : > { %v731_v38 = vrot.slane %v729_v29, 7  ;;  %v732_v2 = vshll.u32 %v6844_v9, 16  ;;  %v982_v44 = vld [vmem:[#allocation2 + $0x54] sm:$0xf]  ;;  %v1658_v16 = vrot.slane %v1656_v40, 4  ;;  %v1297_v33 = vrot.slane %v1295_v5, 5 }
  0xaa   : > { %v1301_v47 = vrot.slane %v1299_v7, 4  ;;  %v1307_v28 = vrot.slane %v1305_v21, 5  ;;  %v726_v25 = vor.u32 %v724_v34, %v723_v24  ;;  %v459_v52 = vld [vmem:[#allocation2 + $0x60] sm:$0x1]  ;;  %v509_v30 = vld [vmem:[#allocation2 + $0x68] sm:$0x1] }
  0xab   : > { %v5914_v53 = vld [vmem:[#allocation3 + $0x8] ss:$36 sps:$4 sm:$0xff]   ;;  %v1293_v54 = vrot.slane %v1292_v58, 4  ;;  %v727_v43 = vrot.slane %v723_v24, 4  ;;  %v734_v26 = vor.u32 %v732_v2, %v731_v38  ;;  %v736_v41 = vrot.slane %v731_v38, 4  ;;  %v6885_v11 = vld [vmem:[%s6230_s22 + $0x48] sm:$0xff]  }
  0xac   : > { %v5919_v9 = vld [vmem:[%s7981_s3 + $0x1b8] sm:$0xff]   ;;  %v1302_v29 = vor.u32 %v1301_v47, %v1297_v33  ;;  %v5924_v40 = vld [vmem:[#allocation3 + $0x54] ss:$36 sps:$4 sm:$0xff]   ;;  %v983_v8 = vsel %vm6344_vm14, %v726_v25, %v982_v44  ;;  %v1660_v34 = vsel %vm6299_vm11, %v1658_v16, %v1659_v51  ;;  %v362_v51 = vadd.f32 %v6631_v15, %v323_v4  ;;  %v512_v61 = vld [vmem:[#allocation2 + $0x74] sm:$0x1] }
  0xad   : > { %v986_v45 = vld [vmem:[#allocation2 + $0x5c] sm:$0x1]  ;;  %v462_v17 = vld [vmem:[#allocation2 + $0x6c] sm:$0x1]  ;;  %v1298_v5 = vsel %vm6270_vm5, %v1293_v54, %v1297_v33  ;;  %v735_v7 = vsel %vm6334_vm13, %v727_v43, %v734_v26  ;;  %984 = vst [vmem:[#allocation2 + $0x54] sm:$0xf] %v983_v8  ;;  %v5163_v2 = vunpack.c.h.bf16 %v6858_v1  ;;  %v324_v44 = vmul.f32 %v6609_v59, %v5162_v10  ;;  %3750 = vmatmul.mubr.bf16.vlgmr.msra.gmra.mxu1 %v5914_v53 }
  0xae   : > { %v987_v21 = vsel %vm6280_vm8, %v736_v41, %v986_v45  ;;  %1789 = vst [vmem:[#allocation3 + $0xbc] sm:$0xf] %v1660_v34  ;;  %1921 = vst [vmem:[#allocation3 + $0x80] sm:$0xf] %v1660_v34  ;;  %v5933_v46 = vld [vmem:[%s7981_s3 + $0x1f0] sm:$0xff]   ;;  %v1303_v38 = vrot.slane %v1302_v29, 4  ;;  %v5166_v16 = vunpack.c.l.bf16 %v6885_v11  ;;  %5639 = vmatpush3.bf16.msra.mxu1 %v5919_v9  ;;  %3757 = vmatprep.mubr.bf16.mxu1 %v5924_v40 }
  0xaf   : > { %2053 = vst [vmem:[#allocation3 + $0x44] sm:$0xf] %v1660_v34  ;;  %v5912_v24 = vld [vmem:[#allocation3 + $0x16c] ss:$36 sps:$4 sm:$0xff]   ;;  %1569 = vst [vmem:[#allocation3 + $0x1b4] sm:$0xf] %v1298_v5  ;;  %v363_v53 = vadd.f32 %v6631_v15, %v324_v44  ;;  %5640 = vmatprep.subr.bf16.mxu1 %v5933_v46 }
  0xb0   : > { %v5918_v58 = vld [vmem:[#allocation3 + $0x168] ss:$36 sps:$4 sm:$0xff]   ;;  %1884 = vst [vmem:[#allocation3 + $0x178] sm:$0xf] %v1298_v5  ;;  %2016 = vst [vmem:[#allocation3 + $0x13c] sm:$0xf] %v1298_v5  ;;  %3628 = vmatprep.mubr.bf16.mxu0 %v5912_v24  ;;  %v1308_v1 = vsel %vm6270_vm5, %v1303_v38, %v1307_v28  ;;  %v5167_v24 = vunpack.c.h.bf16 %v6885_v11 }
  0xb1   : > { %985 = vst [vmem:[#allocation2 + $0x58] sm:$0xf] %v735_v7  ;;  %988 = vst [vmem:[#allocation2 + $0x5c] sm:$0x1] %v987_v21  ;;  %v393_v33 = vmax.f32 %v361_v3, 0.0  ;;  %v394_v47 = vmax.f32 %v362_v51, 0.0  ;;  %3629 = vmatmul.mubr.bf16.gmra.mxu0 %v5918_v58 }
  0xb2   : > { %v460_v4 = vsel %vm6280_vm8, 0, %v459_v52  ;;  %v510_v25 = vsel %vm6289_vm10, 0, %v509_v30  ;;  %v5970_v54 = vld [vmem:[%s7981_s3 + $0x140] sm:$0xff]   ;;  %v6922_v10 = vld [vmem:[%s7981_s3 + $0x1b0] sm:$0xff]   ;;  %v4797_v52 = vrot.slane %v6573_v18, 9  ;;  %v1663_v43 = vrot.slane %v6575_v19, 5 }
  0xb3   : > { %461 = vst [vmem:[#allocation2 + $0x60] sm:$0x1] %v460_v4  ;;  %511 = vst [vmem:[#allocation2 + $0x68] sm:$0x1] %v510_v25  ;;  %v6131_v30 = vld [vmem:[#allocation2 + $0x2c] sm:$0x1]  ;;  %v6929_v28 = vpack.c.bf16 %v393_v33, %v393_v33  ;;  %v6931_v29 = vpack.c.bf16 %v394_v47, %v394_v47  ;;  %v325_v18 = vmul.f32 %v6609_v59, %v5163_v2  ;;  %5540 = vmatprep.subr.bf16.mxu0 %v5970_v54 }
  0xb4   : > { %v1666_v26 = vrot.slane %v6131_v30, 5  ;;  %v5971_v41 = vld [vmem:[%s7981_s3 + $0x100] sm:$0xff]   ;;  %1570 = vst [vmem:[#allocation3 + $0x1d8] sm:$0xf] %v1308_v1  ;;  %1885 = vst [vmem:[#allocation3 + $0x19c] sm:$0xf] %v1308_v1  ;;  %v1664_v8 = vsel %vm6299_vm11, %v4797_v52, %v1663_v43  ;;  %5641 = vmatpush3.bf16.msra.mxu1 %v6922_v10 }
  0xb5   : > { %2017 = vst [vmem:[#allocation3 + $0x160] sm:$0xf] %v1308_v1  ;;  %v463_v19 = vsel %vm6280_vm8, 0, %v462_v17  ;;  %v1665_v45 = vrot.slane %v1663_v43, 4  ;;  %v513_v34 = vsel %vm6289_vm10, 0, %v512_v61  ;;  %v6942_v3 = vld [vmem:[%s6230_s22 + $0x50] sm:$0xff]   ;;  %v364_v51 = vadd.f32 %v6631_v15, %v325_v18  ;;  %5541 = vmatpush3.bf16.msra.mxu0 %v5971_v41 }
  0xb6   : > { %464 = vst [vmem:[#allocation2 + $0x6c] sm:$0x1] %v463_v19  ;;  %v738_v59 = vshrl.u32 %v6929_v28, 16  ;;  %v741_v5 = vshll.u32 %v6929_v28, 16  ;;  %v746_v9 = vshrl.u32 %v6931_v29, 16  ;;  %v749_v40 = vshll.u32 %v6931_v29, 16 }
  0xb7   : > { %1790 = vst [vmem:[#allocation3 + $0xe0] sm:$0xf] %v1664_v8  ;;  %2054 = vst [vmem:[#allocation3 + $0x68] sm:$0xf] %v1664_v8  ;;  %v5950_v17 = vld [vmem:[%s7981_s3 + $0x1e8] sm:$0xff]   ;;  %v1667_v46 = vsel %vm6299_vm11, %v1665_v45, %v1666_v26  ;;  %v395_v61 = vmax.f32 %v363_v53, 0.0 }
  0xb8   : > { %1922 = vst [vmem:[#allocation3 + $0xa4] sm:$0xf] %v1664_v8  ;;  %514 = vst [vmem:[#allocation2 + $0x74] sm:$0x1] %v513_v34  ;;  %v5927_v7 = vld [vmem:[#allocation3 + $0x50] ss:$36 sps:$4 sm:$0xff]   ;;  %5642 = vmatprep.subr.bf16.mxu1 %v5950_v17 }
  0xb9   : > { %v6951_v21 = vld [vmem:[#allocation2 + $0x54] sm:$0xf]  ;;  %v6957_v58 = vld [vmem:[#allocation2 + $0x58] sm:$0xf]  ;;  %v6959_v38 = vld [vmem:[#allocation2 + $0x5c] sm:$0x1]  ;;  %v5080_v8 = vpack.c.bf16 %v395_v61, %v395_v61  ;;  %3758 = vmatmul.mubr.bf16.gmra.mxu1 %v5927_v7 }
  0xba   : > { %1120 = vst [vmem:[#allocation3 + $0x1f8] sm:$0xf] %v6951_v21  ;;  %v1310_v2 = vshrl.u32 %v6951_v21, 16  ;;  %1828 = vst [vmem:[#allocation3 + $0x1bc] sm:$0xf] %v6951_v21  ;;  %v5953_v15 = vld [vmem:[%s7981_s3 + $0x1a8] sm:$0xff]  }
  0xbb   : > { %1960 = vst [vmem:[#allocation3 + $0x180] sm:$0xf] %v6951_v21  ;;  %1791 = vst [vmem:[#allocation3 + $0x104] sm:$0xf] %v1667_v46  ;;  %v6971_v11 = vld [vmem:[%s7979_s1] ss:$0 sm:$0xff]  ;;  %5643 = vmatpush3.bf16.msra.mxu1 %v5953_v15 }
  0xbc   : > { %2055 = vst [vmem:[#allocation3 + $0x8c] sm:$0xf] %v1667_v46  ;;  %1923 = vst [vmem:[#allocation3 + $0xc8] sm:$0xf] %v1667_v46  ;;  %v326_v44 = vmul.f32 %v6971_v11, %v5166_v16  ;;  %v1313_v4 = vshll.u32 %v6951_v21, 16  ;;  %v1319_v25 = vshll.u32 %v6957_v58, 16  ;;  %v327_v45 = vmul.f32 %v6971_v11, %v5167_v24 }
  0xbd   : > { %1121 = vst [vmem:[#allocation3 + $0x21c] sm:$0xf] %v6957_v58  ;;  %v1323_v54 = vshrl.u32 %v6957_v58, 16  ;;  %v1329_v1 = vshll.u32 %v6959_v38, 16  ;;  %1829 = vst [vmem:[#allocation3 + $0x1e0] sm:$0xf] %v6957_v58 }
  0xbe   : > { %1961 = vst [vmem:[#allocation3 + $0x1a4] sm:$0xf] %v6957_v58  ;;  %v5930_v52 = vld [vmem:[#allocation3 + $0x9c] ss:$36 sps:$4 sm:$0xff]   ;;  %v5966_v16 = vld [vmem:[%s7981_s3 + $0x1e0] sm:$0xff]   ;;  %v1312_v43 = vrot.slane %v1310_v2, 4 }
  0xbf   : > { %v740_v30 = vrot.slane %v738_v59, 7  ;;  %v748_v26 = vrot.slane %v746_v9, 7  ;;  %v989_v41 = vld [vmem:[#allocation2 + $0x60] sm:$0xf]  ;;  %v396_v28 = vmax.f32 %v364_v51, 0.0  ;;  %v1315_v19 = vrot.slane %v1313_v4, 5  ;;  %3765 = vmatprep.mubr.bf16.mxu1 %v5930_v52  ;;  %5644 = vmatprep.subr.bf16.mxu1 %v5966_v16 }
  0xc0   : > { %v5922_v29 = vld [vmem:[#allocation3 + $0x1b4] ss:$36 sps:$4 sm:$0xff]   ;;  %v6991_v10 = vld [vmem:[%s7980_s2] ss:$0 sm:$0xff]  ;;  %v1321_v34 = vrot.slane %v1319_v25, 5  ;;  %v1325_v59 = vrot.slane %v1323_v54, 4 }
  0xc1   : > { %v5926_v18 = vld [vmem:[#allocation3 + $0x1b0] ss:$36 sps:$4 sm:$0xff]   ;;  %v6994_v53 = vadd.f32 %v6991_v10, %v326_v44  ;;  %v1331_v9 = vrot.slane %v1329_v1, 5  ;;  %v743_v46 = vor.u32 %v741_v5, %v740_v30  ;;  %3636 = vmatprep.mubr.bf16.mxu0 %v5922_v29  ;;  %v1316_v51 = vor.u32 %v1315_v19, %v1312_v43  ;;  %v5935_v6 = vld [vmem:[#allocation3 + $0x98] ss:$36 sps:$4 sm:$0xff]   ;;  %v5969_v5 = vld [vmem:[%s7981_s3 + $0x1a0] sm:$0xff]  }
  0xc2   : > { %v993_v17 = vld [vmem:[#allocation2 + $0x68] sm:$0x1]  ;;  %v744_v61 = vrot.slane %v740_v30, 4  ;;  %v751_v2 = vor.u32 %v749_v40, %v748_v26  ;;  %v753_v24 = vrot.slane %v748_v26, 4  ;;  %3637 = vmatmul.mubr.bf16.gmra.mxu0 %v5926_v18  ;;  %v1326_v4 = vor.u32 %v1325_v59, %v1321_v34  ;;  %v5983_v7 = vld [vmem:[%s7981_s3 + $0x238] sm:$0xff]   ;;  %5645 = vmatpush3.bf16.msra.mxu1 %v5969_v5  ;;  %v5997_v5 = vld [vmem:[%s7981_s3 + $0x1d0] sm:$0xff]  }
  0xc3   : > { %v990_v47 = vsel %vm6344_vm14, %v743_v46, %v989_v41  ;;  %v5081_v44 = vpack.c.bf16 %v396_v28, %v396_v28  ;;  %v755_v33 = vshrl.u32 %v5080_v8, 16  ;;  %v1317_v25 = vrot.slane %v1316_v51, 4  ;;  %v5940_v1 = vld [vmem:[#allocation3 + $0xe4] ss:$36 sps:$4 sm:$0xff]   ;;  %v996_v52 = vld [vmem:[#allocation2 + $0x6c] sm:$0xf]  ;;  %5774 = vmatprep.subr.bf16.mxu0 %v5983_v7  ;;  %3766 = vmatmul.mubr.bf16.gmra.mxu1 %v5935_v6 }
  0xc4   : > { %v752_v40 = vsel %vm6334_vm13, %v744_v61, %v751_v2  ;;  %991 = vst [vmem:[#allocation2 + $0x60] sm:$0xf] %v990_v47  ;;  %v994_v54 = vsel %vm6280_vm8, %v753_v24, %v993_v17  ;;  %v366_v15 = vadd.f32 %v6991_v10, %v327_v45  ;;  %v5982_v43 = vld [vmem:[%s7981_s3 + $0x1d8] sm:$0xff]   ;;  %v1327_v30 = vrot.slane %v1326_v4, 4  ;;  %v515_v47 = vld [vmem:[#allocation2 + $0x80] sm:$0x1]  ;;  %3773 = vmatprep.mubr.bf16.mxu1 %v5940_v1 }
  0xc5   : > { %992 = vst [vmem:[#allocation2 + $0x64] sm:$0xf] %v752_v40  ;;  %995 = vst [vmem:[#allocation2 + $0x68] sm:$0x1] %v994_v54  ;;  %v757_v26 = vrot.slane %v755_v33, 7  ;;  %v758_v41 = vshll.u32 %v5080_v8, 16  ;;  %v1322_v18 = vsel %vm6270_vm5, %v1317_v25, %v1321_v34  ;;  %5646 = vmatprep.subr.bf16.mxu1 %v5982_v43 }
  0xc6   : > { %v763_v28 = vshrl.u32 %v5081_v44, 16  ;;  %v465_v29 = vld [vmem:[#allocation2 + $0x78] sm:$0x1]  ;;  %v766_v19 = vshll.u32 %v5081_v44, 16  ;;  %v4798_v45 = vrot.slane %v6737_v12, 9  ;;  %v1670_v16 = vrot.slane %v6750_v57, 5 }
  0xc7   : > { %v5986_v59 = vld [vmem:[%s7981_s3 + $0x198] sm:$0xff]   ;;  %v1332_v33 = vsel %vm6270_vm5, %v1327_v30, %v1331_v9  ;;  %1571 = vst [vmem:[#allocation3 + $0x1fc] sm:$0xf] %v1322_v18  ;;  %1886 = vst [vmem:[#allocation3 + $0x1c0] sm:$0xf] %v1322_v18  ;;  %v760_v8 = vor.u32 %v758_v41, %v757_v26  ;;  %v761_v46 = vrot.slane %v757_v26, 4  ;;  %v7997_v41 = vunpack.c.l.bf16 %v6942_v3 }
  0xc8   : > { %2018 = vst [vmem:[#allocation3 + $0x184] sm:$0xf] %v1322_v18  ;;  %v765_v17 = vrot.slane %v763_v28, 7  ;;  %1572 = vst [vmem:[#allocation3 + $0x220] sm:$0xf] %v1332_v33  ;;  %v1671_v57 = vsel %vm6299_vm11, %v4798_v45, %v1670_v16  ;;  %v1672_v34 = vrot.slane %v1670_v16, 4  ;;  %5647 = vmatpush3.bf16.msra.mxu1 %v5986_v59 }
  0xc9   : > { %1887 = vst [vmem:[#allocation3 + $0x1e4] sm:$0xf] %v1332_v33  ;;  %2019 = vst [vmem:[#allocation3 + $0x1a8] sm:$0xf] %v1332_v33  ;;  %v1000_v12 = vld [vmem:[#allocation2 + $0x74] sm:$0x1]  ;;  %v997_v24 = vsel %vm6344_vm14, %v760_v8, %v996_v52  ;;  %5648 = vmatprep.subr.bf16.mxu1 %v5997_v5 }
  0xca   : > { %v1673_v51 = vrot.slane %v6752_v27, 5  ;;  %v397_v61 = vmax.f32 %v6994_v53, 0.0  ;;  %v768_v9 = vor.u32 %v766_v19, %v765_v17  ;;  %v770_v2 = vrot.slane %v765_v17, 4  ;;  %1792 = vst [vmem:[#allocation3 + $0x128] sm:$0xf] %v1671_v57  ;;  %v6001_v33 = vld [vmem:[%s7981_s3 + $0x190] sm:$0xff]  }
  0xcb   : > { %1924 = vst [vmem:[#allocation3 + $0xec] sm:$0xf] %v1671_v57  ;;  %2056 = vst [vmem:[#allocation3 + $0xb0] sm:$0xf] %v1671_v57  ;;  %v398_v4 = vmax.f32 %v366_v15, 0.0  ;;  %v466_v27 = vsel %vm6280_vm8, 0, %v465_v29 }
  0xcc   : > { %998 = vst [vmem:[#allocation2 + $0x6c] sm:$0xf] %v997_v24  ;;  %v1674_v44 = vsel %vm6299_vm11, %v1672_v34, %v1673_v51  ;;  %v516_v6 = vsel %vm6289_vm10, 0, %v515_v47  ;;  %v7033_v53 = vpack.c.bf16 %v397_v61, %v397_v61  ;;  %v7038_v7 = vld [vmem:[#allocation2 + $0x60] sm:$0xf]  ;;  %v769_v40 = vsel %vm6334_vm13, %v761_v46, %v768_v9  ;;  %5649 = vmatpush3.bf16.msra.mxu1 %v6001_v33  ;;  %v6012_v24 = vld [vmem:[%s7981_s3 + $0x1c8] sm:$0xff]  }
  0xcd   : > { %v5943_v25 = vld [vmem:[#allocation3 + $0xe0] ss:$36 sps:$4 sm:$0xff]   ;;  %v1001_v54 = vsel %vm6280_vm8, %v770_v2, %v1000_v12  ;;  %1793 = vst [vmem:[#allocation3 + $0x14c] sm:$0xf] %v1674_v44  ;;  %1925 = vst [vmem:[#allocation3 + $0x110] sm:$0xf] %v1674_v44  ;;  %v5083_v1 = vpack.c.bf16 %v398_v4, %v398_v4  ;;  %v7998_v12 = vunpack.c.h.bf16 %v6942_v3  ;;  %5650 = vmatprep.subr.bf16.mxu1 %v6012_v24 }
  0xce   : > { %2057 = vst [vmem:[#allocation3 + $0xd4] sm:$0xf] %v1674_v44  ;;  %467 = vst [vmem:[#allocation2 + $0x78] sm:$0x1] %v466_v27  ;;  %v4799_v52 = vrot.slane %v6797_v20, 9  ;;  %v1334_v30 = vshrl.u32 %v7038_v7, 16  ;;  %v328_v20 = vmul.f32 %v6971_v11, %v7997_v41  ;;  %3774 = vmatmul.mubr.bf16.gmra.mxu1 %v5943_v25 }
  0xcf   : > { %517 = vst [vmem:[#allocation2 + $0x80] sm:$0x1] %v516_v6  ;;  %v7045_v15 = vld [vmem:[#allocation2 + $0x64] sm:$0xf]  ;;  %v7047_v43 = vld [vmem:[#allocation2 + $0x68] sm:$0x1]  ;;  %v329_v57 = vmul.f32 %v6971_v11, %v7998_v12 }
  0xd0   : > { %1122 = vst [vmem:[#allocation3 + $0x240] sm:$0xf] %v7038_v7  ;;  %v1337_v26 = vshll.u32 %v7038_v7, 16  ;;  %1830 = vst [vmem:[#allocation3 + $0x204] sm:$0xf] %v7038_v7  ;;  %v1343_v28 = vshll.u32 %v7045_v15, 16  ;;  %v7072_v34 = vadd.f32 %v6991_v10, %v328_v20 }
  0xd1   : > { %1962 = vst [vmem:[#allocation3 + $0x1c8] sm:$0xf] %v7038_v7  ;;  %999 = vst [vmem:[#allocation2 + $0x70] sm:$0xf] %v769_v40  ;;  %v1347_v29 = vshrl.u32 %v7045_v15, 16  ;;  %v1353_v47 = vshll.u32 %v7047_v43, 16 }
  0xd2   : > { %1002 = vst [vmem:[#allocation2 + $0x74] sm:$0x1] %v1001_v54  ;;  %1123 = vst [vmem:[#allocation3 + $0x264] sm:$0xf] %v7045_v15  ;;  %v772_v18 = vshrl.u32 %v7033_v53, 16  ;;  %v1336_v19 = vrot.slane %v1334_v30, 4 }
  0xd3   : > { %1831 = vst [vmem:[#allocation3 + $0x228] sm:$0xf] %v7045_v15  ;;  %1963 = vst [vmem:[#allocation3 + $0x1ec] sm:$0xf] %v7045_v15  ;;  %v1339_v45 = vrot.slane %v1337_v26, 5  ;;  %v775_v16 = vshll.u32 %v7033_v53, 16 }
  0xd4   : > { %v780_v59 = vshrl.u32 %v5083_v1, 16  ;;  %v5928_v8 = vld [vmem:[#allocation3 + $0x1fc] ss:$36 sps:$4 sm:$0xff]   ;;  %v1345_v17 = vrot.slane %v1343_v28, 5  ;;  %v1349_v61 = vrot.slane %v1347_v29, 4  ;;  %v1355_v9 = vrot.slane %v1353_v47, 5 }
  0xd5   : > { %v5934_v46 = vld [vmem:[#allocation3 + $0x1f8] ss:$36 sps:$4 sm:$0xff]   ;;  %v1340_v51 = vor.u32 %v1339_v45, %v1336_v19  ;;  %v774_v2 = vrot.slane %v772_v18, 7  ;;  %3644 = vmatprep.mubr.bf16.mxu0 %v5928_v8  ;;  %v7077_v4 = vld [vmem:[#allocation2 + $0x6c] sm:$0xf]  ;;  %v783_v3 = vshll.u32 %v5083_v1, 16  ;;  %v7093_v28 = vadd.f32 %v6991_v10, %v329_v57 }
  0xd6   : > { %v782_v44 = vrot.slane %v780_v59, 7  ;;  %v1677_v27 = vrot.slane %v6806_v31, 5  ;;  %v1680_v6 = vrot.slane %v6808_v39, 5  ;;  %3645 = vmatmul.mubr.bf16.gmra.mxu0 %v5934_v46  ;;  %v1350_v5 = vor.u32 %v1349_v61, %v1345_v17  ;;  %1124 = vst [vmem:[#allocation3 + $0x288] sm:$0xf] %v7077_v4 }
  0xd7   : > { %v1341_v53 = vrot.slane %v1340_v51, 4  ;;  %v1358_v40 = vshrl.u32 %v7077_v4, 16  ;;  %v1361_v54 = vshll.u32 %v7077_v4, 16  ;;  %1832 = vst [vmem:[#allocation3 + $0x24c] sm:$0xf] %v7077_v4  ;;  %v777_v26 = vor.u32 %v775_v16, %v774_v2 }
  0xd8   : > { %1964 = vst [vmem:[#allocation3 + $0x210] sm:$0xf] %v7077_v4  ;;  %v5948_v25 = vld [vmem:[#allocation3 + $0x12c] ss:$36 sps:$4 sm:$0xff]   ;;  %v7086_v1 = vld [vmem:[#allocation2 + $0x70] sm:$0xf]  ;;  %v785_v41 = vor.u32 %v783_v3, %v782_v44  ;;  %v1678_v20 = vsel %vm6299_vm11, %v4799_v52, %v1677_v27 }
  0xd9   : > { %v7088_v31 = vld [vmem:[#allocation2 + $0x74] sm:$0x1]  ;;  %v5952_v30 = vld [vmem:[#allocation3 + $0x128] ss:$36 sps:$4 sm:$0xff]   ;;  %v1346_v29 = vsel %vm6270_vm5, %v1341_v53, %v1345_v17  ;;  %v1351_v47 = vrot.slane %v1350_v5, 4  ;;  %v1360_v18 = vrot.slane %v1358_v40, 4  ;;  %3781 = vmatprep.mubr.bf16.mxu1 %v5948_v25 }
  0xda   : > { %1125 = vst [vmem:[#allocation3 + $0x2ac] sm:$0xf] %v7086_v1  ;;  %v1363_v19 = vrot.slane %v1361_v54, 5  ;;  %1833 = vst [vmem:[#allocation3 + $0x270] sm:$0xf] %v7086_v1  ;;  %v1367_v16 = vshll.u32 %v7086_v1, 16  ;;  %3782 = vmatmul.mubr.bf16.gmra.mxu1 %v5952_v30 }
  0xdb   : > { %1965 = vst [vmem:[#allocation3 + $0x234] sm:$0xf] %v7086_v1  ;;  %v1003_v45 = vld [vmem:[#allocation2 + $0x78] sm:$0xf]  ;;  %1794 = vst [vmem:[#allocation3 + $0x170] sm:$0xf] %v1678_v20  ;;  %v1356_v17 = vsel %vm6270_vm5, %v1351_v47, %v1355_v9 }
  0xdc   : > { %1926 = vst [vmem:[#allocation3 + $0x134] sm:$0xf] %v1678_v20  ;;  %2058 = vst [vmem:[#allocation3 + $0xf8] sm:$0xf] %v1678_v20  ;;  %v468_v52 = vld [vmem:[#allocation2 + $0x84] sm:$0x1]  ;;  %v1364_v12 = vor.u32 %v1363_v19, %v1360_v18  ;;  %v1004_v51 = vsel %vm6344_vm14, %v777_v26, %v1003_v45 }
  0xdd   : > { %1573 = vst [vmem:[#allocation3 + $0x244] sm:$0xf] %v1346_v29  ;;  %1888 = vst [vmem:[#allocation3 + $0x208] sm:$0xf] %v1346_v29  ;;  %v1371_v59 = vshrl.u32 %v7086_v1, 16  ;;  %v1377_v33 = vshll.u32 %v7088_v31, 16 }
  0xde   : > { %2020 = vst [vmem:[#allocation3 + $0x1cc] sm:$0xf] %v1346_v29  ;;  %v778_v8 = vrot.slane %v774_v2, 4  ;;  %v1007_v46 = vld [vmem:[#allocation2 + $0x80] sm:$0x1]  ;;  %v787_v57 = vrot.slane %v782_v44, 4 }
  0xdf   : > { %v518_v61 = vld [vmem:[#allocation2 + $0x8c] sm:$0x1]  ;;  %1574 = vst [vmem:[#allocation3 + $0x268] sm:$0xf] %v1356_v17  ;;  %1889 = vst [vmem:[#allocation3 + $0x22c] sm:$0xf] %v1356_v17 }
  0xe0   : > { %2021 = vst [vmem:[#allocation3 + $0x1f0] sm:$0xf] %v1356_v17  ;;  %v1369_v24 = vrot.slane %v1367_v16, 5  ;;  %v1373_v3 = vrot.slane %v1371_v59, 4  ;;  %v1379_v53 = vrot.slane %v1377_v33, 5  ;;  %v786_v5 = vsel %vm6334_vm13, %v778_v8, %v785_v41  ;;  %v6016_v9 = vld [vmem:[%s7981_s3 + $0x188] sm:$0xff]  }
  0xe1   : > { %1005 = vst [vmem:[#allocation2 + $0x78] sm:$0xf] %v1004_v51  ;;  %v1365_v2 = vrot.slane %v1364_v12, 4  ;;  %1006 = vst [vmem:[#allocation2 + $0x7c] sm:$0xf] %v786_v5  ;;  %v1008_v44 = vsel %vm6280_vm8, %v787_v57, %v1007_v46  ;;  %v1679_v40 = vrot.slane %v1677_v27, 4  ;;  %5651 = vmatpush3.bf16.msra.mxu1 %v6016_v9 }
  0xe2   : > { %v399_v54 = vmax.f32 %v7072_v34, 0.0  ;;  %v6027_v25 = vld [vmem:[%s7981_s3 + $0x1c0] sm:$0xff]   ;;  %v1374_v26 = vor.u32 %v1373_v3, %v1369_v24  ;;  %1009 = vst [vmem:[#allocation2 + $0x80] sm:$0x1] %v1008_v44  ;;  %v400_v41 = vmax.f32 %v7093_v28, 0.0  ;;  %v469_v20 = vsel %vm6280_vm8, 0, %v468_v52 }
  0xe3   : > { %v519_v29 = vsel %vm6289_vm10, 0, %v518_v61  ;;  %v1370_v27 = vsel %vm6270_vm5, %v1365_v2, %v1369_v24  ;;  %v1681_v34 = vsel %vm6299_vm11, %v1679_v40, %v1680_v6  ;;  %470 = vst [vmem:[#allocation2 + $0x84] sm:$0x1] %v469_v20  ;;  %v4800_v47 = vrot.slane %v6850_v50, 9  ;;  %v6031_v28 = vld [vmem:[%s7981_s3 + $0x180] sm:$0xff]   ;;  %5652 = vmatprep.subr.bf16.mxu1 %v6027_v25 }
  0xe4   : > { %520 = vst [vmem:[#allocation2 + $0x8c] sm:$0x1] %v519_v29  ;;  %v5084_v30 = vpack.c.bf16 %v399_v54, %v399_v54  ;;  %v1375_v18 = vrot.slane %v1374_v26, 4  ;;  %1575 = vst [vmem:[#allocation3 + $0x28c] sm:$0xf] %v1370_v27  ;;  %v5085_v39 = vpack.c.bf16 %v400_v41, %v400_v41  ;;  %v1684_v6 = vrot.slane %v6871_v62, 5 }
  0xe5   : > { %1890 = vst [vmem:[#allocation3 + $0x250] sm:$0xf] %v1370_v27  ;;  %2022 = vst [vmem:[#allocation3 + $0x214] sm:$0xf] %v1370_v27  ;;  %v1687_v19 = vrot.slane %v6873_v0, 5  ;;  %v4801_v52 = vrot.slane %v6951_v21, 9  ;;  %5653 = vmatpush3.bf16.msra.mxu1 %v6031_v28 }
  0xe6   : > { %1795 = vst [vmem:[#allocation3 + $0x194] sm:$0xf] %v1681_v34  ;;  %1927 = vst [vmem:[#allocation3 + $0x158] sm:$0xf] %v1681_v34  ;;  %v789_v45 = vshrl.u32 %v5084_v30, 16  ;;  %v792_v50 = vshll.u32 %v5084_v30, 16  ;;  %v1380_v59 = vsel %vm6270_vm5, %v1375_v18, %v1379_v53  ;;  %v1685_v46 = vsel %vm6299_vm11, %v4800_v47, %v1684_v6 }
  0xe7   : > { %2059 = vst [vmem:[#allocation3 + $0x11c] sm:$0xf] %v1681_v34  ;;  %v1691_v16 = vrot.slane %v6957_v58, 5  ;;  %v797_v33 = vshrl.u32 %v5085_v39, 16  ;;  %v800_v8 = vshll.u32 %v5085_v39, 16  ;;  %v1686_v51 = vrot.slane %v1684_v6, 4 }
  0xe8   : > { %v5938_v17 = vld [vmem:[#allocation3 + $0x244] ss:$36 sps:$4 sm:$0xff]   ;;  %1576 = vst [vmem:[#allocation3 + $0x2b0] sm:$0xf] %v1380_v59  ;;  %1891 = vst [vmem:[#allocation3 + $0x274] sm:$0xf] %v1380_v59 }
  0xe9   : > { %v5942_v12 = vld [vmem:[#allocation3 + $0x240] ss:$36 sps:$4 sm:$0xff]   ;;  %2023 = vst [vmem:[#allocation3 + $0x238] sm:$0xf] %v1380_v59  ;;  %v791_v62 = vrot.slane %v789_v45, 7  ;;  %v1692_v0 = vsel %vm6299_vm11, %v4801_v52, %v1691_v16  ;;  %v799_v57 = vrot.slane %v797_v33, 7  ;;  %3652 = vmatprep.mubr.bf16.mxu0 %v5938_v17  ;;  %v1688_v45 = vsel %vm6299_vm11, %v1686_v51, %v1687_v19 }
  0xea   : > { %1796 = vst [vmem:[#allocation3 + $0x1b8] sm:$0xf] %v1685_v46  ;;  %1928 = vst [vmem:[#allocation3 + $0x17c] sm:$0xf] %v1685_v46  ;;  %v7143_v21 = vld [vmem:[#allocation2 + $0x78] sm:$0xf]  ;;  %3653 = vmatmul.mubr.bf16.gmra.mxu0 %v5942_v12 }
  0xeb   : > { %2060 = vst [vmem:[#allocation3 + $0x140] sm:$0xf] %v1685_v46  ;;  %v7145_v58 = vld [vmem:[#allocation2 + $0x7c] sm:$0xf]  ;;  %1798 = vst [vmem:[#allocation3 + $0x200] sm:$0xf] %v1692_v0  ;;  %v794_v2 = vor.u32 %v792_v50, %v791_v62  ;;  %v802_v40 = vor.u32 %v800_v8, %v799_v57 }
  0xec   : > { %1930 = vst [vmem:[#allocation3 + $0x1c4] sm:$0xf] %v1692_v0  ;;  %2062 = vst [vmem:[#allocation3 + $0x188] sm:$0xf] %v1692_v0  ;;  %v7147_v61 = vld [vmem:[#allocation2 + $0x80] sm:$0x1] }
  0xed   : > { %1126 = vst [vmem:[#allocation3 + $0x2d0] sm:$0xf] %v7143_v21  ;;  %1127 = vst [vmem:[#allocation3 + $0x2f4] sm:$0xf] %v7145_v58  ;;  %v1382_v24 = vshrl.u32 %v7143_v21, 16  ;;  %v1385_v3 = vshll.u32 %v7143_v21, 16 }
  0xee   : > { %v1391_v53 = vshll.u32 %v7145_v58, 16  ;;  %v1395_v5 = vshrl.u32 %v7145_v58, 16  ;;  %1834 = vst [vmem:[#allocation3 + $0x294] sm:$0xf] %v7143_v21  ;;  %1835 = vst [vmem:[#allocation3 + $0x2b8] sm:$0xf] %v7145_v58 }
  0xef   : > { %1966 = vst [vmem:[#allocation3 + $0x258] sm:$0xf] %v7143_v21  ;;  %1967 = vst [vmem:[#allocation3 + $0x27c] sm:$0xf] %v7145_v58  ;;  %v1401_v9 = vshll.u32 %v7147_v61, 16  ;;  %v795_v44 = vrot.slane %v791_v62, 4 }
  0xf0   : > { %v1010_v54 = vld [vmem:[#allocation2 + $0x84] sm:$0xf]  ;;  %v1014_v25 = vld [vmem:[#allocation2 + $0x8c] sm:$0x1]  ;;  %v1384_v26 = vrot.slane %v1382_v24, 4  ;;  %v1387_v41 = vrot.slane %v1385_v3, 5 }
  0xf1   : > { %v1393_v20 = vrot.slane %v1391_v53, 5  ;;  %v1397_v29 = vrot.slane %v1395_v5, 4  ;;  %v1403_v27 = vrot.slane %v1401_v9, 5  ;;  %v5956_v34 = vld [vmem:[#allocation3 + $0x174] ss:$36 sps:$4 sm:$0xff]   ;;  %v803_v47 = vsel %vm6334_vm13, %v795_v44, %v802_v40  ;;  %v7170_v46 = vld [vmem:[%s6230_s22 + $0x78] sm:$0xff]  }
  0xf2   : > { %v5960_v30 = vld [vmem:[#allocation3 + $0x170] ss:$36 sps:$4 sm:$0xff]   ;;  %v804_v28 = vrot.slane %v799_v57, 4  ;;  %v1011_v18 = vsel %vm6344_vm14, %v794_v2, %v1010_v54  ;;  %v1388_v39 = vor.u32 %v1387_v41, %v1384_v26  ;;  %1013 = vst [vmem:[#allocation2 + $0x88] sm:$0xf] %v803_v47  ;;  %v1693_v50 = vrot.slane %v1691_v16, 4  ;;  %3789 = vmatprep.mubr.bf16.mxu1 %v5956_v34 }
  0xf3   : > { %v1398_v6 = vor.u32 %v1397_v29, %v1393_v20  ;;  %1012 = vst [vmem:[#allocation2 + $0x84] sm:$0xf] %v1011_v18  ;;  %v5946_v52 = vld [vmem:[#allocation3 + $0x28c] ss:$36 sps:$4 sm:$0xff]   ;;  %1797 = vst [vmem:[#allocation3 + $0x1dc] sm:$0xf] %v1688_v45  ;;  %3790 = vmatmul.mubr.bf16.gmra.mxu1 %v5960_v30  ;;  %v5190_v2 = vunpack.c.l.bf16 %v7170_v46 }
  0xf4   : > { %v5951_v59 = vld [vmem:[#allocation3 + $0x288] ss:$36 sps:$4 sm:$0xff]   ;;  %v1015_v33 = vsel %vm6280_vm8, %v804_v28, %v1014_v25  ;;  %1929 = vst [vmem:[#allocation3 + $0x1a0] sm:$0xf] %v1688_v45  ;;  %2061 = vst [vmem:[#allocation3 + $0x164] sm:$0xf] %v1688_v45  ;;  %3660 = vmatprep.mubr.bf16.mxu0 %v5946_v52 }
  0xf5   : > { %v1694_v8 = vrot.slane %v6959_v38, 5  ;;  %v1389_v17 = vrot.slane %v1388_v39, 4  ;;  %v1399_v12 = vrot.slane %v1398_v6, 4  ;;  %1016 = vst [vmem:[#allocation2 + $0x8c] sm:$0x1] %v1015_v33  ;;  %v4802_v19 = vrot.slane %v7038_v7, 9  ;;  %3661 = vmatmul.mubr.bf16.gmra.mxu0 %v5951_v59 }
  0xf6   : > { %v1698_v16 = vrot.slane %v7045_v15, 5  ;;  %v1701_v0 = vrot.slane %v7047_v43, 5  ;;  %v4803_v57 = vrot.slane %v7077_v4, 9  ;;  %v1705_v38 = vrot.slane %v7086_v1, 5  ;;  %v5972_v6 = vld [vmem:[#allocation3 + $0x204] ss:$36 sps:$4 sm:$0xff]  }
  0xf7   : > { %v1695_v62 = vsel %vm6299_vm11, %v1693_v50, %v1694_v8  ;;  %v1394_v51 = vsel %vm6270_vm5, %v1389_v17, %v1393_v20  ;;  %v1404_v24 = vsel %vm6270_vm5, %v1399_v12, %v1403_v27  ;;  %v1708_v1 = vrot.slane %v7088_v31, 5  ;;  %v5964_v20 = vld [vmem:[#allocation3 + $0x1bc] ss:$36 sps:$4 sm:$0xff]   ;;  %v5959_v12 = vld [vmem:[#allocation3 + $0x2d0] ss:$36 sps:$4 sm:$0xff]  }
  0xf8   : > { %1799 = vst [vmem:[#allocation3 + $0x224] sm:$0xf] %v1695_v62  ;;  %1931 = vst [vmem:[#allocation3 + $0x1e8] sm:$0xf] %v1695_v62  ;;  %v1699_v7 = vsel %vm6299_vm11, %v4802_v19, %v1698_v16  ;;  %v1700_v15 = vrot.slane %v1698_v16, 4  ;;  %v1706_v43 = vsel %vm6299_vm11, %v4803_v57, %v1705_v38  ;;  %v1707_v4 = vrot.slane %v1705_v38, 4  ;;  %3797 = vmatprep.mubr.bf16.mxu1 %v5964_v20 }
  0xf9   : > { %2063 = vst [vmem:[#allocation3 + $0x1ac] sm:$0xf] %v1695_v62  ;;  %1577 = vst [vmem:[#allocation3 + $0x2d4] sm:$0xf] %v1394_v51  ;;  %v4804_v3 = vrot.slane %v7143_v21, 9  ;;  %v1712_v5 = vrot.slane %v7145_v58, 5  ;;  %v5191_v58 = vunpack.c.h.bf16 %v7170_v46  ;;  %v338_v50 = vmul.f32 %v6971_v11, %v5190_v2 }
  0xfa   : > { %1578 = vst [vmem:[#allocation3 + $0x2f8] sm:$0xf] %v1404_v24  ;;  %1892 = vst [vmem:[#allocation3 + $0x298] sm:$0xf] %v1394_v51  ;;  %v1702_v53 = vsel %vm6299_vm11, %v1700_v15, %v1701_v0  ;;  %v4806_v9 = vrot.slane %v6411_v55, 9  ;;  %v1709_v31 = vsel %vm6299_vm11, %v1707_v4, %v1708_v1  ;;  %v1715_v21 = vrot.slane %v7147_v61, 5 }
  0xfb   : > { %1893 = vst [vmem:[#allocation3 + $0x2bc] sm:$0xf] %v1404_v24  ;;  %2024 = vst [vmem:[#allocation3 + $0x25c] sm:$0xf] %v1394_v51  ;;  %v7194_v44 = vld [vmem:[#allocation2 + $0x84] sm:$0xf]  ;;  %v1713_v27 = vsel %vm6299_vm11, %v4804_v3, %v1712_v5  ;;  %v339_v52 = vmul.f32 %v6971_v11, %v5191_v58  ;;  %v377_v51 = vadd.f32 %v6991_v10, %v338_v50 }
  0xfc   : > { %2025 = vst [vmem:[#allocation3 + $0x280] sm:$0xf] %v1404_v24  ;;  %1800 = vst [vmem:[#allocation3 + $0x248] sm:$0xf] %v1699_v7  ;;  %v7196_v40 = vld [vmem:[#allocation2 + $0x88] sm:$0xf] }
  0xfd   : > { %1932 = vst [vmem:[#allocation3 + $0x20c] sm:$0xf] %v1699_v7  ;;  %2064 = vst [vmem:[#allocation3 + $0x1d0] sm:$0xf] %v1699_v7  ;;  %v1726_v54 = vrot.slane %v6414_v60, 5  ;;  %v1406_v55 = vshrl.u32 %v7194_v44, 16  ;;  %v378_v24 = vadd.f32 %v6991_v10, %v339_v52 }
  0xfe   : > { %1802 = vst [vmem:[#allocation3 + $0x290] sm:$0xf] %v1706_v43  ;;  %1934 = vst [vmem:[#allocation3 + $0x254] sm:$0xf] %v1706_v43  ;;  %v1409_v25 = vshll.u32 %v7194_v44, 16  ;;  %v1415_v26 = vshll.u32 %v7196_v40, 16 }
  0xff   : > { %2066 = vst [vmem:[#allocation3 + $0x218] sm:$0xf] %v1706_v43  ;;  %1801 = vst [vmem:[#allocation3 + $0x26c] sm:$0xf] %v1702_v53  ;;  %v1419_v41 = vshrl.u32 %v7196_v40, 16  ;;  %v1727_v34 = vsel %vm6299_vm11, %v4806_v9, %v1726_v54  ;;  %v1408_v30 = vrot.slane %v1406_v55, 4 }
 0x100   : > { %1933 = vst [vmem:[#allocation3 + $0x230] sm:$0xf] %v1702_v53  ;;  %2065 = vst [vmem:[#allocation3 + $0x1f4] sm:$0xf] %v1702_v53  ;;  %v1087_v61 = vld [vmem:[#allocation2 + $0x8c] sm:$0x1] }
 0x101   : > { %1128 = vst [vmem:[#allocation3 + $0x318] sm:$0xf] %v7194_v44  ;;  %1129 = vst [vmem:[#allocation3 + $0x33c] sm:$0xf] %v7196_v40  ;;  %v5968_v29 = vld [vmem:[#allocation3 + $0x1b8] ss:$36 sps:$4 sm:$0xff]  }
 0x102   : > { %1836 = vst [vmem:[#allocation3 + $0x2dc] sm:$0xf] %v7194_v44  ;;  %1837 = vst [vmem:[#allocation3 + $0x300] sm:$0xf] %v7196_v40  ;;  %v1411_v47 = vrot.slane %v1409_v25, 5  ;;  %v1417_v28 = vrot.slane %v1415_v26, 5  ;;  %3798 = vmatmul.mubr.bf16.gmra.mxu1 %v5968_v29 }
 0x103   : > { %1968 = vst [vmem:[#allocation3 + $0x2a0] sm:$0xf] %v7194_v44  ;;  %1969 = vst [vmem:[#allocation3 + $0x2c4] sm:$0xf] %v7196_v40  ;;  %v1421_v18 = vrot.slane %v1419_v41, 4  ;;  %v1425_v39 = vshll.u32 %v1087_v61, 16  ;;  %3805 = vmatprep.mubr.bf16.mxu1 %v5972_v6 }
 0x104   : > { %1803 = vst [vmem:[#allocation3 + $0x2b4] sm:$0xf] %v1709_v31  ;;  %1935 = vst [vmem:[#allocation3 + $0x278] sm:$0xf] %v1709_v31  ;;  %v4807_v45 = vrot.slane %v6504_v14, 9  ;;  %v1412_v33 = vor.u32 %v1411_v47, %v1408_v30  ;;  %v1714_v46 = vrot.slane %v1712_v5, 4 }
 0x105   : > { %2067 = vst [vmem:[#allocation3 + $0x23c] sm:$0xf] %v1709_v31  ;;  %1804 = vst [vmem:[#allocation3 + $0x2d8] sm:$0xf] %v1713_v27  ;;  %v5954_v59 = vld [vmem:[#allocation3 + $0x2d4] ss:$36 sps:$4 sm:$0xff]   ;;  %v1422_v8 = vor.u32 %v1421_v18, %v1417_v28 }
 0x106   : > { %1936 = vst [vmem:[#allocation3 + $0x29c] sm:$0xf] %v1713_v27  ;;  %2068 = vst [vmem:[#allocation3 + $0x260] sm:$0xf] %v1713_v27  ;;  %v4805_v17 = vrot.slane %v7194_v44, 9  ;;  %v1427_v19 = vrot.slane %v1425_v39, 5  ;;  %3668 = vmatprep.mubr.bf16.mxu0 %v5954_v59  ;;  %v1716_v14 = vsel %vm6299_vm11, %v1714_v46, %v1715_v21 }
 0x107   : > { %1808 = vst [vmem:[#allocation3 + $0x368] sm:$0xf] %v1727_v34  ;;  %1940 = vst [vmem:[#allocation3 + $0x32c] sm:$0xf] %v1727_v34  ;;  %v1719_v16 = vrot.slane %v7196_v40, 5  ;;  %v1413_v62 = vrot.slane %v1412_v33, 4  ;;  %3669 = vmatmul.mubr.bf16.gmra.mxu0 %v5959_v12 }
 0x108   : > { %2072 = vst [vmem:[#allocation3 + $0x2f0] sm:$0xf] %v1727_v34  ;;  %v1423_v0 = vrot.slane %v1422_v8, 4  ;;  %v1722_v57 = vrot.slane %v1087_v61, 5  ;;  %1805 = vst [vmem:[#allocation3 + $0x2fc] sm:$0xf] %v1716_v14 }
 0x109   : > { %1937 = vst [vmem:[#allocation3 + $0x2c0] sm:$0xf] %v1716_v14  ;;  %2069 = vst [vmem:[#allocation3 + $0x284] sm:$0xf] %v1716_v14  ;;  %v1720_v11 = vsel %vm6299_vm11, %v4805_v17, %v1719_v16  ;;  %v1721_v38 = vrot.slane %v1719_v16, 4  ;;  %v1418_v7 = vsel %vm6270_vm5, %v1413_v62, %v1417_v28  ;;  %v1728_v1 = vrot.slane %v1726_v54, 4 }
 0x10a   : > { %v1428_v15 = vsel %vm6270_vm5, %v1423_v0, %v1427_v19  ;;  %v5977_v43 = vld [vmem:[#allocation3 + $0x200] ss:$36 sps:$4 sm:$0xff]   ;;  %v5978_v4 = vld [vmem:[#allocation3 + $0x24c] ss:$36 sps:$4 sm:$0xff]   ;;  %1806 = vst [vmem:[#allocation3 + $0x320] sm:$0xf] %v1720_v11 }
 0x10b   : > { %1938 = vst [vmem:[#allocation3 + $0x2e4] sm:$0xf] %v1720_v11  ;;  %2070 = vst [vmem:[#allocation3 + $0x2a8] sm:$0xf] %v1720_v11  ;;  %v1733_v3 = vrot.slane %v6527_v22, 5  ;;  %v1723_v10 = vsel %vm6299_vm11, %v1721_v38, %v1722_v57  ;;  %v4808_v9 = vrot.slane %v6665_v48, 9  ;;  %3806 = vmatmul.mubr.bf16.gmra.mxu1 %v5977_v43 }
 0x10c   : > { %1579 = vst [vmem:[#allocation3 + $0x31c] sm:$0xf] %v1418_v7  ;;  %1580 = vst [vmem:[#allocation3 + $0x340] sm:$0xf] %v1428_v15  ;;  %v6134_v53 = vld [vmem:[#allocation2 + $0xa4] sm:$0x1]  ;;  %3813 = vmatprep.mubr.bf16.mxu1 %v5978_v4 }
 0x10d   : > { %1894 = vst [vmem:[#allocation3 + $0x2e0] sm:$0xf] %v1418_v7  ;;  %1895 = vst [vmem:[#allocation3 + $0x304] sm:$0xf] %v1428_v15  ;;  %v1736_v5 = vrot.slane %v6134_v53, 5  ;;  %v1740_v2 = vrot.slane %v6675_v13, 5  ;;  %v1734_v44 = vsel %vm6299_vm11, %v4807_v45, %v1733_v3  ;;  %v5318_v53 = vpop.f32.mrf.mxu0 }
 0x10e   : > { %2026 = vst [vmem:[#allocation3 + $0x2a4] sm:$0xf] %v1418_v7  ;;  %2027 = vst [vmem:[#allocation3 + $0x2c8] sm:$0xf] %v1428_v15  ;;  %v7999_v60 = vrot.slane %v6420_v63, 5  ;;  %v1735_v40 = vrot.slane %v1733_v3, 4 }
 0x10f   : > { %1807 = vst [vmem:[#allocation3 + $0x344] sm:$0xf] %v1723_v10  ;;  %1939 = vst [vmem:[#allocation3 + $0x308] sm:$0xf] %v1723_v10  ;;  %v6135_v31 = vld [vmem:[#allocation2 + $0xb0] sm:$0x1]  ;;  %v1741_v48 = vsel %vm6299_vm11, %v4808_v9, %v1740_v2 }
 0x110   : > { %2071 = vst [vmem:[#allocation3 + $0x2cc] sm:$0xf] %v1723_v10  ;;  %v1730_v22 = vsel %vm6299_vm11, %v1728_v1, %v7999_v60  ;;  %v1743_v21 = vrot.slane %v6135_v31, 5  ;;  %1810 = vst [vmem:[#allocation3 + $0x3b0] sm:$0xf] %v1734_v44  ;;  %v1742_v13 = vrot.slane %v1740_v2, 4  ;;  %v1737_v54 = vsel %vm6299_vm11, %v1735_v40, %v1736_v5 }
 0x111   : > { %1809 = vst [vmem:[#allocation3 + $0x38c] sm:$0xf] %v1730_v22  ;;  %1941 = vst [vmem:[#allocation3 + $0x350] sm:$0xf] %v1730_v22  ;;  %v409_v63 = vmax.f32 %v377_v51, 0.0  ;;  %v410_v41 = vmax.f32 %v378_v24, 0.0 }
 0x112   : > { %2073 = vst [vmem:[#allocation3 + $0x314] sm:$0xf] %v1730_v22  ;;  %1942 = vst [vmem:[#allocation3 + $0x374] sm:$0xf] %v1734_v44  ;;  %v1744_v58 = vsel %vm6299_vm11, %v1742_v13, %v1743_v21  ;;  %v5976_v25 = vld [vmem:[#allocation3 + $0x14] ss:$36 sps:$4 sm:$0xff]   ;;  %v5319_v22 = vpop.f32.mrf.mxu0 }
 0x113   : > { %2074 = vst [vmem:[#allocation3 + $0x338] sm:$0xf] %v1734_v44  ;;  %1812 = vst [vmem:[#allocation3 + $0x3f8] sm:$0xf] %v1741_v48  ;;  %v5094_v55 = vpack.c.bf16 %v409_v63, %v409_v63  ;;  %v5984_v26 = vld [vmem:[#allocation3 + $0x248] ss:$36 sps:$4 sm:$0xff]   ;;  %v5095_v47 = vpack.c.bf16 %v410_v41, %v410_v41  ;;  %v7288_v21 = vadd.f32 %v5319_v22, %v5318_v53 }
 0x114   : > { %1944 = vst [vmem:[#allocation3 + $0x3bc] sm:$0xf] %v1741_v48  ;;  %2076 = vst [vmem:[#allocation3 + $0x380] sm:$0xf] %v1741_v48  ;;  %v5987_v61 = vld [vmem:[#allocation3 + $0x294] ss:$36 sps:$4 sm:$0xff]   ;;  %3814 = vmatmul.mubr.bf16.gmra.mxu1 %v5984_v26 }
 0x115   : > { %1811 = vst [vmem:[#allocation3 + $0x3d4] sm:$0xf] %v1737_v54  ;;  %1943 = vst [vmem:[#allocation3 + $0x398] sm:$0xf] %v1737_v54  ;;  %v483_v20 = vld [vmem:[#allocation2 + $0xc0] sm:$0x1]  ;;  %3821 = vmatprep.mubr.bf16.mxu1 %v5987_v61 }
 0x116   : > { %2075 = vst [vmem:[#allocation3 + $0x35c] sm:$0xf] %v1737_v54  ;;  %1813 = vst [vmem:[#allocation3 + $0x41c] sm:$0xf] %v1744_v58  ;;  %v874_v29 = vshrl.u32 %v5094_v55, 16  ;;  %v4809_v27 = vrot.slane %v6772_v32, 9 }
 0x117   : > { %1945 = vst [vmem:[#allocation3 + $0x3e0] sm:$0xf] %v1744_v58  ;;  %2077 = vst [vmem:[#allocation3 + $0x3a4] sm:$0xf] %v1744_v58  ;;  %v5962_v34 = vld [vmem:[#allocation3 + $0x31c] ss:$36 sps:$4 sm:$0xff]  }
 0x118   : > { %v484_v30 = vsel %vm6280_vm8, 0, %v483_v20  ;;  %v1747_v28 = vrot.slane %v6774_v37, 5  ;;  %v5967_v18 = vld [vmem:[#allocation3 + $0x318] ss:$36 sps:$4 sm:$0xff]   ;;  %v876_v39 = vrot.slane %v874_v29, 7  ;;  %v877_v6 = vshll.u32 %v5094_v55, 16  ;;  %3676 = vmatprep.mubr.bf16.mxu0 %v5962_v34 }
 0x119   : > { %485 = vst [vmem:[#allocation2 + $0xc0] sm:$0x1] %v484_v30  ;;  %v882_v45 = vshrl.u32 %v5095_v47, 16  ;;  %3677 = vmatmul.mubr.bf16.gmra.mxu0 %v5967_v18  ;;  %v885_v52 = vshll.u32 %v5095_v47, 16  ;;  %v6136_v46 = vld [vmem:[#allocation2 + $0xbc] sm:$0x1] }
 0x11a   : > { %v1748_v50 = vsel %vm6299_vm11, %v4809_v27, %v1747_v28  ;;  %3910 = vmatprep.mubr.bf16.mxu0 %v5976_v25  ;;  %v880_v32 = vrot.slane %v876_v39, 4  ;;  %v879_v37 = vor.u32 %v877_v6, %v876_v39  ;;  %v1749_v33 = vrot.slane %v1747_v28, 4  ;;  %v5974_v12 = vld [vmem:[#allocation3 + $0x10] ss:$36 sps:$4 sm:$0xff]   ;;  %v5980_v19 = vld [vmem:[#allocation3 + $0x5c] ss:$36 sps:$4 sm:$0xff]  }
 0x11b   : > { %1814 = vst [vmem:[#allocation3 + $0x440] sm:$0xf] %v1748_v50  ;;  %1946 = vst [vmem:[#allocation3 + $0x404] sm:$0xf] %v1748_v50  ;;  %v7259_v59 = vrot.slane %v882_v45, 7  ;;  %v1750_v17 = vrot.slane %v6136_v46, 5 }
 0x11c   : > { %2078 = vst [vmem:[#allocation3 + $0x3c8] sm:$0xf] %v1748_v50  ;;  %v5998_v16 = vld [vmem:[%s7981_s3 + $0x230] sm:$0xff]   ;;  %v5991_v57 = vld [vmem:[#allocation3 + $0x290] ss:$36 sps:$4 sm:$0xff]   ;;  %v6028_v15 = vld [vmem:[%s7981_s3 + $0x220] sm:$0xff]  }
 0x11d   : > { %v887_v8 = vor.u32 %v885_v52, %v7259_v59  ;;  %v1751_v14 = vsel %vm6299_vm11, %v1749_v33, %v1750_v17  ;;  %v5993_v38 = vld [vmem:[#allocation3 + $0x2dc] ss:$36 sps:$4 sm:$0xff]   ;;  %3822 = vmatmul.mubr.bf16.gmra.mxu1 %v5991_v57  ;;  %v5989_v24 = vld [vmem:[#allocation3 + $0xa4] ss:$36 sps:$4 sm:$0xff]   ;;  %v5995_v13 = vld [vmem:[#allocation3 + $0xec] ss:$36 sps:$4 sm:$0xff]  }
 0x11e   : > { %1815 = vst [vmem:[#allocation3 + $0x464] sm:$0xf] %v1751_v14  ;;  %1947 = vst [vmem:[#allocation3 + $0x428] sm:$0xf] %v1751_v14  ;;  %v5985_v51 = vld [vmem:[#allocation3 + $0x58] ss:$36 sps:$4 sm:$0xff]   ;;  %3829 = vmatprep.mubr.bf16.mxu1 %v5993_v38 }
 0x11f   : > { %v888_v62 = vsel %vm6334_vm13, %v880_v32, %v887_v8  ;;  %2079 = vst [vmem:[#allocation3 + $0x3ec] sm:$0xf] %v1751_v14  ;;  %v5999_v7 = vld [vmem:[#allocation3 + $0x2d8] ss:$36 sps:$4 sm:$0xff]   ;;  %v6002_v1 = vld [vmem:[#allocation3 + $0x324] ss:$36 sps:$4 sm:$0xff]   ;;  %v7310_v32 = vpop.f32.mrf.mxu0 }
 0x120   : > { %v1045_v0 = vld [vmem:[#allocation2 + $0xc0] sm:$0xf]  ;;  %1048 = vst [vmem:[#allocation2 + $0xc4] sm:$0xf] %v888_v62  ;;  %v6043_v60 = vld [vmem:[%s7981_s3 + $0x218] sm:$0xff]   ;;  %v6055_v55 = vld [vmem:[%s7981_s3 + $0x210] sm:$0xff]  }
 0x121   : > { %v1046_v11 = vsel %vm6344_vm14, %v879_v37, %v1045_v0  ;;  %3911 = vmatmul.mubr.bf16.vlgmr.msra.gmra.mxu0 %v5974_v12  ;;  %v5992_v31 = vld [vmem:[#allocation3 + $0xa0] ss:$36 sps:$4 sm:$0xff]   ;;  %v6008_v26 = vld [vmem:[#allocation3 + $0x36c] ss:$36 sps:$4 sm:$0xff]   ;;  %v6004_v34 = vld [vmem:[#allocation3 + $0x134] ss:$36 sps:$4 sm:$0xff]   ;;  %v7312_v8 = vpop.f32.mrf.mxu0 }
 0x122   : > { %1047 = vst [vmem:[#allocation2 + $0xc0] sm:$0xf] %v1046_v11  ;;  %3918 = vmatprep.mubr.bf16.mxu0 %v5980_v19  ;;  %5775 = vmatpush3.bf16.msra.mxu0 %v6137_v23  ;;  %v6006_v58 = vld [vmem:[#allocation3 + $0x320] ss:$36 sps:$4 sm:$0xff]   ;;  %v533_v61 = vld [vmem:[#allocation2 + $0xc8] sm:$0x1] }
 0x123   : > { %5776 = vmatprep.subr.bf16.mxu0 %v5998_v16  ;;  %v534_v20 = vsel %vm6289_vm10, 0, %v533_v61  ;;  %v6068_v29 = vld [vmem:[%s7981_s3 + $0x208] sm:$0xff]   ;;  %v6000_v27 = vld [vmem:[#allocation3 + $0xe8] ss:$36 sps:$4 sm:$0xff]   ;;  %v889_v47 = vrot.slane %v7259_v59, 4  ;;  %v5324_v0 = vpop.f32.mrf.mxu0 }
 0x124   : > { %535 = vst [vmem:[#allocation2 + $0xc8] sm:$0x1] %v534_v20  ;;  %v6014_v30 = vld [vmem:[#allocation3 + $0x368] ss:$36 sps:$4 sm:$0xff]   ;;  %v6017_v18 = vld [vmem:[#allocation3 + $0x3b4] ss:$36 sps:$4 sm:$0xff]  }
 0x125   : > { %3830 = vmatmul.mubr.bf16.gmra.mxu1 %v5999_v7  ;;  %v6007_v50 = vld [vmem:[#allocation3 + $0x130] ss:$36 sps:$4 sm:$0xff]   ;;  %v6010_v52 = vld [vmem:[#allocation3 + $0x17c] ss:$36 sps:$4 sm:$0xff]   ;;  %v6019_v62 = vld [vmem:[#allocation3 + $0x1c4] ss:$36 sps:$4 sm:$0xff]   ;;  %v5325_v23 = vpop.f32.mrf.mxu0 }
 0x126   : > { %5777 = vmatpush3.bf16.msra.mxu0 %v5998_v16  ;;  %3837 = vmatprep.mubr.bf16.mxu1 %v6002_v1  ;;  %v6021_v59 = vld [vmem:[#allocation3 + $0x3b0] ss:$36 sps:$4 sm:$0xff]   ;;  %v6023_v33 = vld [vmem:[#allocation3 + $0x3fc] ss:$36 sps:$4 sm:$0xff]  }
 0x127   : > { %v7280_v43 = vld [vmem:[#allocation2 + $0xc4] sm:$0xf]  ;;  %5778 = vmatprep.subr.bf16.mxu0 %v6013_v36  ;;  %v6015_v16 = vld [vmem:[#allocation3 + $0x178] ss:$36 sps:$4 sm:$0xff]   ;;  %v6022_v7 = vld [vmem:[#allocation3 + $0x1c0] ss:$36 sps:$4 sm:$0xff]  }
 0x128   : > { %1847 = vst [vmem:[#allocation3 + $0x468] sm:$0xf] %v7280_v43  ;;  %1979 = vst [vmem:[#allocation3 + $0x42c] sm:$0xf] %v7280_v43  ;;  %v1858_v2 = vshll.u32 %v7280_v43, 16  ;;  %v1911_v48 = vrot.slane %v7280_v43, 5 }
 0x129   : > { %v1100_v4 = vld [vmem:[#allocation2 + $0xc0] sm:$0xf]  ;;  %3919 = vmatmul.mubr.bf16.gmra.mxu0 %v5985_v51  ;;  %v1862_v28 = vshrl.u32 %v7280_v43, 16  ;;  %v6029_v11 = vld [vmem:[#allocation3 + $0x3f8] ss:$36 sps:$4 sm:$0xff]   ;;  %v7318_v51 = vadd.f32 %v5325_v23, %v5324_v0 }
 0x12a   : > { %1846 = vst [vmem:[#allocation3 + $0x444] sm:$0xf] %v1100_v4  ;;  %1978 = vst [vmem:[#allocation3 + $0x408] sm:$0xf] %v1100_v4  ;;  %v1849_v3 = vshrl.u32 %v1100_v4, 16  ;;  %v1852_v10 = vshll.u32 %v1100_v4, 16  ;;  %3926 = vmatprep.mubr.bf16.mxu0 %v5989_v24  ;;  %5779 = vmatpush3.bf16.msra.mxu0 %v6013_v36  ;;  %v5390_v24 = vpop.f32.mrf.mxu1 }
 0x12b   : > { %5780 = vmatprep.subr.bf16.mxu0 %v6028_v15  ;;  %v4810_v40 = vrot.slane %v1100_v4, 9  ;;  %v1860_v54 = vrot.slane %v1858_v2, 5  ;;  %v1049_v39 = vld [vmem:[#allocation2 + $0xc8] sm:$0x1]  ;;  %v1864_v45 = vrot.slane %v1862_v28, 4  ;;  %v1913_v46 = vrot.slane %v1911_v48, 4 }
 0x12c   : > { %v1851_v5 = vrot.slane %v1849_v3, 4  ;;  %v1854_v9 = vrot.slane %v1852_v10, 5  ;;  %v1050_v6 = vsel %vm6280_vm8, %v889_v47, %v1049_v39  ;;  %v6025_v43 = vld [vmem:[#allocation3 + $0x20c] ss:$36 sps:$4 sm:$0xff]   ;;  %v1103_v1 = vld [vmem:[#allocation2 + $0xcc] sm:$0xf] }
 0x12d   : > { %v1912_v25 = vsel %vm6299_vm11, %v4810_v40, %v1911_v48  ;;  %3838 = vmatmul.mubr.bf16.gmra.mxu1 %v6006_v58  ;;  %1051 = vst [vmem:[#allocation2 + $0xc8] sm:$0x1] %v1050_v6  ;;  %v1865_v37 = vor.u32 %v1864_v45, %v1860_v54  ;;  %v1104_v3 = vld [vmem:[#allocation2 + $0xd0] sm:$0xf]  ;;  %v1105_v10 = vld [vmem:[#allocation2 + $0xd4] sm:$0x1] }
 0x12e   : > { %v1855_v44 = vor.u32 %v1854_v9, %v1851_v5  ;;  %5781 = vmatpush3.bf16.msra.mxu0 %v6028_v15  ;;  %1948 = vst [vmem:[#allocation3 + $0x44c] sm:$0xf] %v1912_v25  ;;  %2080 = vst [vmem:[#allocation3 + $0x410] sm:$0xf] %v1912_v25  ;;  %3845 = vmatprep.mubr.bf16.mxu1 %v6008_v26  ;;  %v5391_v15 = vpop.f32.mrf.mxu1  ;;  %v6036_v53 = vld [vmem:[#allocation3 + $0x440] ss:$36 sps:$4 sm:$0xff]   ;;  %v7322_v5 = vpop.f32.mrf.mxu0 }
 0x12f   : > { %5782 = vmatprep.subr.bf16.mxu0 %v6043_v60  ;;  %v1866_v17 = vrot.slane %v1865_v37, 4  ;;  %v7320_v4 = vadd.f32 %v5391_v15, %v5390_v24  ;;  %1980 = vst [vmem:[#allocation3 + $0x450] sm:$0xf] %v1103_v1  ;;  %v4811_v9 = vrot.slane %v1103_v1, 9  ;;  %v2045_v2 = vrot.slane %v1104_v3, 5 }
 0x130   : > { %v1856_v63 = vrot.slane %v1855_v44, 4  ;;  %1981 = vst [vmem:[#allocation3 + $0x474] sm:$0xf] %v1104_v3  ;;  %v1983_v22 = vshrl.u32 %v1103_v1, 16  ;;  %v6042_v44 = vld [vmem:[#allocation3 + $0x1c] ss:$36 sps:$4 sm:$0xff]   ;;  %v7326_v25 = vpop.f32.mrf.mxu0  ;;  %v7332_v56 = vpop.f32.mrf.mxu1 }
 0x131   : > { %3927 = vmatmul.mubr.bf16.gmra.mxu0 %v5992_v31  ;;  %v6032_v38 = vld [vmem:[#allocation3 + $0x444] ss:$36 sps:$4 sm:$0xff]   ;;  %v1986_v40 = vshll.u32 %v1103_v1, 16  ;;  %v2046_v31 = vsel %vm6299_vm11, %v4811_v9, %v2045_v2  ;;  %v2047_v48 = vrot.slane %v2045_v2, 4  ;;  %v1996_v58 = vshrl.u32 %v1104_v3, 16 }
 0x132   : > { %v1861_v41 = vsel %vm6270_vm5, %v1856_v63, %v1860_v54  ;;  %3934 = vmatprep.mubr.bf16.mxu0 %v5995_v13  ;;  %5783 = vmatpush3.bf16.msra.mxu0 %v6043_v60  ;;  %v2048_v60 = vrot.slane %v1105_v10, 5  ;;  %v1985_v13 = vrot.slane %v1983_v22, 4  ;;  %2082 = vst [vmem:[#allocation3 + $0x458] sm:$0xf] %v2046_v31  ;;  %v1992_v54 = vshll.u32 %v1104_v3, 16  ;;  %v7338_v37 = vpop.f32.mrf.mxu1 }
 0x133   : > { %1904 = vst [vmem:[#allocation3 + $0x448] sm:$0xf] %v1861_v41  ;;  %2036 = vst [vmem:[#allocation3 + $0x40c] sm:$0xf] %v1861_v41  ;;  %5784 = vmatprep.subr.bf16.mxu0 %v6055_v55  ;;  %v1988_v63 = vrot.slane %v1986_v40, 5  ;;  %v1998_v20 = vrot.slane %v1996_v58, 4 }
 0x134   : > { %v1102_v42 = vld [vmem:[#allocation2 + $0xc8] sm:$0x1]  ;;  %v2049_v26 = vsel %vm6299_vm11, %v2047_v48, %v2048_v60  ;;  %v1994_v61 = vrot.slane %v1992_v54, 5  ;;  %v6040_v28 = vld [vmem:[#allocation3 + $0x18] ss:$36 sps:$4 sm:$0xff]  }
 0x135   : > { %3846 = vmatmul.mubr.bf16.gmra.mxu1 %v6014_v30  ;;  %v1868_v12 = vshll.u32 %v1102_v42, 16  ;;  %v1914_v19 = vrot.slane %v1102_v42, 5  ;;  %2083 = vst [vmem:[#allocation3 + $0x47c] sm:$0xf] %v2049_v26  ;;  %v1989_v41 = vor.u32 %v1988_v63, %v1985_v13  ;;  %v6053_v42 = vld [vmem:[#allocation3 + $0xac] ss:$36 sps:$4 sm:$0xff]  }
 0x136   : > { %5785 = vmatpush3.bf16.msra.mxu0 %v6055_v55  ;;  %3853 = vmatprep.mubr.bf16.mxu1 %v6017_v18  ;;  %v2002_v55 = vshll.u32 %v1105_v10, 16  ;;  %v1999_v30 = vor.u32 %v1998_v20, %v1994_v61  ;;  %v6047_v18 = vld [vmem:[#allocation3 + $0x64] ss:$36 sps:$4 sm:$0xff]   ;;  %v6044_v35 = vld [vmem:[#allocation3 + $0x298] ss:$36 sps:$4 sm:$0xff]  }
 0x137   : > { %5786 = vmatprep.subr.bf16.mxu0 %v6068_v29  ;;  %v1870_v14 = vrot.slane %v1868_v12, 5  ;;  %v1915_v57 = vsel %vm6299_vm11, %v1913_v46, %v1914_v19  ;;  %v6050_v46 = vld [vmem:[#allocation3 + $0x60] ss:$36 sps:$4 sm:$0xff]   ;;  %v6063_v1 = vld [vmem:[#allocation3 + $0xf0] ss:$36 sps:$4 sm:$0xff]  }
 0x138   : > { %1949 = vst [vmem:[#allocation3 + $0x470] sm:$0xf] %v1915_v57  ;;  %2081 = vst [vmem:[#allocation3 + $0x434] sm:$0xf] %v1915_v57  ;;  %v2004_v47 = vrot.slane %v2002_v55, 5  ;;  %v2000_v6 = vrot.slane %v1999_v30, 4 }
 0x139   : > { %3935 = vmatmul.mubr.bf16.gmra.mxu0 %v6000_v27  ;;  %v1871_v36 = vsel %vm6270_vm5, %v1866_v17, %v1870_v14  ;;  %v6034_v27 = vld [vmem:[#allocation3 + $0x254] ss:$36 sps:$4 sm:$0xff]   ;;  %v5396_v17 = vpop.f32.mrf.mxu1  ;;  %v6045_v0 = vld [vmem:[#allocation3 + $0x2e4] ss:$36 sps:$4 sm:$0xff]   ;;  %v6066_v3 = vld [vmem:[#allocation3 + $0x13c] ss:$36 sps:$4 sm:$0xff]  }
 0x13a   : > { %3942 = vmatprep.mubr.bf16.mxu0 %v6004_v34  ;;  %5787 = vmatpush3.bf16.msra.mxu0 %v6068_v29  ;;  %1905 = vst [vmem:[#allocation3 + $0x46c] sm:$0xf] %v1871_v36  ;;  %2037 = vst [vmem:[#allocation3 + $0x430] sm:$0xf] %v1871_v36  ;;  %v6030_v29 = vld [vmem:[#allocation3 + $0x208] ss:$36 sps:$4 sm:$0xff]  }
 0x13b   : > { %5788 = vmatprep.subr.bf16.mxu0 %v6081_v49  ;;  %v1990_v34 = vrot.slane %v1989_v41, 4  ;;  %v5397_v19 = vpop.f32.mrf.mxu1  ;;  %v6057_v57 = vld [vmem:[#allocation3 + $0xa8] ss:$36 sps:$4 sm:$0xff]   ;;  %v6058_v9 = vld [vmem:[#allocation3 + $0x374] ss:$36 sps:$4 sm:$0xff]  }
 0x13c   : > { %v6056_v10 = vld [vmem:[#allocation3 + $0x328] ss:$36 sps:$4 sm:$0xff]   ;;  %v6070_v2 = vld [vmem:[#allocation3 + $0x138] ss:$36 sps:$4 sm:$0xff]   ;;  %v6062_v63 = vld [vmem:[#allocation3 + $0x370] ss:$36 sps:$4 sm:$0xff]  }
 0x13d   : > { %3854 = vmatmul.mubr.bf16.gmra.mxu1 %v6021_v59  ;;  %v1995_v39 = vsel %vm6270_vm5, %v1990_v34, %v1994_v61  ;;  %v6037_v59 = vld [vmem:[#allocation3 + $0x250] ss:$36 sps:$4 sm:$0xff]   ;;  %v6073_v22 = vld [vmem:[#allocation3 + $0x184] ss:$36 sps:$4 sm:$0xff]   ;;  %v6064_v54 = vld [vmem:[#allocation3 + $0x3bc] ss:$36 sps:$4 sm:$0xff]  }
 0x13e   : > { %5789 = vmatpush3.bf16.msra.mxu0 %v6081_v49  ;;  %3861 = vmatprep.mubr.bf16.mxu1 %v6023_v33  ;;  %v5330_v49 = vpop.f32.mrf.mxu0  ;;  %2038 = vst [vmem:[#allocation3 + $0x454] sm:$0xf] %v1995_v39  ;;  %v6038_v33 = vld [vmem:[#allocation3 + $0x29c] ss:$36 sps:$4 sm:$0xff]   ;;  %v6079_v55 = vld [vmem:[#allocation3 + $0x1cc] ss:$36 sps:$4 sm:$0xff]  }
 0x13f   : > { %v6076_v58 = vld [vmem:[#allocation3 + $0x180] ss:$36 sps:$4 sm:$0xff]   ;;  %v6069_v61 = vld [vmem:[#allocation3 + $0x3b8] ss:$36 sps:$4 sm:$0xff]  }
 0x140   : > { %v5331_v45 = vpop.f32.mrf.mxu0  ;;  %v6071_v20 = vld [vmem:[#allocation3 + $0x404] ss:$36 sps:$4 sm:$0xff]   ;;  %v6084_v30 = vld [vmem:[#allocation3 + $0x214] ss:$36 sps:$4 sm:$0xff]  }
 0x141   : > { %3943 = vmatmul.mubr.bf16.gmra.mxu0 %v6007_v50  ;;  %v7334_v50 = vadd.f32 %v5331_v45, %v5330_v49  ;;  %v6075_v39 = vld [vmem:[#allocation3 + $0x400] ss:$36 sps:$4 sm:$0xff]   ;;  %v6077_v45 = vld [vmem:[#allocation3 + $0x44c] ss:$36 sps:$4 sm:$0xff]  }
 0x142   : > { %3950 = vmatprep.mubr.bf16.mxu0 %v6010_v52  ;;  %v2005_v52 = vsel %vm6270_vm5, %v2000_v6, %v2004_v47  ;;  %v7340_v12 = vpop.f32.mrf.mxu0 }
 0x143   : > { %2039 = vst [vmem:[#allocation3 + $0x478] sm:$0xf] %v2005_v52 }
 0x144   : > { %v7344_v14 = vpop.f32.mrf.mxu0 }
 0x145   : > { %3862 = vmatmul.mubr.bf16.gmra.mxu1 %v6029_v11 }
 0x146   : > { %3869 = vmatprep.mubr.bf16.mxu1 %v6032_v38  ;;  %v6060_v38 = vld [vmem:[#allocation3 + $0xf4] ss:$36 sps:$4 sm:$0xff]   ;;  %v5336_v36 = vpop.f32.mrf.mxu0 }
 0x148   : > { %v5337_v24 = vpop.f32.mrf.mxu0 }
 0x149   : > { %3951 = vmatmul.mubr.bf16.gmra.mxu0 %v6015_v16  ;;  %v7342_v16 = vadd.f32 %v5397_v19, %v5396_v17  ;;  %v7348_v15 = vadd.f32 %v5337_v24, %v5336_v36  ;;  %v6089_v24 = vld [vmem:[#allocation3 + $0x258] ss:$36 sps:$4 sm:$0xff]  }
 0x14a   : > { %3958 = vmatprep.mubr.bf16.mxu0 %v6019_v62  ;;  %v5399_v62 = vpop.f32.mrf.mxu1  ;;  %v7352_v48 = vpop.f32.mrf.mxu0 }
 0x14c   : > { %v5400_v11 = vpop.f32.mrf.mxu1  ;;  %v7356_v26 = vpop.f32.mrf.mxu0 }
 0x14d   : > { %3870 = vmatmul.mubr.bf16.gmra.mxu1 %v6036_v53  ;;  %v7346_v23 = vadd.f32 %v5400_v11, %v5399_v62  ;;  %v6082_v62 = vld [vmem:[#allocation3 + $0x448] ss:$36 sps:$4 sm:$0xff]   ;;  %v6086_v11 = vld [vmem:[#allocation3 + $0x20] ss:$36 sps:$4 sm:$0xff]  }
 0x14e   : > { %4071 = vmatprep.mubr.bf16.mxu1 %v6042_v44  ;;  %v5402_v53 = vpop.f32.mrf.mxu1 }
 0x150   : > { %v5403_v60 = vpop.f32.mrf.mxu1 }
 0x151   : > { %3959 = vmatmul.mubr.bf16.gmra.mxu0 %v6022_v7  ;;  %v6049_v7 = vld [vmem:[#allocation3 + $0x2e0] ss:$36 sps:$4 sm:$0xff]   ;;  %v7350_v44 = vadd.f32 %v5403_v60, %v5402_v53 }
 0x152   : > { %3966 = vmatprep.mubr.bf16.mxu0 %v6025_v43  ;;  %v6051_v43 = vld [vmem:[#allocation3 + $0x32c] ss:$36 sps:$4 sm:$0xff]   ;;  %v5405_v40 = vpop.f32.mrf.mxu1 }
 0x154   : > { %v5406_v31 = vpop.f32.mrf.mxu1 }
 0x155   : > { %4072 = vmatmul.mubr.bf16.vlgmr.msra.gmra.mxu1 %v6040_v28  ;;  %v7354_v13 = vadd.f32 %v5406_v31, %v5405_v40  ;;  %v6088_v31 = vld [vmem:[#allocation3 + $0x68] ss:$36 sps:$4 sm:$0xff]  }
 0x156   : > { %4079 = vmatprep.mubr.bf16.mxu1 %v6047_v18 }
 0x159   : > { %3967 = vmatmul.mubr.bf16.gmra.mxu0 %v6030_v29 }
 0x15a   : > { %3974 = vmatprep.mubr.bf16.mxu0 %v6034_v27  ;;  %v6083_v27 = vld [vmem:[#allocation3 + $0x1c8] ss:$36 sps:$4 sm:$0xff]  }
 0x15b   : > { %v5342_v41 = vpop.f32.mrf.mxu0 }
 0x15d   : > { %4080 = vmatmul.mubr.bf16.gmra.mxu1 %v6050_v46  ;;  %v5343_v29 = vpop.f32.mrf.mxu0  ;;  %v6091_v46 = vld [vmem:[#allocation3 + $0x25c] ss:$36 sps:$4 sm:$0xff]  }
 0x15e   : > { %4087 = vmatprep.mubr.bf16.mxu1 %v6053_v42  ;;  %v7358_v34 = vadd.f32 %v5343_v29, %v5342_v41 }
 0x15f   : > { %v5345_v47 = vpop.f32.mrf.mxu0 }
 0x161   : > { %3975 = vmatmul.mubr.bf16.gmra.mxu0 %v6037_v59  ;;  %v5346_v28 = vpop.f32.mrf.mxu0  ;;  %v6087_v59 = vld [vmem:[#allocation3 + $0x210] ss:$36 sps:$4 sm:$0xff]  }
 0x162   : > { %3982 = vmatprep.mubr.bf16.mxu0 %v6038_v33  ;;  %v7360_v18 = vadd.f32 %v5346_v28, %v5345_v47 }
 0x165   : > { %4088 = vmatmul.mubr.bf16.gmra.mxu1 %v6057_v57  ;;  %v5408_v49 = vpop.f32.mrf.mxu1 }
 0x166   : > { %4095 = vmatprep.mubr.bf16.mxu1 %v6060_v38 }
 0x167   : > { %v5409_v6 = vpop.f32.mrf.mxu1 }
 0x168   : > { %v7362_v52 = vadd.f32 %v5409_v6, %v5408_v49 }
 0x169   : > { %3983 = vmatmul.mubr.bf16.gmra.mxu0 %v6044_v35  ;;  %v5411_v33 = vpop.f32.mrf.mxu1 }
 0x16a   : > { %3990 = vmatprep.mubr.bf16.mxu0 %v6045_v0 }
 0x16b   : > { %v5412_v42 = vpop.f32.mrf.mxu1 }
 0x16c   : > { %v7364_v17 = vadd.f32 %v5412_v42, %v5411_v33 }
 0x16d   : > { %4096 = vmatmul.mubr.bf16.gmra.mxu1 %v6063_v1  ;;  %v5430_v35 = vpop.f32.mrf.mxu1 }
 0x16e   : > { %4103 = vmatprep.mubr.bf16.mxu1 %v6066_v3  ;;  %v6096_v3 = vld [vmem:[#allocation3 + $0x2a4] ss:$36 sps:$4 sm:$0xff]  }
 0x16f   : > { %v5431_v57 = vpop.f32.mrf.mxu1 }
 0x170   : > { %v5432_v36 = vadd.f32 %v5431_v57, %v5430_v35  ;;  %v5335_v35 = vadd.f32 %v7344_v14, %v7340_v12  ;;  %v6111_v14 = vld [vmem:[#allocation3 + $0x37c] ss:$36 sps:$4 sm:$0xff]  }
 0x171   : > { %3991 = vmatmul.mubr.bf16.gmra.mxu0 %v6049_v7  ;;  %v5348_v19 = vpop.f32.mrf.mxu0 }
 0x172   : > { %3998 = vmatprep.mubr.bf16.mxu0 %v6051_v43  ;;  %v5433_v43 = vpop.f32.mrf.mxu1  ;;  %v7369_v1 = vadd.f32 %v5432_v36, %v7288_v21  ;;  %v6098_v36 = vld [vmem:[#allocation3 + $0x188] ss:$36 sps:$4 sm:$0xff]  }
 0x173   : > { %v5349_v0 = vpop.f32.mrf.mxu0 }
 0x174   : > { %v7366_v38 = vadd.f32 %v5349_v0, %v5348_v19  ;;  %v5434_v53 = vpop.f32.mrf.mxu1 }
 0x175   : > { %4104 = vmatmul.mubr.bf16.gmra.mxu1 %v6070_v2  ;;  %v5351_v7 = vpop.f32.mrf.mxu0  ;;  %v5435_v60 = vadd.f32 %v5434_v53, %v5433_v43 }
 0x176   : > { %4111 = vmatprep.mubr.bf16.mxu1 %v6073_v22 }
 0x179   : > { %3999 = vmatmul.mubr.bf16.gmra.mxu0 %v6056_v10  ;;  %v5352_v10 = vpop.f32.mrf.mxu0  ;;  %v5436_v22 = vpop.f32.mrf.mxu1 }
 0x17a   : > { %4006 = vmatprep.mubr.bf16.mxu0 %v6058_v9  ;;  %v5323_v9 = vadd.f32 %v7312_v8, %v7310_v32  ;;  %v7373_v2 = vadd.f32 %v5352_v10, %v5351_v7  ;;  %v6101_v8 = vld [vmem:[#allocation3 + $0x2ec] ss:$36 sps:$4 sm:$0xff]  }
 0x17b   : > { %v5437_v21 = vpop.f32.mrf.mxu1  ;;  %v6102_v7 = vld [vmem:[#allocation3 + $0x1d0] ss:$36 sps:$4 sm:$0xff]  }
 0x17c   : > { %v7375_v40 = vadd.f32 %v5435_v60, %v5323_v9  ;;  %v6104_v10 = vld [vmem:[#allocation3 + $0x330] ss:$36 sps:$4 sm:$0xff]  }
 0x17d   : > { %4112 = vmatmul.mubr.bf16.gmra.mxu1 %v6076_v58  ;;  %v5438_v58 = vadd.f32 %v5437_v21, %v5436_v22  ;;  %v5341_v22 = vadd.f32 %v7356_v26, %v7352_v48  ;;  %v6116_v48 = vld [vmem:[#allocation3 + $0x3c4] ss:$36 sps:$4 sm:$0xff]  }
 0x17e   : > { %4119 = vmatprep.mubr.bf16.mxu1 %v6079_v55  ;;  %v6094_v55 = vld [vmem:[#allocation3 + $0x2a0] ss:$36 sps:$4 sm:$0xff]  }
 0x17f   : > { %v7380_v32 = vadd.f32 %v5438_v58, %v7318_v51 }
 0x181   : > { %4007 = vmatmul.mubr.bf16.gmra.mxu0 %v6062_v63 }
 0x182   : > { %4014 = vmatprep.mubr.bf16.mxu0 %v6064_v54  ;;  %v5354_v63 = vpop.f32.mrf.mxu0  ;;  %v6092_v54 = vld [vmem:[#allocation3 + $0xb0] ss:$36 sps:$4 sm:$0xff]  }
 0x184   : > { %v5355_v41 = vpop.f32.mrf.mxu0 }
 0x185   : > { %4120 = vmatmul.mubr.bf16.gmra.mxu1 %v6083_v27 }
 0x186   : > { %4127 = vmatprep.mubr.bf16.mxu1 %v6084_v30  ;;  %v5357_v29 = vpop.f32.mrf.mxu0  ;;  %v5329_v30 = vadd.f32 %v7326_v25, %v7322_v5  ;;  %v6106_v5 = vld [vmem:[#allocation3 + $0x334] ss:$36 sps:$4 sm:$0xff]  }
 0x188   : > { %v5358_v28 = vpop.f32.mrf.mxu0 }
 0x189   : > { %4015 = vmatmul.mubr.bf16.gmra.mxu0 %v6069_v61  ;;  %v5439_v61 = vpop.f32.mrf.mxu1 }
 0x18a   : > { %4022 = vmatprep.mubr.bf16.mxu0 %v6071_v20  ;;  %v7377_v20 = vadd.f32 %v5355_v41, %v5354_v63 }
 0x18b   : > { %v5440_v27 = vpop.f32.mrf.mxu1 }
 0x18c   : > { %v5441_v47 = vadd.f32 %v5440_v27, %v5439_v61 }
 0x18d   : > { %4128 = vmatmul.mubr.bf16.gmra.mxu1 %v6087_v59  ;;  %v5442_v49 = vpop.f32.mrf.mxu1  ;;  %v6097_v59 = vld [vmem:[#allocation3 + $0x140] ss:$36 sps:$4 sm:$0xff]  }
 0x18e   : > { %4135 = vmatprep.mubr.bf16.mxu1 %v6091_v46  ;;  %v7386_v6 = vadd.f32 %v5441_v47, %v5329_v30  ;;  %v6099_v46 = vld [vmem:[#allocation3 + $0x2e8] ss:$36 sps:$4 sm:$0xff]  }
 0x18f   : > { %v5443_v51 = vpop.f32.mrf.mxu1 }
 0x190   : > { %v5444_v33 = vadd.f32 %v5443_v51, %v5442_v49  ;;  %v6108_v49 = vld [vmem:[#allocation3 + $0x2a8] ss:$36 sps:$4 sm:$0xff]  }
 0x191   : > { %4023 = vmatmul.mubr.bf16.gmra.mxu0 %v6075_v39  ;;  %v7384_v39 = vadd.f32 %v5358_v28, %v5357_v29  ;;  %v5445_v42 = vpop.f32.mrf.mxu1 }
 0x192   : > { %4030 = vmatprep.mubr.bf16.mxu0 %v6077_v45  ;;  %v6093_v45 = vld [vmem:[#allocation3 + $0xf8] ss:$36 sps:$4 sm:$0xff]   ;;  %v7389_v19 = vadd.f32 %v5444_v33, %v7334_v50 }
 0x193   : > { %v5446_v25 = vpop.f32.mrf.mxu1 }
 0x195   : > { %4136 = vmatmul.mubr.bf16.gmra.mxu1 %v6089_v24  ;;  %v5448_v0 = vpop.f32.mrf.mxu1 }
 0x196   : > { %4143 = vmatprep.mubr.bf16.mxu1 %v6096_v3  ;;  %v5360_v57 = vpop.f32.mrf.mxu0 }
 0x197   : > { %v5449_v24 = vpop.f32.mrf.mxu1 }
 0x198   : > { %v5361_v43 = vpop.f32.mrf.mxu0  ;;  %v5450_v50 = vadd.f32 %v5449_v24, %v5448_v0 }
 0x199   : > { %4031 = vmatmul.mubr.bf16.gmra.mxu0 %v6082_v62  ;;  %v5447_v62 = vadd.f32 %v5446_v25, %v5445_v42  ;;  %v7395_v3 = vadd.f32 %v5361_v43, %v5360_v57  ;;  %v5451_v53 = vpop.f32.mrf.mxu1  ;;  %v6121_v42 = vld [vmem:[#allocation3 + $0x40c] ss:$36 sps:$4 sm:$0xff]   ;;  %v6113_v57 = vld [vmem:[#allocation3 + $0x338] ss:$36 sps:$4 sm:$0xff]   ;;  %v6117_v43 = vld [vmem:[#allocation3 + $0x380] ss:$36 sps:$4 sm:$0xff]  }
 0x19a   : > { %5790 = vmatprep.mubr.bf16.mxu0 %v6086_v11  ;;  %v5363_v9 = vpop.f32.mrf.mxu0  ;;  %v7398_v12 = vadd.f32 %v5450_v50, %v7348_v15  ;;  %v6107_v15 = vld [vmem:[#allocation3 + $0x260] ss:$36 sps:$4 sm:$0xff]  }
 0x19b   : > { %v7393_v11 = vadd.f32 %v5447_v62, %v5335_v35  ;;  %v5452_v60 = vpop.f32.mrf.mxu1 }
 0x19c   : > { %v5453_v63 = vadd.f32 %v5452_v60, %v5451_v53 }
 0x19d   : > { %4144 = vmatmul.mubr.bf16.gmra.mxu1 %v6094_v55  ;;  %v6103_v55 = vld [vmem:[#allocation3 + $0x218] ss:$36 sps:$4 sm:$0xff]  }
 0x19e   : > { %4151 = vmatprep.mubr.bf16.mxu1 %v6101_v8  ;;  %v7404_v58 = vadd.f32 %v5453_v63, %v5341_v22  ;;  %v6109_v8 = vld [vmem:[#allocation3 + $0x378] ss:$36 sps:$4 sm:$0xff]  }
 0x1a1   : > { %5791 = vmatmul.mubr.bf16.vlgmr.msra.gmra.mxu0 %v6088_v31  ;;  %v5364_v31 = vpop.f32.mrf.mxu0 }
 0x1a2   : > { %5794 = vmatprep.mubr.bf16.mxu0 %v6092_v54  ;;  %v7402_v21 = vadd.f32 %v5364_v31, %v5363_v9  ;;  %v5454_v54 = vpop.f32.mrf.mxu1  ;;  %v6119_v9 = vld [vmem:[#allocation3 + $0x408] ss:$36 sps:$4 sm:$0xff]  }
 0x1a4   : > { %v5455_v41 = vpop.f32.mrf.mxu1 }
 0x1a5   : > { %4152 = vmatmul.mubr.bf16.gmra.mxu1 %v6099_v46  ;;  %v5456_v61 = vadd.f32 %v5455_v41, %v5454_v54  ;;  %v6114_v46 = vld [vmem:[#allocation3 + $0x3c0] ss:$36 sps:$4 sm:$0xff]  }
 0x1a6   : > { %4159 = vmatprep.mubr.bf16.mxu1 %v6106_v5  ;;  %v5457_v29 = vpop.f32.mrf.mxu1 }
 0x1a7   : > { %v7407_v27 = vadd.f32 %v5456_v61, %v7358_v34 }
 0x1a8   : > { %v5458_v26 = vpop.f32.mrf.mxu1 }
 0x1a9   : > { %5795 = vmatmul.mubr.bf16.gmra.mxu0 %v6093_v45  ;;  %v5459_v30 = vadd.f32 %v5458_v26, %v5457_v29 }
 0x1aa   : > { %5798 = vmatprep.mubr.bf16.mxu0 %v6097_v59  ;;  %v5366_v47 = vpop.f32.mrf.mxu0  ;;  %v6112_v59 = vld [vmem:[#allocation3 + $0x2f0] ss:$36 sps:$4 sm:$0xff]  }
 0x1ab   : > { %v7410_v28 = vadd.f32 %v5459_v30, %v7360_v18 }
 0x1ac   : > { %v5367_v45 = vpop.f32.mrf.mxu0 }
 0x1ad   : > { %4160 = vmatmul.mubr.bf16.gmra.mxu1 %v6104_v10  ;;  %v7412_v51 = vadd.f32 %v5367_v45, %v5366_v47 }
 0x1ae   : > { %4167 = vmatprep.mubr.bf16.mxu1 %v6111_v14  ;;  %v5369_v33 = vpop.f32.mrf.mxu0  ;;  %v6126_v14 = vld [vmem:[#allocation3 + $0x454] ss:$36 sps:$4 sm:$0xff]  }
 0x1b0   : > { %v5370_v5 = vpop.f32.mrf.mxu0 }
 0x1b1   : > { %5799 = vmatmul.mubr.bf16.gmra.mxu0 %v6098_v36  ;;  %v7414_v25 = vadd.f32 %v5370_v5, %v5369_v33 }
 0x1b2   : > { %5802 = vmatprep.mubr.bf16.mxu0 %v6102_v7 }
 0x1b3   : > { %v5460_v34 = vpop.f32.mrf.mxu1 }
 0x1b5   : > { %4168 = vmatmul.mubr.bf16.gmra.mxu1 %v6109_v8  ;;  %v5461_v35 = vpop.f32.mrf.mxu1  ;;  %v5372_v62 = vpop.f32.mrf.mxu0 }
 0x1b6   : > { %4175 = vmatprep.mubr.bf16.mxu1 %v6116_v48  ;;  %v5462_v18 = vadd.f32 %v5461_v35, %v5460_v34  ;;  %v6124_v48 = vld [vmem:[#allocation3 + $0x450] ss:$36 sps:$4 sm:$0xff]   ;;  %v6123_v34 = vld [vmem:[#allocation3 + $0x458] ss:$36 sps:$4 sm:$0xff]  }
 0x1b7   : > { %v5463_v0 = vpop.f32.mrf.mxu1  ;;  %v5373_v36 = vpop.f32.mrf.mxu0 }
 0x1b8   : > { %v7417_v24 = vadd.f32 %v5462_v18, %v7366_v38  ;;  %v7419_v7 = vadd.f32 %v5373_v36, %v5372_v62 }
 0x1b9   : > { %5803 = vmatmul.mubr.bf16.gmra.mxu0 %v6103_v55  ;;  %v5464_v50 = vpop.f32.mrf.mxu1  ;;  %v5375_v10 = vpop.f32.mrf.mxu0  ;;  %v6118_v55 = vld [vmem:[#allocation3 + $0x3c8] ss:$36 sps:$4 sm:$0xff]  }
 0x1ba   : > { %5806 = vmatprep.mubr.bf16.mxu0 %v6107_v15  ;;  %v5465_v53 = vadd.f32 %v5464_v50, %v5463_v0  ;;  %v6122_v15 = vld [vmem:[#allocation3 + $0x410] ss:$36 sps:$4 sm:$0xff]  }
 0x1bb   : > { %v5376_v60 = vpop.f32.mrf.mxu0 }
 0x1bc   : > { %v7422_v22 = vadd.f32 %v5465_v53, %v7373_v2  ;;  %v7424_v31 = vadd.f32 %v5376_v60, %v5375_v10 }
 0x1bd   : > { %4176 = vmatmul.mubr.bf16.gmra.mxu1 %v6114_v46 }
 0x1be   : > { %4183 = vmatprep.mubr.bf16.mxu1 %v6121_v42 }
 0x1c1   : > { %5807 = vmatmul.mubr.bf16.gmra.mxu0 %v6108_v49 }
 0x1c2   : > { %5810 = vmatprep.mubr.bf16.mxu0 %v6112_v59  ;;  %v5466_v63 = vpop.f32.mrf.mxu1 }
 0x1c4   : > { %v5467_v38 = vpop.f32.mrf.mxu1 }
 0x1c5   : > { %4184 = vmatmul.mubr.bf16.gmra.mxu1 %v6119_v9  ;;  %v5468_v41 = vadd.f32 %v5467_v38, %v5466_v63 }
 0x1c6   : > { %4191 = vmatprep.mubr.bf16.mxu1 %v6126_v14  ;;  %v5469_v61 = vpop.f32.mrf.mxu1 }
 0x1c7   : > { %v5378_v54 = vpop.f32.mrf.mxu0  ;;  %v7427_v29 = vadd.f32 %v5468_v41, %v7377_v20 }
 0x1c8   : > { %v5470_v2 = vpop.f32.mrf.mxu1 }
 0x1c9   : > { %5811 = vmatmul.mubr.bf16.gmra.mxu0 %v6113_v57  ;;  %v5379_v8 = vpop.f32.mrf.mxu0  ;;  %v5471_v47 = vadd.f32 %v5470_v2, %v5469_v61 }
 0x1ca   : > { %5814 = vmatprep.mubr.bf16.mxu0 %v6117_v43  ;;  %v5380_v26 = vadd.f32 %v5379_v8, %v5378_v54 }
 0x1cb   : > { %v5381_v30 = vpop.f32.mrf.mxu0  ;;  %v5472_v49 = vpop.f32.mrf.mxu1  ;;  %v7430_v59 = vadd.f32 %v5471_v47, %v7384_v39 }
 0x1cd   : > { %v5382_v45 = vpop.f32.mrf.mxu0  ;;  %4192 = vmatmul.mubr.bf16.gmra.mxu1 %v6124_v48  ;;  %v5473_v46 = vpop.f32.mrf.mxu1 }
 0x1ce   : > { %v5383_v33 = vadd.f32 %v5382_v45, %v5381_v30  ;;  %v5474_v42 = vadd.f32 %v5473_v46, %v5472_v49 }
 0x1cf   : > { %v5475_v5 = vpop.f32.mrf.mxu1 }
 0x1d0   : > { %v7433_v20 = vadd.f32 %v5474_v42, %v7395_v3 }
 0x1d1   : > { %5815 = vmatmul.mubr.bf16.gmra.mxu0 %v6118_v55  ;;  %v5476_v35 = vpop.f32.mrf.mxu1 }
 0x1d2   : > { %5818 = vmatprep.mubr.bf16.mxu0 %v6122_v15  ;;  %v5477_v18 = vadd.f32 %v5476_v35, %v5475_v5 }
 0x1d4   : > { %v5478_v0 = vpop.f32.mrf.mxu1  ;;  %v7436_v36 = vadd.f32 %v5477_v18, %v7402_v21 }
 0x1d6   : > { %v5479_v43 = vpop.f32.mrf.mxu1 }
 0x1d7   : > { %v5480_v10 = vadd.f32 %v5479_v43, %v5478_v0 }
 0x1d8   : > { %v5481_v53 = vpop.f32.mrf.mxu1 }
 0x1d9   : > { %v5384_v62 = vpop.f32.mrf.mxu0  ;;  %5819 = vmatmul.mubr.bf16.gmra.mxu0 %v6123_v34  ;;  %v7439_v14 = vadd.f32 %v5480_v10, %v7412_v51 }
 0x1da   : > { %v5482_v60 = vpop.f32.mrf.mxu1 }
 0x1db   : > { %v5385_v57 = vpop.f32.mrf.mxu0  ;;  %v5483_v38 = vadd.f32 %v5482_v60, %v5481_v53 }
 0x1dc   : > { %v5386_v39 = vadd.f32 %v5385_v57, %v5384_v62 }
 0x1dd   : > { %v5387_v50 = vpop.f32.mrf.mxu0  ;;  %v7442_v55 = vadd.f32 %v5483_v38, %v7414_v25  ;;  %v5484_v41 = vpop.f32.mrf.mxu1 }
 0x1df   : > { %v5388_v9 = vpop.f32.mrf.mxu0  ;;  %v5485_v61 = vpop.f32.mrf.mxu1 }
 0x1e0   : > { %v5389_v3 = vadd.f32 %v5388_v9, %v5387_v50  ;;  %v5486_v48 = vadd.f32 %v5485_v61, %v5484_v41 }
 0x1e1   : > { %v5542_v63 = vpop.f32.mrf.mxu0  ;;  %v5487_v30 = vpop.f32.mrf.mxu1 }
 0x1e2   : > { %v7448_v47 = vadd.f32 %v5486_v48, %v7419_v7 }
 0x1e3   : > { %v5543_v54 = vpop.f32.mrf.mxu0  ;;  %v5488_v45 = vpop.f32.mrf.mxu1 }
 0x1e4   : > { %v5544_v21 = vadd.f32 %v5543_v54, %v5542_v63  ;;  %v5489_v25 = vadd.f32 %v5488_v45, %v5487_v30 }
 0x1e5   : > { %v5545_v15 = vpop.f32.mrf.mxu0  ;;  %v5490_v42 = vpop.f32.mrf.mxu1 }
 0x1e6   : > { %v7445_v8 = vadd.f32 %v5544_v21, %v7369_v1  ;;  %v7454_v35 = vadd.f32 %v5489_v25, %v7424_v31 }
 0x1e7   : > { %v5546_v2 = vpop.f32.mrf.mxu0  ;;  %v5491_v62 = vpop.f32.mrf.mxu1 }
 0x1e8   : > { %v5547_v51 = vadd.f32 %v5546_v2, %v5545_v15  ;;  %v5492_v0 = vadd.f32 %v5491_v62, %v5490_v42 }
 0x1e9   : > { %v5548_v49 = vpop.f32.mrf.mxu0  ;;  %v5493_v57 = vpop.f32.mrf.mxu1 }
 0x1ea   : > { %v7451_v46 = vadd.f32 %v5547_v51, %v7375_v40  ;;  %v7459_v50 = vadd.f32 %v5492_v0, %v5380_v26 }
 0x1eb   : > { %v5549_v34 = vpop.f32.mrf.mxu0  ;;  %v5494_v10 = vpop.f32.mrf.mxu1 }
 0x1ec   : > { %v5550_v5 = vadd.f32 %v5549_v34, %v5548_v49  ;;  %v5495_v9 = vadd.f32 %v5494_v10, %v5493_v57  ;;  %v5395_v57 = vadd.f32 %v7338_v37, %v7332_v56 }
 0x1ed   : > { %v5551_v1 = vpop.f32.mrf.mxu0  ;;  %v5496_v31 = vpop.f32.mrf.mxu1 }
 0x1ee   : > { %v7457_v18 = vadd.f32 %v5550_v5, %v7380_v32  ;;  %v7464_v38 = vadd.f32 %v5495_v9, %v5383_v33 }
 0x1ef   : > { %v5552_v7 = vpop.f32.mrf.mxu0  ;;  %v5497_v32 = vpop.f32.mrf.mxu1 }
 0x1f0   : > { %v5553_v43 = vadd.f32 %v5552_v7, %v5551_v1  ;;  %v5498_v21 = vadd.f32 %v5497_v32, %v5496_v31 }
 0x1f1   : > { %v5554_v40 = vpop.f32.mrf.mxu0  ;;  %v5499_v26 = vpop.f32.mrf.mxu1 }
 0x1f2   : > { %v7462_v53 = vadd.f32 %v5553_v43, %v7386_v6  ;;  %v7469_v48 = vadd.f32 %v5498_v21, %v5386_v39 }
 0x1f3   : > { %v5555_v60 = vpop.f32.mrf.mxu0  ;;  %v5500_v6 = vpop.f32.mrf.mxu1 }
 0x1f4   : > { %v5556_v63 = vadd.f32 %v5555_v60, %v5554_v40  ;;  %v5501_v51 = vadd.f32 %v5500_v6, %v5499_v26 }
 0x1f5   : > { %v5557_v54 = vpop.f32.mrf.mxu0  ;;  %v5502_v33 = vpop.f32.mrf.mxu1 }
 0x1f6   : > { %v7467_v41 = vadd.f32 %v5556_v63, %v7389_v19  ;;  %v7474_v25 = vadd.f32 %v5501_v51, %v5389_v3 }
 0x1f7   : > { %v5558_v15 = vpop.f32.mrf.mxu0  ;;  %v5503_v19 = vpop.f32.mrf.mxu1 }
 0x1f8   : > { %v5559_v61 = vadd.f32 %v5558_v15, %v5557_v54  ;;  %v5504_v5 = vadd.f32 %v5503_v19, %v5502_v33 }
 0x1f9   : > { %v5560_v2 = vpop.f32.mrf.mxu0  ;;  %v5505_v39 = vpop.f32.mrf.mxu1 }
 0x1fa   : > { %v7472_v30 = vadd.f32 %v5559_v61, %v7393_v11  ;;  %v7480_v0 = vadd.f32 %v5504_v5, %v7320_v4 }
 0x1fb   : > { %v5561_v49 = vpop.f32.mrf.mxu0  ;;  %v5506_v7 = vpop.f32.mrf.mxu1 }
 0x1fc   : > { %v5562_v45 = vadd.f32 %v5561_v49, %v5560_v2  ;;  %v5507_v43 = vadd.f32 %v5506_v7, %v5505_v39 }
 0x1fd   : > { %v5563_v34 = vpop.f32.mrf.mxu0  ;;  %v5508_v10 = vpop.f32.mrf.mxu1 }
 0x1fe   : > { %v7477_v42 = vadd.f32 %v5562_v45, %v7398_v12  ;;  %v7487_v9 = vadd.f32 %v5507_v43, %v5395_v57 }
 0x1ff   : > { %v5564_v1 = vpop.f32.mrf.mxu0  ;;  %v5509_v31 = vpop.f32.mrf.mxu1 }
 0x200   : > { %v5565_v62 = vadd.f32 %v5564_v1, %v5563_v34  ;;  %v5510_v4 = vadd.f32 %v5509_v31, %v5508_v10 }
 0x201   : > { %v5566_v11 = vpop.f32.mrf.mxu0  ;;  %v5511_v32 = vpop.f32.mrf.mxu1 }
 0x202   : > { %v7485_v3 = vadd.f32 %v5565_v62, %v7404_v58  ;;  %v7493_v56 = vadd.f32 %v5510_v4, %v7342_v16 }
 0x203   : > { %v5567_v40 = vpop.f32.mrf.mxu0  ;;  %v5512_v58 = vpop.f32.mrf.mxu1 }
 0x204   : > { %v5568_v12 = vadd.f32 %v5567_v40, %v5566_v11  ;;  %v5513_v26 = vadd.f32 %v5512_v58, %v5511_v32 }
 0x205   : > { %v5569_v60 = vpop.f32.mrf.mxu0  ;;  %v5514_v2 = vpop.f32.mrf.mxu1 }
 0x206   : > { %v7490_v63 = vadd.f32 %v5568_v12, %v7407_v27  ;;  %v7499_v51 = vadd.f32 %v5513_v26, %v7346_v23 }
 0x207   : > { %v5570_v54 = vpop.f32.mrf.mxu0  ;;  %v5515_v49 = vpop.f32.mrf.mxu1 }
 0x208   : > { %v5571_v21 = vadd.f32 %v5570_v54, %v5569_v60  ;;  %v5516_v45 = vadd.f32 %v5515_v49, %v5514_v2 }
 0x209   : > { %v5572_v37 = vpop.f32.mrf.mxu0  ;;  %v5517_v34 = vpop.f32.mrf.mxu1 }
 0x20a   : > { %v7496_v15 = vadd.f32 %v5571_v21, %v7410_v28  ;;  %v7505_v5 = vadd.f32 %v5516_v45, %v7350_v44 }
 0x20b   : > { %v5573_v61 = vpop.f32.mrf.mxu0  ;;  %v5518_v1 = vpop.f32.mrf.mxu1 }
 0x20c   : > { %v5574_v6 = vadd.f32 %v5573_v61, %v5572_v37  ;;  %v5519_v62 = vadd.f32 %v5518_v1, %v5517_v34 }
 0x20d   : > { %v5575_v27 = vpop.f32.mrf.mxu0  ;;  %v5520_v11 = vpop.f32.mrf.mxu1 }
 0x20e   : > { %v7502_v33 = vadd.f32 %v5574_v6, %v7417_v24  ;;  %v7511_v57 = vadd.f32 %v5519_v62, %v7354_v13 }
 0x20f   : > { %v5576_v16 = vpop.f32.mrf.mxu0  ;;  %v5521_v43 = vpop.f32.mrf.mxu1 }
 0x210   : > { %v5577_v19 = vadd.f32 %v5576_v16, %v5575_v27  ;;  %v5522_v10 = vadd.f32 %v5521_v43, %v5520_v11 }
 0x211   : > { %v5578_v28 = vpop.f32.mrf.mxu0  ;;  %v5523_v12 = vpop.f32.mrf.mxu1 }
 0x212   : > { %v7508_v39 = vadd.f32 %v5577_v19, %v7422_v22  ;;  %v7517_v31 = vadd.f32 %v5522_v10, %v7362_v52 }
 0x213   : > { %v5579_v23 = vpop.f32.mrf.mxu0  ;;  %v5524_v4 = vpop.f32.mrf.mxu1 }
 0x214   : > { %v5580_v7 = vadd.f32 %v5579_v23, %v5578_v28  ;;  %8000 = vst [vmem:[#allocation4_spill] sm:$0xff] %v7517_v31  ;;  %v5525_v32 = vadd.f32 %v5524_v4, %v5523_v12 }
 0x215   : > { %v5581_v24 = vpop.f32.mrf.mxu0  ;;  %v5654_v21 = vpop.f32.mrf.mxu1 }
 0x216   : > { %v7514_v40 = vadd.f32 %v5580_v7, %v7427_v29  ;;  %v7523_v58 = vadd.f32 %v5525_v32, %v7364_v17 }
 0x217   : > { %v5582_v44 = vpop.f32.mrf.mxu0  ;;  %v5655_v26 = vpop.f32.mrf.mxu1 }
 0x218   : > { %v5583_v60 = vadd.f32 %v5582_v44, %v5581_v24  ;;  %8001 = vst [vmem:[#allocation5_spill] sm:$0xff] %v7523_v58  ;;  %v5656_v2 = vadd.f32 %v5655_v26, %v5654_v21 }
 0x219   : > { %v5584_v22 = vpop.f32.mrf.mxu0  ;;  %v5657_v6 = vpop.f32.mrf.mxu1 }
 0x21a   : > { %v7520_v54 = vadd.f32 %v5583_v60, %v7430_v59  ;;  %v7529_v49 = vadd.f32 %v5656_v2, %v7445_v8 }
 0x21b   : > { %v5585_v13 = vpop.f32.mrf.mxu0  ;;  %v5658_v45 = vpop.f32.mrf.mxu1 }
 0x21c   : > { %v5586_v37 = vadd.f32 %v5585_v13, %v5584_v22  ;;  %v5659_v34 = vadd.f32 %v5658_v45, %v5657_v6 }
 0x21d   : > { %v5587_v29 = vpop.f32.mrf.mxu0  ;;  %v7534_v19 = vpop.f32.mrf.mxu1 }
 0x21e   : > { %v7526_v61 = vadd.f32 %v5586_v37, %v7433_v20  ;;  %v7537_v20 = vadd.f32 %v5659_v34, %v7451_v46 }
 0x21f   : > { %v5588_v52 = vpop.f32.mrf.mxu0  ;;  %v7539_v62 = vpop.f32.mrf.mxu1 }
 0x220   : > { %v5589_v27 = vadd.f32 %v5588_v52, %v5587_v29 }
 0x221   : > { %v5590_v59 = vpop.f32.mrf.mxu0  ;;  %v7544_v11 = vpop.f32.mrf.mxu1 }
 0x222   : > { %v7532_v16 = vadd.f32 %v5589_v27, %v7436_v36 }
 0x223   : > { %v5591_v17 = vpop.f32.mrf.mxu0  ;;  %v7546_v24 = vpop.f32.mrf.mxu1 }
 0x224   : > { %v5592_v28 = vadd.f32 %v5591_v17, %v5590_v59 }
 0x225   : > { %v5593_v1 = vpop.f32.mrf.mxu0  ;;  %v5666_v44 = vpop.f32.mrf.mxu1 }
 0x226   : > { %v7542_v23 = vadd.f32 %v5592_v28, %v7439_v14 }
 0x227   : > { %v5594_v8 = vpop.f32.mrf.mxu0  ;;  %v5667_v60 = vpop.f32.mrf.mxu1 }
 0x228   : > { %v5595_v7 = vadd.f32 %v5594_v8, %v5593_v1  ;;  %v5668_v14 = vadd.f32 %v5667_v60, %v5666_v44 }
 0x229   : > { %v5596_v36 = vpop.f32.mrf.mxu0  ;;  %v7554_v32 = vpop.f32.mrf.mxu1 }
 0x22a   : > { %v7549_v43 = vadd.f32 %v5595_v7, %v7442_v55  ;;  %v7557_v21 = vadd.f32 %v5668_v14, %v7467_v41 }
 0x22b   : > { %v5597_v10 = vpop.f32.mrf.mxu0  ;;  %v7559_v29 = vpop.f32.mrf.mxu1 }
 0x22c   : > { %v5598_v46 = vadd.f32 %v5597_v10, %v5596_v36 }
 0x22d   : > { %v5599_v12 = vpop.f32.mrf.mxu0  ;;  %v7564_v2 = vpop.f32.mrf.mxu1 }
 0x22e   : > { %v7552_v22 = vadd.f32 %v5598_v46, %v7448_v47 }
 0x22f   : > { %v5600_v4 = vpop.f32.mrf.mxu0  ;;  %v7566_v6 = vpop.f32.mrf.mxu1 }
 0x230   : > { %v5601_v13 = vadd.f32 %v5600_v4, %v5599_v12 }
 0x231   : > { %v5602_v37 = vpop.f32.mrf.mxu0  ;;  %v7571_v45 = vpop.f32.mrf.mxu1 }
 0x232   : > { %v7562_v55 = vadd.f32 %v5601_v13, %v7454_v35 }
 0x233   : > { %v5603_v26 = vpop.f32.mrf.mxu0  ;;  %v7573_v17 = vpop.f32.mrf.mxu1 }
 0x234   : > { %v5604_v52 = vadd.f32 %v5603_v26, %v5602_v37 }
 0x235   : > { %v5605_v47 = vpop.f32.mrf.mxu0  ;;  %v7578_v1 = vpop.f32.mrf.mxu1 }
 0x236   : > { %v7569_v27 = vadd.f32 %v5604_v52, %v7459_v50 }
 0x237   : > { %v5606_v59 = vpop.f32.mrf.mxu0  ;;  %v7580_v36 = vpop.f32.mrf.mxu1 }
 0x238   : > { %v5607_v41 = vadd.f32 %v5606_v59, %v5605_v47 }
 0x239   : > { %v5608_v34 = vpop.f32.mrf.mxu0  ;;  %v7585_v44 = vpop.f32.mrf.mxu1 }
 0x23a   : > { %v7576_v35 = vadd.f32 %v5607_v41, %v7464_v38 }
 0x23b   : > { %v5609_v28 = vpop.f32.mrf.mxu0  ;;  %v7587_v60 = vpop.f32.mrf.mxu1 }
 0x23c   : > { %8002 = vst [vmem:[#allocation6_spill] sm:$0xff] %v7576_v35  ;;  %v5610_v8 = vadd.f32 %v5609_v28, %v5608_v34 }
 0x23d   : > { %v5611_v7 = vpop.f32.mrf.mxu0  ;;  %v7592_v4 = vpop.f32.mrf.mxu1 }
 0x23e   : > { %v7583_v50 = vadd.f32 %v5610_v8, %v7469_v48 }
 0x23f   : > { %v5612_v10 = vpop.f32.mrf.mxu0  ;;  %v7594_v26 = vpop.f32.mrf.mxu1 }
 0x240   : > { %v5613_v46 = vadd.f32 %v5612_v10, %v5611_v7 }
 0x241   : > { %v5614_v12 = vpop.f32.mrf.mxu0  ;;  %v7599_v47 = vpop.f32.mrf.mxu1 }
 0x242   : > { %v7590_v38 = vadd.f32 %v5613_v46, %v7474_v25 }
 0x243   : > { %v5615_v14 = vpop.f32.mrf.mxu0  ;;  %v7601_v34 = vpop.f32.mrf.mxu1 }
 0x244   : > { %v5616_v13 = vadd.f32 %v5615_v14, %v5614_v12 }
 0x245   : > { %v5617_v37 = vpop.f32.mrf.mxu0  ;;  %v7606_v8 = vpop.f32.mrf.mxu1 }
 0x246   : > { %v7597_v48 = vadd.f32 %v5616_v13, %v7480_v0 }
 0x247   : > { %v5618_v52 = vpop.f32.mrf.mxu0  ;;  %v7608_v46 = vpop.f32.mrf.mxu1 }
 0x248   : > { %8003 = vst [vmem:[#allocation7_spill] sm:$0xff] %v7597_v48  ;;  %v5619_v59 = vadd.f32 %v5618_v52, %v5617_v37 }
 0x249   : > { %v5620_v41 = vpop.f32.mrf.mxu0  ;;  %v7613_v14 = vpop.f32.mrf.mxu1 }
 0x24a   : > { %v7604_v25 = vadd.f32 %v5619_v59, %v7487_v9 }
 0x24b   : > { %v5621_v28 = vpop.f32.mrf.mxu0  ;;  %v7615_v52 = vpop.f32.mrf.mxu1 }
 0x24c   : > { %8004 = vst [vmem:[#allocation8_spill] sm:$0xff] %v7604_v25  ;;  %v5622_v7 = vadd.f32 %v5621_v28, %v5620_v41 }
 0x24d   : > { %v5623_v10 = vpop.f32.mrf.mxu0  ;;  %v7620_v58 = vpop.f32.mrf.mxu1 }
 0x24e   : > { %v7611_v0 = vadd.f32 %v5622_v7, %v7493_v56 }
 0x24f   : > { %v5624_v12 = vpop.f32.mrf.mxu0  ;;  %v7622_v31 = vpop.f32.mrf.mxu1 }
 0x250   : > { %8005 = vst [vmem:[#allocation9_spill] sm:$0xff] %v7611_v0  ;;  %v5625_v13 = vadd.f32 %v5624_v12, %v5623_v10 }
 0x251   : > { %v5626_v37 = vpop.f32.mrf.mxu0  ;;  %v7627_v25 = vpop.f32.mrf.mxu1 }
 0x252   : > { %v7618_v9 = vadd.f32 %v5625_v13, %v7499_v51 }
 0x253   : > { %v5627_v59 = vpop.f32.mrf.mxu0  ;;  %v7631_v48 = vpop.f32.mrf.mxu1 }
 0x254   : > { %8006 = vst [vmem:[#allocation10_spill] sm:$0xff] %v7618_v9  ;;  %v5628_v41 = vadd.f32 %v5627_v59, %v5626_v37 }
 0x255   : > { %v5629_v28 = vpop.f32.mrf.mxu0  ;;  %v7638_v37 = vpop.f32.mrf.mxu1 }
 0x256   : > { %v7625_v56 = vadd.f32 %v5628_v41, %v7505_v5 }
 0x257   : > { %v5630_v7 = vpop.f32.mrf.mxu0  ;;  %v7642_v9 = vpop.f32.mrf.mxu1 }
 0x258   : > { %8007 = vst [vmem:[#allocation11_spill] sm:$0xff] %v7625_v56  ;;  %v5631_v10 = vadd.f32 %v5630_v7, %v5629_v28  ;;  %v5662_v28 = vadd.f32 %v7539_v62, %v7534_v19  ;;  %v5674_v19 = vadd.f32 %v7566_v6, %v7564_v2  ;;  %v5677_v62 = vadd.f32 %v7573_v17, %v7571_v45 }
 0x259   : > { %v7629_v12 = vpop.f32.mrf.mxu0  ;;  %v7646_v41 = vpop.f32.mrf.mxu1  ;;  %v5671_v6 = vadd.f32 %v7559_v29, %v7554_v32 }
 0x25a   : > { %8008 = vst [vmem:[#allocation12_spill] sm:$0xff] %v7629_v12  ;;  %v7634_v51 = vadd.f32 %v5631_v10, %v7511_v57  ;;  %v5665_v57 = vadd.f32 %v7546_v24, %v7544_v11  ;;  %v4101_v32 = vadd.f32 %v5677_v62, %v7485_v3  ;;  %v5686_v3 = vadd.f32 %v7594_v26, %v7592_v4 }
 0x25b   : > { %v7636_v13 = vpop.f32.mrf.mxu0  ;;  %v7652_v10 = vpop.f32.mrf.mxu1  ;;  %v5689_v62 = vadd.f32 %v7601_v34, %v7599_v47 }
 0x25c   : > { %8009 = vst [vmem:[#allocation13_spill] sm:$0xff] %v7634_v51  ;;  %8010 = vst [vmem:[#allocation14_spill] sm:$0xff] %v7636_v13  ;;  %v4085_v13 = vadd.f32 %v5665_v57, %v7462_v53 }
 0x25d   : > { %v7640_v59 = vpop.f32.mrf.mxu0  ;;  %v7654_v56 = vpop.f32.mrf.mxu1 }
 0x25e   : > { %8011 = vst [vmem:[#allocation15_spill] sm:$0xff] %v7640_v59  ;;  %v4082_v59 = vadd.f32 %v5662_v28, %v7457_v18  ;;  %v4093_v28 = vadd.f32 %v5671_v6, %v7472_v30 }
 0x25f   : > { %v7644_v5 = vpop.f32.mrf.mxu0 }
 0x260   : > { %8012 = vst [vmem:[#allocation16_spill] sm:$0xff] %v7644_v5  ;;  %v7658_v5 = vpop.f32.mrf.mxu1 }
 0x261   : > { %v5792_v7 = vpop.f32.mrf.mxu0 }
 0x262   : > { %v7660_v0 = vadd.f32 %v5792_v7, %v4082_v59  ;;  %v7673_v53 = vpop.f32.mrf.mxu1 }
 0x263   : > { %v4234_v51 = vpop.f32.mrf.mxu0 }
 0x264   : > { %v7678_v11 = vadd.f32 %v4234_v51, %v7529_v49 }
 0x265   : > { %v5793_v12 = vpop.f32.mrf.mxu0 }
 0x266   : > { %v7662_v35 = vadd.f32 %v5793_v12, %v4085_v13  ;;  %v7687_v13 = vpop.f32.mrf.mxu1 }
 0x267   : > { %v4237_v18 = vpop.f32.mrf.mxu0 }
 0x268   : > { %v5200_v24 = vpack.c.bf16 %v7662_v35, %v7660_v0  ;;  %v7683_v2 = vadd.f32 %v4237_v18, %v7537_v20  ;;  %v7694_v17 = vpop.f32.mrf.mxu1  ;;  %v4098_v20 = vadd.f32 %v5674_v19, %v7477_v42  ;;  %v5680_v42 = vadd.f32 %v7580_v36, %v7578_v1 }
 0x269   : > { %v5796_v12 = vpop.f32.mrf.mxu0  ;;  %v5683_v1 = vadd.f32 %v7587_v60, %v7585_v44  ;;  %v4117_v44 = vadd.f32 %v5689_v62, %v7508_v39 }
 0x26a   : > { %8013 = vst [vmem:[#allocation17_spill] sm:$0xff] %v7683_v2  ;;  %5287 = vst [vmem:[%s7671_s9 + $0x8] sm:$0xff] %v5200_v24   ;;  %v4361_v59 = vadd.f32 %v7683_v2, %v7678_v11  ;;  %v5195_v49 = vpack.c.bf16 %v7683_v2, %v7678_v11  ;;  %v7701_v57 = vpop.f32.mrf.mxu1  ;;  %v7703_v7 = vadd.f32 %v5796_v12, %v4098_v20 }
 0x26b   : > { %v4250_v45 = vpop.f32.mrf.mxu0  ;;  %v4109_v20 = vadd.f32 %v5683_v1, %v7496_v15  ;;  %v5701_v15 = vadd.f32 %v7631_v48, %v7627_v25 }
 0x26c   : > { %v4362_v51 = vadd.f32 %v4361_v59, %v7660_v0  ;;  %5196 = vst [vmem:[%s7671_s9] sm:$0xff] %v5195_v49   ;;  %v7706_v18 = vadd.f32 %v4250_v45, %v7557_v21  ;;  %v7715_v19 = vpop.f32.mrf.mxu1  ;;  %v4114_v45 = vadd.f32 %v5686_v3, %v7502_v33  ;;  %v5692_v33 = vadd.f32 %v7608_v46, %v7606_v8 }
 0x26d   : > { %v5797_v29 = vpop.f32.mrf.mxu0 }
 0x26e   : > { %v4363_v24 = vadd.f32 %v4362_v51, %v7662_v35  ;;  %v7709_v2 = vadd.f32 %v5797_v29, %v4101_v32  ;;  %v7726_v59 = vpop.f32.mrf.mxu1  ;;  %v4106_v51 = vadd.f32 %v5680_v42, %v7490_v63  ;;  %v5698_v63 = vadd.f32 %v7622_v31, %v7620_v58 }
 0x26f   : > { %v4253_v30 = vpop.f32.mrf.mxu0 }
 0x270   : > { %v4364_v21 = vadd.f32 %v4363_v24, %v7706_v18  ;;  %v5210_v6 = vpack.c.bf16 %v7709_v2, %v7703_v7  ;;  %v7722_v12 = vadd.f32 %v4253_v30, %v4093_v28  ;;  %v7732_v34 = vpop.f32.mrf.mxu1 }
 0x271   : > { %v5800_v36 = vpop.f32.mrf.mxu0 }
 0x272   : > { %5289 = vst [vmem:[%s7671_s9 + $0x18] sm:$0xff] %v5210_v6   ;;  %v4365_v4 = vadd.f32 %v4364_v21, %v7722_v12  ;;  %v5205_v26 = vpack.c.bf16 %v7722_v12, %v7706_v18  ;;  %v5721_v32 = vpop.f32.mrf.mxu1  ;;  %v7740_v29 = vadd.f32 %v5800_v36, %v4114_v45  ;;  %v5695_v6 = vadd.f32 %v7615_v52, %v7613_v14 }
 0x273   : > { %v4266_v47 = vpop.f32.mrf.mxu0  ;;  %v4130_v36 = vadd.f32 %v5698_v63, %v7526_v61  ;;  %v4133_v14 = vadd.f32 %v5701_v15, %v7532_v16  ;;  %v5704_v61 = vadd.f32 %v7642_v9, %v7638_v37  ;;  %v5707_v63 = vadd.f32 %v7652_v10, %v7646_v41 }
 0x274   : > { %v4366_v49 = vadd.f32 %v4365_v4, %v7703_v7  ;;  %5288 = vst [vmem:[%s7671_s9 + $0x10] sm:$0xff] %v5205_v26   ;;  %v7742_v28 = vadd.f32 %v4266_v47, %v4106_v51  ;;  %v5723_v42 = vpop.f32.mrf.mxu1  ;;  %v4122_v4 = vadd.f32 %v5692_v33, %v7514_v40  ;;  %v4125_v26 = vadd.f32 %v5695_v6, %v7520_v54 }
 0x275   : > { %v5801_v60 = vpop.f32.mrf.mxu0  ;;  %v5710_v40 = vadd.f32 %v7658_v5, %v7654_v56  ;;  %v4141_v10 = vadd.f32 %v5707_v63, %v7549_v43 }
 0x276   : > { %v4367_v24 = vadd.f32 %v4366_v49, %v7709_v2  ;;  %v7745_v30 = vadd.f32 %v5801_v60, %v4117_v44  ;;  %v5724_v46 = vpop.f32.mrf.mxu1  ;;  %v5713_v60 = vadd.f32 %v7687_v13, %v7673_v53 }
 0x277   : > { %v4269_v39 = vpop.f32.mrf.mxu0  ;;  %v4146_v15 = vadd.f32 %v5710_v40, %v7552_v22  ;;  %v5716_v22 = vadd.f32 %v7701_v57, %v7694_v17 }
 0x278   : > { %v4368_v3 = vadd.f32 %v4367_v24, %v7742_v28  ;;  %v5220_v62 = vpack.c.bf16 %v7745_v30, %v7740_v29  ;;  %v7756_v21 = vadd.f32 %v4269_v39, %v4109_v20  ;;  %v7764_v48 = vpop.f32.mrf.mxu1 }
 0x279   : > { %v5804_v8 = vpop.f32.mrf.mxu0 }
 0x27a   : > { %5291 = vst [vmem:[%s7671_s9 + $0x28] sm:$0xff] %v5220_v62   ;;  %v4369_v31 = vadd.f32 %v4368_v3, %v7756_v21  ;;  %v5215_v58 = vpack.c.bf16 %v7756_v21, %v7742_v28  ;;  %v7772_v47 = vpop.f32.mrf.mxu1  ;;  %v7774_v49 = vadd.f32 %v5804_v8, %v4130_v36  ;;  %v4138_v3 = vadd.f32 %v5704_v61, %v7542_v23 }
 0x27b   : > { %v4282_v1 = vpop.f32.mrf.mxu0  ;;  %v4149_v62 = vadd.f32 %v5713_v60, %v7562_v55  ;;  %v5722_v23 = vadd.f32 %v5721_v32, %v7732_v34 }
 0x27c   : > { %v4370_v25 = vadd.f32 %v4369_v31, %v7740_v29  ;;  %5290 = vst [vmem:[%s7671_s9 + $0x20] sm:$0xff] %v5215_v58   ;;  %v7776_v45 = vadd.f32 %v4282_v1, %v4122_v4  ;;  %v5729_v54 = vpop.f32.mrf.mxu1  ;;  %v5725_v4 = vadd.f32 %v5724_v46, %v5723_v42  ;;  %v4154_v42 = vadd.f32 %v5716_v22, %v7569_v27  ;;  %v8017_v22 = vld [vmem:[#allocation12_spill] sm:$0xff] }
 0x27d   : > { %v5805_v52 = vpop.f32.mrf.mxu0  ;;  %v4162_v34 = vadd.f32 %v5722_v23, %v7583_v50  ;;  %v5728_v27 = vadd.f32 %v7772_v47, %v7764_v48  ;;  %v8016_v48 = vld [vmem:[#allocation10_spill] sm:$0xff] }
 0x27e   : > { %v4371_v51 = vadd.f32 %v4370_v25, %v7745_v30  ;;  %v7779_v44 = vadd.f32 %v5805_v52, %v4133_v14  ;;  %v5730_v37 = vpop.f32.mrf.mxu1  ;;  %v5719_v52 = vadd.f32 %v7726_v59, %v7715_v19  ;;  %v4165_v46 = vadd.f32 %v5725_v4, %v7590_v38  ;;  %v8018_v23 = vld [vmem:[#allocation14_spill] sm:$0xff] }
 0x27f   : > { %v4285_v16 = vpop.f32.mrf.mxu0 }
 0x280   : > { %v4372_v20 = vadd.f32 %v4371_v51, %v7776_v45  ;;  %v5230_v24 = vpack.c.bf16 %v7779_v44, %v7774_v49  ;;  %v7790_v33 = vadd.f32 %v4285_v16, %v4125_v26  ;;  %v5732_v53 = vpop.f32.mrf.mxu1  ;;  %v8014_v16 = vld [vmem:[#allocation6_spill] sm:$0xff] }
 0x281   : > { %v5808_v9 = vpop.f32.mrf.mxu0  ;;  %v4157_v60 = vadd.f32 %v5719_v52, %v8014_v16  ;;  %v8020_v52 = vld [vmem:[#allocation15_spill] sm:$0xff]  ;;  %v8023_v16 = vld [vmem:[#allocation4_spill] sm:$0xff] }
 0x282   : > { %5293 = vst [vmem:[%s7671_s9 + $0x38] sm:$0xff] %v5230_v24   ;;  %v4373_v56 = vadd.f32 %v4372_v20, %v7790_v33  ;;  %v5225_v5 = vpack.c.bf16 %v7790_v33, %v7776_v45  ;;  %v5733_v6 = vpop.f32.mrf.mxu1  ;;  %v7804_v8 = vadd.f32 %v5808_v9, %v4146_v15  ;;  %v5731_v15 = vadd.f32 %v5730_v37, %v5729_v54  ;;  %v8019_v37 = vld [vmem:[#allocation7_spill] sm:$0xff] }
 0x283   : > { %v4298_v39 = vpop.f32.mrf.mxu0  ;;  %v5734_v20 = vadd.f32 %v5733_v6, %v5732_v53  ;;  %v4170_v4 = vadd.f32 %v5728_v27, %v8019_v37 }
 0x284   : > { %v4374_v13 = vadd.f32 %v4373_v56, %v7774_v49  ;;  %5292 = vst [vmem:[%s7671_s9 + $0x30] sm:$0xff] %v5225_v5   ;;  %v7806_v31 = vadd.f32 %v4298_v39, %v4138_v3  ;;  %v5735_v55 = vpop.f32.mrf.mxu1 }
 0x285   : > { %v5809_v41 = vpop.f32.mrf.mxu0 }
 0x286   : > { %v4375_v58 = vadd.f32 %v4374_v13, %v7779_v44  ;;  %v7809_v1 = vadd.f32 %v5809_v41, %v4149_v62  ;;  %v5736_v51 = vpop.f32.mrf.mxu1  ;;  %v8015_v62 = vld [vmem:[#allocation9_spill] sm:$0xff] }
 0x287   : > { %v4301_v25 = vpop.f32.mrf.mxu0  ;;  %v5737_v56 = vadd.f32 %v5736_v51, %v5735_v55  ;;  %v4178_v41 = vadd.f32 %v5734_v20, %v8015_v62 }
 0x288   : > { %v4376_v43 = vadd.f32 %v4375_v58, %v7806_v31  ;;  %v5240_v36 = vpack.c.bf16 %v7809_v1, %v7804_v8  ;;  %v7817_v14 = vadd.f32 %v4301_v25, %v4141_v10  ;;  %v5738_v61 = vpop.f32.mrf.mxu1  ;;  %v5634_v25 = vadd.f32 %v8018_v23, %v8017_v22 }
 0x289   : > { %v5812_v26 = vpop.f32.mrf.mxu0  ;;  %v4181_v47 = vadd.f32 %v5737_v56, %v8016_v48 }
 0x28a   : > { %5295 = vst [vmem:[%s7671_s9 + $0x48] sm:$0xff] %v5240_v36   ;;  %v4377_v17 = vadd.f32 %v4376_v43, %v7817_v14  ;;  %v5235_v57 = vpack.c.bf16 %v7817_v14, %v7806_v31  ;;  %v7830_v19 = vadd.f32 %v5812_v26, %v4162_v34  ;;  %v5739_v24 = vpop.f32.mrf.mxu1  ;;  %v8021_v26 = vld [vmem:[#allocation16_spill] sm:$0xff] }
 0x28b   : > { %v4314_v32 = vpop.f32.mrf.mxu0  ;;  %v5740_v43 = vadd.f32 %v5739_v24, %v5738_v61  ;;  %v5637_v51 = vadd.f32 %v8021_v26, %v8020_v52  ;;  %v8022_v34 = vld [vmem:[#allocation8_spill] sm:$0xff]  ;;  %v8024_v24 = vld [vmem:[#allocation11_spill] sm:$0xff] }
 0x28c   : > { %v4378_v40 = vadd.f32 %v4377_v17, %v7804_v8  ;;  %5294 = vst [vmem:[%s7671_s9 + $0x40] sm:$0xff] %v5235_v57   ;;  %v7833_v63 = vadd.f32 %v4314_v32, %v4154_v42  ;;  %v5741_v39 = vpop.f32.mrf.mxu1  ;;  %v4173_v32 = vadd.f32 %v5731_v15, %v8022_v34  ;;  %v8025_v15 = vld [vmem:[#allocation5_spill] sm:$0xff] }
 0x28d   : > { %v5813_v59 = vpop.f32.mrf.mxu0 }
 0x28e   : > { %v4379_v50 = vadd.f32 %v4378_v40, %v7809_v1  ;;  %v7836_v9 = vadd.f32 %v5813_v59, %v4165_v46  ;;  %v5742_v10 = vpop.f32.mrf.mxu1 }
 0x28f   : > { %v4317_v5 = vpop.f32.mrf.mxu0 }
 0x290   : > { %v4380_v38 = vadd.f32 %v4379_v50, %v7833_v63  ;;  %v5250_v53 = vpack.c.bf16 %v7836_v9, %v7830_v19  ;;  %v7843_v13 = vadd.f32 %v4317_v5, %v4157_v60  ;;  %v5744_v36 = vpop.f32.mrf.mxu1  ;;  %v4033_v60 = vadd.f32 %v5634_v25, %v8023_v16 }
 0x291   : > { %v5816_v3 = vpop.f32.mrf.mxu0  ;;  %v4186_v50 = vadd.f32 %v5740_v43, %v8024_v24 }
 0x292   : > { %5297 = vst [vmem:[%s7671_s9 + $0x58] sm:$0xff] %v5250_v53   ;;  %v4381_v6 = vadd.f32 %v4380_v38, %v7843_v13  ;;  %v5245_v58 = vpack.c.bf16 %v7843_v13, %v7833_v63  ;;  %v7858_v17 = vadd.f32 %v5816_v3, %v4178_v41  ;;  %v5745_v40 = vpop.f32.mrf.mxu1  ;;  %v5743_v53 = vadd.f32 %v5742_v10, %v5741_v39  ;;  %v8026_v39 = vld [vmem:[#allocation13_spill] sm:$0xff] }
 0x293   : > { %v4330_v55 = vpop.f32.mrf.mxu0  ;;  %v5746_v59 = vadd.f32 %v5745_v40, %v5744_v36  ;;  %v4036_v3 = vadd.f32 %v5637_v51, %v8025_v15 }
 0x294   : > { %v4382_v54 = vadd.f32 %v4381_v6, %v7830_v19  ;;  %5296 = vst [vmem:[%s7671_s9 + $0x50] sm:$0xff] %v5245_v58   ;;  %v7861_v42 = vadd.f32 %v4330_v55, %v4170_v4  ;;  %v5747_v56 = vpop.f32.mrf.mxu1  ;;  %v4189_v10 = vadd.f32 %v5743_v53, %v8026_v39 }
 0x295   : > { %v5817_v57 = vpop.f32.mrf.mxu0  ;;  %v4194_v48 = vadd.f32 %v5746_v59, %v4033_v60 }
 0x296   : > { %v4383_v61 = vadd.f32 %v4382_v54, %v7836_v9  ;;  %v7864_v46 = vadd.f32 %v5817_v57, %v4181_v47  ;;  %v5748_v41 = vpop.f32.mrf.mxu1 }
 0x297   : > { %v4333_v20 = vpop.f32.mrf.mxu0  ;;  %v5749_v47 = vadd.f32 %v5748_v41, %v5747_v56 }
 0x298   : > { %v4384_v5 = vadd.f32 %v4383_v61, %v7861_v42  ;;  %v5260_v27 = vpack.c.bf16 %v7864_v46, %v7858_v17  ;;  %v7871_v38 = vadd.f32 %v4333_v20, %v4173_v32 }
 0x299   : > { %v5820_v62 = vpop.f32.mrf.mxu0  ;;  %v4197_v55 = vadd.f32 %v5749_v47, %v4036_v3 }
 0x29a   : > { %5299 = vst [vmem:[%s7671_s9 + $0x68] sm:$0xff] %v5260_v27   ;;  %v4385_v6 = vadd.f32 %v4384_v5, %v7871_v38  ;;  %v5255_v58 = vpack.c.bf16 %v7871_v38, %v7861_v42  ;;  %v7884_v54 = vadd.f32 %v5820_v62, %v4194_v48  ;;  %v8027_v5 = vld [vmem:[#allocation17_spill] sm:$0xff] }
 0x29b   : > { %v4346_v22 = vpop.f32.mrf.mxu0 }
 0x29c   : > { %v4386_v23 = vadd.f32 %v4385_v6, %v7858_v17  ;;  %5298 = vst [vmem:[%s7671_s9 + $0x60] sm:$0xff] %v5255_v58   ;;  %v7880_v25 = vadd.f32 %v4346_v22, %v4186_v50 }
 0x29d   : > { %v5821_v43 = vpop.f32.mrf.mxu0 }
 0x29e   : > { %v4387_v36 = vadd.f32 %v4386_v23, %v7864_v46  ;;  %v7886_v37 = vadd.f32 %v5821_v43, %v4197_v55 }
 0x29f   : > { %v4349_v4 = vpop.f32.mrf.mxu0 }
 0x2a0   : > { %v4388_v52 = vadd.f32 %v4387_v36, %v7880_v25  ;;  %v7889_v26 = vadd.f32 %v4349_v4, %v4189_v10  ;;  %v5270_v51 = vpack.c.bf16 %v7886_v37, %v7884_v54 }
 0x2a2   : > { %v4389_v57 = vadd.f32 %v4388_v52, %v7889_v26  ;;  %v5265_v34 = vpack.c.bf16 %v7889_v26, %v7880_v25  ;;  %5301 = vst [vmem:[%s7671_s9 + $0x78] sm:$0xff] %v5270_v51  }
 0x2a4   : > { %5300 = vst [vmem:[%s7671_s9 + $0x70] sm:$0xff] %v5265_v34   ;;  %v4390_v32 = vadd.f32 %v4389_v57, %v7884_v54 }
 0x2a6   : > { %v4391_v40 = vadd.f32 %v4390_v32, %v7886_v37 }
 0x2a8   : > { %v4392_v61 = vrot.slane %v4391_v40, 4 }
 0x2aa   : > { %v4393_v59 = vadd.f32 %v4392_v61, %v4391_v40 }
 0x2ac   : > { %v4394_v16 = vrot.slane %v4393_v59, 2 }
 0x2ae   : > { %v4395_v60 = vadd.f32 %v4394_v16, %v4393_v59 }
 0x2b0   : > { %v4396_v20 = vrot.slane %v4395_v60, 1 }
 0x2b2   : > { %v7900_v24 = vadd.f32 %v4396_v20, %v4395_v60 }
 0x2b4   : > { %v7903_v50 = vmul.f32 0.00390625, %v7900_v24 }
 0x2b6   : > { %v4400_v56 = vsub.f32 %v7678_v11, %v7903_v50  ;;  %v4401_v27 = vsub.f32 %v8027_v5, %v7903_v50  ;;  %v4402_v53 = vsub.f32 %v7660_v0, %v7903_v50  ;;  %v4403_v62 = vsub.f32 %v7662_v35, %v7903_v50 }
 0x2b7   : > { %v4404_v41 = vsub.f32 %v7706_v18, %v7903_v50  ;;  %v4405_v48 = vsub.f32 %v7722_v12, %v7903_v50  ;;  %v4406_v22 = vsub.f32 %v7703_v7, %v7903_v50  ;;  %v4407_v39 = vsub.f32 %v7709_v2, %v7903_v50 }
 0x2b8   : > { %v4432_v15 = vmul.f32 %v4400_v56, %v4400_v56  ;;  %v4433_v3 = vmul.f32 %v4401_v27, %v4401_v27  ;;  %v4434_v6 = vmul.f32 %v4402_v53, %v4402_v53  ;;  %v4435_v11 = vmul.f32 %v4403_v62, %v4403_v62 }
 0x2b9   : > { %v4436_v23 = vmul.f32 %v4404_v41, %v4404_v41  ;;  %v4437_v10 = vmul.f32 %v4405_v48, %v4405_v48  ;;  %v4408_v18 = vsub.f32 %v7742_v28, %v7903_v50  ;;  %v4438_v55 = vmul.f32 %v4406_v22, %v4406_v22 }
 0x2ba   : > { %v4464_v58 = vadd.f32 %v4433_v3, %v4432_v15  ;;  %v4409_v12 = vsub.f32 %v7756_v21, %v7903_v50  ;;  %v4439_v36 = vmul.f32 %v4407_v39, %v4407_v39  ;;  %v4410_v7 = vsub.f32 %v7740_v29, %v7903_v50 }
 0x2bb   : > { %v4440_v52 = vmul.f32 %v4408_v18, %v4408_v18  ;;  %v4411_v2 = vsub.f32 %v7745_v30, %v7903_v50  ;;  %v4412_v28 = vsub.f32 %v7776_v45, %v7903_v50  ;;  %v4413_v21 = vsub.f32 %v7790_v33, %v7903_v50 }
 0x2bc   : > { %v4465_v47 = vadd.f32 %v4464_v58, %v4434_v6  ;;  %v4441_v57 = vmul.f32 %v4409_v12, %v4409_v12  ;;  %v4442_v32 = vmul.f32 %v4410_v7, %v4410_v7  ;;  %v4414_v29 = vsub.f32 %v7774_v49, %v7903_v50 }
 0x2bd   : > { %v4443_v61 = vmul.f32 %v4411_v2, %v4411_v2  ;;  %v4444_v16 = vmul.f32 %v4412_v28, %v4412_v28  ;;  %v4415_v30 = vsub.f32 %v7779_v44, %v7903_v50  ;;  %v4445_v20 = vmul.f32 %v4413_v21, %v4413_v21 }
 0x2be   : > { %v4466_v0 = vadd.f32 %v4465_v47, %v4435_v11  ;;  %v4416_v45 = vsub.f32 %v7806_v31, %v7903_v50  ;;  %v4446_v5 = vmul.f32 %v4414_v29, %v4414_v29  ;;  %v4417_v33 = vsub.f32 %v7817_v14, %v7903_v50 }
 0x2bf   : > { %v4447_v53 = vmul.f32 %v4415_v30, %v4415_v30  ;;  %v4418_v49 = vsub.f32 %v7804_v8, %v7903_v50  ;;  %v4419_v44 = vsub.f32 %v7809_v1, %v7903_v50  ;;  %v4420_v31 = vsub.f32 %v7833_v63, %v7903_v50 }
 0x2c0   : > { %v4467_v35 = vadd.f32 %v4466_v0, %v4436_v23  ;;  %v4448_v3 = vmul.f32 %v4416_v45, %v4416_v45  ;;  %v4449_v41 = vmul.f32 %v4417_v33, %v4417_v33  ;;  %v4421_v14 = vsub.f32 %v7843_v13, %v7903_v50 }
 0x2c1   : > { %v4450_v58 = vmul.f32 %v4418_v49, %v4418_v49  ;;  %v4451_v11 = vmul.f32 %v4419_v44, %v4419_v44  ;;  %v4422_v8 = vsub.f32 %v7830_v19, %v7903_v50  ;;  %v4452_v22 = vmul.f32 %v4420_v31, %v4420_v31 }
 0x2c2   : > { %v4468_v43 = vadd.f32 %v4467_v35, %v4437_v10  ;;  %v4423_v1 = vsub.f32 %v7836_v9, %v7903_v50  ;;  %v4453_v0 = vmul.f32 %v4421_v14, %v4421_v14  ;;  %v4424_v63 = vsub.f32 %v7861_v42, %v7903_v50 }
 0x2c3   : > { %v4454_v10 = vmul.f32 %v4422_v8, %v4422_v8  ;;  %v4425_v13 = vsub.f32 %v7871_v38, %v7903_v50  ;;  %v4426_v19 = vsub.f32 %v7858_v17, %v7903_v50  ;;  %v4427_v9 = vsub.f32 %v7864_v46, %v7903_v50 }
 0x2c4   : > { %v4469_v4 = vadd.f32 %v4468_v43, %v4438_v55  ;;  %v4455_v18 = vmul.f32 %v4423_v1, %v4423_v1  ;;  %v4456_v43 = vmul.f32 %v4424_v63, %v4424_v63  ;;  %v4428_v42 = vsub.f32 %v7880_v25, %v7903_v50 }
 0x2c5   : > { %v4458_v7 = vmul.f32 %v4426_v19, %v4426_v19  ;;  %v4429_v38 = vsub.f32 %v7889_v26, %v7903_v50  ;;  %v4430_v17 = vsub.f32 %v7884_v54, %v7903_v50  ;;  %v4431_v46 = vsub.f32 %v7886_v37, %v7903_v50 }
 0x2c6   : > { %v4470_v51 = vadd.f32 %v4469_v4, %v4439_v36  ;;  %v4457_v36 = vmul.f32 %v4425_v13, %v4425_v13 }
 0x2c7   : > { %v4461_v28 = vmul.f32 %v4429_v38, %v4429_v38  ;;  %v4463_v21 = vmul.f32 %v4431_v46, %v4431_v46 }
 0x2c8   : > { %v4471_v34 = vadd.f32 %v4470_v51, %v4440_v52  ;;  %v4459_v51 = vmul.f32 %v4427_v9, %v4427_v9 }
 0x2ca   : > { %v4472_v40 = vadd.f32 %v4471_v34, %v4441_v57  ;;  %v4460_v57 = vmul.f32 %v4428_v42, %v4428_v42 }
 0x2cc   : > { %v4473_v59 = vadd.f32 %v4472_v40, %v4442_v32  ;;  %v4462_v40 = vmul.f32 %v4430_v17, %v4430_v17 }
 0x2ce   : > { %v4474_v60 = vadd.f32 %v4473_v59, %v4443_v61 }
 0x2d0   : > { %v4475_v56 = vadd.f32 %v4474_v60, %v4444_v16 }
 0x2d2   : > { %v4476_v27 = vadd.f32 %v4475_v56, %v4445_v20 }
 0x2d4   : > { %v4477_v15 = vadd.f32 %v4476_v27, %v4446_v5 }
 0x2d6   : > { %v4478_v62 = vadd.f32 %v4477_v15, %v4447_v53 }
 0x2d8   : > { %v4479_v6 = vadd.f32 %v4478_v62, %v4448_v3 }
 0x2da   : > { %v4480_v48 = vadd.f32 %v4479_v6, %v4449_v41 }
 0x2dc   : > { %v4481_v47 = vadd.f32 %v4480_v48, %v4450_v58 }
 0x2de   : > { %v4482_v23 = vadd.f32 %v4481_v47, %v4451_v11 }
 0x2e0   : > { %v4483_v39 = vadd.f32 %v4482_v23, %v4452_v22 }
 0x2e2   : > { %v4484_v35 = vadd.f32 %v4483_v39, %v4453_v0 }
 0x2e4   : > { %v4485_v55 = vadd.f32 %v4484_v35, %v4454_v10 }
 0x2e6   : > { %v4486_v12 = vadd.f32 %v4485_v55, %v4455_v18 }
 0x2e8   : > { %v4487_v4 = vadd.f32 %v4486_v12, %v4456_v43 }
 0x2ea   : > { %v4488_v52 = vadd.f32 %v4487_v4, %v4457_v36 }
 0x2ec   : > { %v4489_v2 = vadd.f32 %v4488_v52, %v4458_v7 }
 0x2ee   : > { %v4490_v34 = vadd.f32 %v4489_v2, %v4459_v51 }
 0x2f0   : > { %v4491_v32 = vadd.f32 %v4490_v34, %v4460_v57 }
 0x2f2   : > { %v4492_v25 = vadd.f32 %v4491_v32, %v4461_v28 }
 0x2f4   : > { %v4493_v61 = vadd.f32 %v4492_v25, %v4462_v40 }
 0x2f6   : > { %v4494_v59 = vadd.f32 %v4493_v61, %v4463_v21 }
 0x2f8   : > { %v4495_v29 = vrot.slane %v4494_v59, 4 }
 0x2fa   : > { %v4496_v26 = vadd.f32 %v4495_v29, %v4494_v59 }
 0x2fc   : > { %v4497_v16 = vrot.slane %v4496_v26, 2 }
 0x2fe   : > { %v4498_v60 = vadd.f32 %v4497_v16, %v4496_v26 }
 0x300   : > { %v4499_v30 = vrot.slane %v4498_v60, 1 }
 0x302   : > { %v4500_v54 = vadd.f32 %v4499_v30, %v4498_v60 }
 0x304   : > { %v4502_v37 = vsel %vm435_vm0, %v7900_v24, %v4500_v54 }
 0x305   : > { %4503 = vst [vmem:[%s235_s12] sm:$0x3] %v4502_v37 }
 0x306 PF: > { %s16_s18 = sadd.s32 1, %s6144_s18  }
 0x307   : > { %p13_p4 = scmp.ge.s32.totalorder %s16_s18, 4  }
 0x309   :  { %15 = sbr.rel (!%p13_p4) target bundleno = 1 (0x1), region = 80 }

</bundles_post_ra>
